<compile_context>
chip_gen: v6e
topology: v6e:2x2x1
jax: 0.10.0
libtpu: 0.0.40
codegen_flags: <defaults>
</compile_context>

<pallas_src>
import jax
import jax.numpy as jnp
from jax import lax
from jax.experimental import pallas as pl
from jax.experimental.pallas import tpu as pltpu

_EPS = 1e-5
_TAPS = tuple((dh, dw) for dh in (-1, 0, 1) for dw in (-1, 0, 1))  # kh-major order


# ----------------------------- fused kernel ----------------------------------
def _make_kernel(Cout, Wo, L, in_kernel_im2col, has_downsample,
                 use_bf16, per_tap1, per_tap2):
    cdt = jnp.bfloat16 if use_bf16 else jnp.float32

    def mm(a, b):
        # Operands are already in the compute dtype (bf16 shipped from the wrapper
        # in bf16 mode) -> single MXU pass; f32 mode keeps HIGHEST for 1e-4 parity.
        if use_bf16:
            return jnp.dot(a, b, preferred_element_type=jnp.float32)
        return jnp.dot(a, b, preferred_element_type=jnp.float32,
                       precision=lax.Precision.HIGHEST)

    def conv3x3(act, w_ref, masks, per_tap):
        # act: (C, L) in cdt.  per_tap: w_ref (9, Cout, C); else w_ref (Cout, 9*C).
        acc = None
        pieces = []
        for t, (dh, dw) in enumerate(_TAPS):
            delta = dh * Wo + dw
            src = act if delta == 0 else pltpu.roll(act, shift=(-delta) % L, axis=1)
            src = src * masks[t:t + 1, :]
            if per_tap:
                part = mm(w_ref[t], src)                      # (Cout, L) f32
                acc = part if acc is None else acc + part
            else:
                pieces.append(src)
        if per_tap:
            return acc
        return mm(w_ref[...], jnp.concatenate(pieces, axis=0))  # K = 9*C matmul

    def body(c1_ref, sc_ref, w1_ref, b1_ref, w2_ref, b2_ref, m_ref,
             wd_ref, bd_ref, out_ref):
        masks = m_ref[...]                                    # (9, L) in cdt

        # conv1 (+ folded BN1 scale) + bias + ReLU
        if in_kernel_im2col:
            a1 = conv3x3(c1_ref[0], w1_ref, masks, per_tap1)
        else:
            a1 = mm(w1_ref[...], c1_ref[0])                   # wrapper im2col (stride!=1)
        a1 = jnp.maximum(a1 + b1_ref[...], 0.0)               # (Cout, L) f32

        # conv2 (+ folded BN2 scale): cast once, build patches via rolls in cdt.
        a1c = a1.astype(cdt)
        out2 = conv3x3(a1c, w2_ref, masks, per_tap2) + b2_ref[...]

        # shortcut: identity or 1x1 conv (+ folded BN) downsample.
        if has_downsample:
            ident = mm(wd_ref[...], sc_ref[0]) + bd_ref[...]
        else:
            ident = sc_ref[0].astype(jnp.float32)

        out_ref[0] = jnp.maximum(out2 + ident, 0.0).astype(out_ref.dtype)

    if in_kernel_im2col:
        if has_downsample:
            def kernel(x_ref, w1_ref, b1_ref, w2_ref, b2_ref, m_ref,
                       wd_ref, bd_ref, out_ref):
                body(x_ref, x_ref, w1_ref, b1_ref, w2_ref, b2_ref, m_ref,
                     wd_ref, bd_ref, out_ref)
        else:
            def kernel(x_ref, w1_ref, b1_ref, w2_ref, b2_ref, m_ref, out_ref):
                body(x_ref, x_ref, w1_ref, b1_ref, w2_ref, b2_ref, m_ref,
                     None, None, out_ref)
    else:
        # stride != 1 always has a downsample branch in BasicBlock.
        def kernel(p1_ref, w1_ref, b1_ref, w2_ref, b2_ref, m_ref, xid_ref,
                   wd_ref, bd_ref, out_ref):
            body(p1_ref, xid_ref, w1_ref, b1_ref, w2_ref, b2_ref, m_ref,
                 wd_ref, bd_ref, out_ref)
    return kernel


# ----------------------------- wrapper glue (plain JAX) -----------------------
def _fold_bn(params, prefix):
    gamma = params[prefix + "_gamma"]
    beta = params[prefix + "_beta"]
    mean = params[prefix + "_mean"]
    var = params[prefix + "_var"]
    scale = gamma / jnp.sqrt(var + _EPS)
    bias = beta - mean * scale
    return scale, bias


def _prep_w(w_oihw, scale, per_tap):
    """OIHW (Cout, Cin, 3, 3) -> per-tap (9, Cout, Cin) or flat (Cout, 9*Cin), BN folded."""
    Cout, Cin = w_oihw.shape[:2]
    w = jnp.transpose(w_oihw, (2, 3, 0, 1)).reshape(9, Cout, Cin) * scale[None, :, None]
    if per_tap:
        return w
    return jnp.transpose(w, (1, 0, 2)).reshape(Cout, 9 * Cin)


def _im2col_t(xpad, Ho, Wo, stride):
    """xpad: (N, C, Hp, Wp) -> transposed patches (N, 9*C, Ho*Wo), tap-major rows."""
    N, C = xpad.shape[:2]
    taps = []
    for kh in range(3):
        for kw in range(3):
            sl = xpad[:, :, kh:kh + (Ho - 1) * stride + 1:stride,
                            kw:kw + (Wo - 1) * stride + 1:stride]
            taps.append(sl)
    return jnp.stack(taps, axis=1).reshape(N, 9 * C, Ho * Wo)


def basic_block_forward(x_nchw, params, stride=1, mxu="f32", conv_mode="auto",
                        lane_target=2048):
    """Fused BasicBlock forward (inference-mode BN). x: (N, Cin, H, W) f32 NCHW."""
    N, Cin, H, W = x_nchw.shape
    Cout = params["conv1_w"].shape[0]
    has_downsample = (stride != 1) or (Cin != Cout)
    in_kernel_im2col = (stride == 1)
    Ho = (H - 1) // stride + 1
    Wo = (W - 1) // stride + 1
    HW = Ho * Wo
    HWp = max(128, ((HW + 127) // 128) * 128)          # lane-dense per-image width
    use_bf16 = (mxu == "bf16")
    cdt = jnp.bfloat16 if use_bf16 else jnp.float32

    # Batch folding onto lanes: G images per grid step, L = G * HWp lanes.
    G = 1
    for cand in range(1, N + 1):
        if N % cand == 0 and cand * HWp <= lane_target:
            G = cand
    NG = N // G
    L = G * HWp

    # Conv-mode per conv: single concat matmul only when C is sublane-tile aligned
    # and small; otherwise 9 per-tap matmuls accumulated in f32 (no concat buffer).
    sub_tile = 16 if use_bf16 else 8
    def _per_tap(C):
        if conv_mode == "per_tap":
            return True
        return (C % sub_tile != 0) or (C >= 128)
    per_tap1 = _per_tap(Cin) if in_kernel_im2col else False
    per_tap2 = _per_tap(Cout)

    # BN folding + weight prep (tiny, stays in the wrapper).
    s1, b1 = _fold_bn(params, "bn1")
    s2, b2 = _fold_bn(params, "bn2")
    w1 = _prep_w(params["conv1_w"], s1, per_tap1 if in_kernel_im2col else False).astype(cdt)
    w2 = _prep_w(params["conv2_w"], s2, per_tap2).astype(cdt)

    # Edge-validity masks over the folded lane axis (per tap, incl. center).
    lane = jnp.arange(L, dtype=jnp.int32)
    p = lane % HWp
    ho = p // Wo
    wo = p % Wo
    rows = []
    for dh, dw in _TAPS:
        rows.append((p < HW) & (ho + dh >= 0) & (ho + dh < Ho) &
                    (wo + dw >= 0) & (wo + dw < Wo))
    masks = jnp.stack(rows, axis=0).astype(cdt)         # (9, L)

    def fold(a):    # (N, C, HW) -> (NG, C, L), zero-padded lanes per image
        _, C, _ = a.shape
        pad = HWp - HW
        if pad:
            a = jnp.pad(a, ((0, 0), (0, 0), (0, pad)))
        return a.reshape(NG, G, C, HWp).transpose(0, 2, 1, 3).reshape(NG, C, L)

    if in_kernel_im2col:
        x_t = fold(x_nchw.reshape(N, Cin, HW)).astype(cdt)      # conv1 + shortcut input
    else:
        xpad = jnp.pad(x_nchw, ((0, 0), (0, 0), (1, 1), (1, 1)))
        p1 = fold(_im2col_t(xpad, Ho, Wo, stride)).astype(cdt)  # (NG, 9*Cin, L)
        xid = fold(x_nchw[:, :, ::stride, ::stride].reshape(N, Cin, HW)).astype(cdt)

    if has_downsample:
        sd, bd = _fold_bn(params, "bnd")
        wd = (params["convd_w"][:, :, 0, 0] * sd[:, None]).astype(cdt)   # (Cout, Cin)

    kernel = _make_kernel(Cout, Wo, L, in_kernel_im2col, has_downsample,
                          use_bf16, per_tap1, per_tap2)

    full2 = lambda g: (0, 0)
    full3 = lambda g: (0, 0, 0)
    per_g = lambda g: (g, 0, 0)
    w1_spec = pl.BlockSpec(w1.shape, full3 if w1.ndim == 3 else full2)
    w2_spec = pl.BlockSpec(w2.shape, full3 if w2.ndim == 3 else full2)

    if in_kernel_im2col:
        in_specs = [pl.BlockSpec((1, Cin, L), per_g),
                    w1_spec, pl.BlockSpec((Cout, 1), full2),
                    w2_spec, pl.BlockSpec((Cout, 1), full2),
                    pl.BlockSpec((9, L), full2)]
        args = [x_t, w1, b1.reshape(Cout, 1), w2, b2.reshape(Cout, 1), masks]
    else:
        in_specs = [pl.BlockSpec((1, 9 * Cin, L), per_g),
                    w1_spec, pl.BlockSpec((Cout, 1), full2),
                    w2_spec, pl.BlockSpec((Cout, 1), full2),
                    pl.BlockSpec((9, L), full2),
                    pl.BlockSpec((1, Cin, L), per_g)]
        args = [p1, w1, b1.reshape(Cout, 1), w2, b2.reshape(Cout, 1), masks, xid]
    if has_downsample:
        in_specs += [pl.BlockSpec(wd.shape, full2), pl.BlockSpec((Cout, 1), full2)]
        args += [wd, bd.reshape(Cout, 1)]

    out = pl.pallas_call(
        kernel,
        grid=(NG,),
        in_specs=in_specs,
        out_specs=pl.BlockSpec((1, Cout, L), per_g),
        out_shape=jax.ShapeDtypeStruct((NG, Cout, L), jnp.float32),
        compiler_params=pltpu.CompilerParams(
            dimension_semantics=("parallel",)),
    )(*args)

    out = (out.reshape(NG, Cout, G, HWp).transpose(0, 2, 1, 3)
              .reshape(N, Cout, HWp)[:, :, :HW].reshape(N, Cout, Ho, Wo))
    return out


# ----------------------------- pure-JAX reference -----------------------------
def basic_block_reference(x, params, stride=1):
    def conv(x, w, s, pad):
        return lax.conv_general_dilated(
            x, w, (s, s), [(pad, pad), (pad, pad)],
            dimension_numbers=("NCHW", "OIHW", "NCHW"),
            precision=lax.Precision.HIGHEST)

    def bn(x, prefix):
        g = params[prefix + "_gamma"].reshape(1, -1, 1, 1)
        b = params[prefix + "_beta"].reshape(1, -1, 1, 1)
        m = params[prefix + "_mean"].reshape(1, -1, 1, 1)
        v = params[prefix + "_var"].reshape(1, -1, 1, 1)
        return (x - m) / jnp.sqrt(v + _EPS) * g + b

    out = jax.nn.relu(bn(conv(x, params["conv1_w"], stride, 1), "bn1"))
    out = bn(conv(out, params["conv2_w"], 1, 1), "bn2")
    inplanes, planes = x.shape[1], params["conv1_w"].shape[0]
    if stride != 1 or inplanes != planes:
        identity = bn(conv(x, params["convd_w"], stride, 0), "bnd")
    else:
        identity = x
    return jax.nn.relu(out + identity)


# ----------------------------- deterministic params ---------------------------
def make_params(key, inplanes, planes, stride=1):
    has_ds = (stride != 1) or (inplanes != planes)
    ks = jax.random.split(key, 6)
    p = {
        "conv1_w": 0.1 * jax.random.normal(ks[0], (planes, inplanes, 3, 3), jnp.float32),
        "conv2_w": 0.1 * jax.random.normal(ks[1], (planes, planes, 3, 3), jnp.float32),
    }

    def bn_params(prefix, kk):
        k1, k2, k3, k4 = jax.random.split(kk, 4)
        p[prefix + "_gamma"] = 1.0 + 0.1 * jax.random.normal(k1, (planes,), jnp.float32)
        p[prefix + "_beta"] = 0.1 * jax.random.normal(k2, (planes,), jnp.float32)
        p[prefix + "_mean"] = 0.1 * jax.random.normal(k3, (planes,), jnp.float32)
        p[prefix + "_var"] = jnp.abs(jax.random.normal(k4, (planes,), jnp.float32)) + 0.5

    bn_params("bn1", ks[2])
    bn_params("bn2", ks[3])
    if has_ds:
        p["convd_w"] = 0.1 * jax.random.normal(ks[4], (planes, inplanes, 1, 1), jnp.float32)
        bn_params("bnd", ks[5])
    return p


if __name__ == "__main__":
    key = jax.random.PRNGKey(0)
    k_x1, k_p1, k_x2, k_p2, k_x3, k_p3 = jax.random.split(key, 6)

    # Case 1: channel change -> downsample (1x1 conv + BN), stride=1, in-kernel im2col.
    x1 = jax.random.normal(k_x1, (2, 4, 16, 16), jnp.float32)   # NCHW like PyTorch
    p1 = make_params(k_p1, inplanes=4, planes=8, stride=1)
    out1 = jax.block_until_ready(basic_block_forward(x1, p1, stride=1))
    ref1 = basic_block_reference(x1, p1, stride=1)
    assert out1.shape == ref1.shape == (2, 8, 16, 16)
    assert jnp.allclose(out1, ref1, rtol=1e-4, atol=1e-4), (
        float(jnp.max(jnp.abs(out1 - ref1))))

    # Case 2: inplanes == planes, stride=1 -> plain identity shortcut (shared x block).
    x2 = jax.random.normal(k_x2, (2, 8, 16, 16), jnp.float32)
    p2 = make_params(k_p2, inplanes=8, planes=8, stride=1)
    out2 = jax.block_until_ready(basic_block_forward(x2, p2, stride=1))
    ref2 = basic_block_reference(x2, p2, stride=1)
    assert out2.shape == ref2.shape == (2, 8, 16, 16)
    assert jnp.allclose(out2, ref2, rtol=1e-4, atol=1e-4), (
        float(jnp.max(jnp.abs(out2 - ref2))))

    # Case 3: stride=2 + downsample (wrapper im2col for conv1, in-kernel conv2).
    x3 = jax.random.normal(k_x3, (2, 4, 32, 32), jnp.float32)
    p3 = make_params(k_p3, inplanes=4, planes=8, stride=2)
    out3 = jax.block_until_ready(basic_block_forward(x3, p3, stride=2))
    ref3 = basic_block_reference(x3, p3, stride=2)
    assert out3.shape == ref3.shape == (2, 8, 16, 16)
    assert jnp.allclose(out3, ref3, rtol=1e-4, atol=1e-4), (
        float(jnp.max(jnp.abs(out3 - ref3))))

    # Case 4: forced per-tap accumulation (no concat buffer) in f32 — the large-Cout
    # path recommended for v7x, validated here at small shapes.
    out4 = jax.block_until_ready(
        basic_block_forward(x1, p1, stride=1, conv_mode="per_tap"))
    assert jnp.allclose(out4, ref1, rtol=1e-4, atol=1e-4), (
        float(jnp.max(jnp.abs(out4 - ref1))))

    # Case 5: bf16 MXU fast path (bf16 operands shipped end-to-end, f32 accumulate);
    # looser tolerance vs the f32 reference due to the bf16-input matmul regime.
    out5 = jax.block_until_ready(basic_block_forward(x1, p1, stride=1, mxu="bf16"))
    assert jnp.allclose(out5, ref1, rtol=5e-2, atol=5e-2), (
        float(jnp.max(jnp.abs(out5 - ref1))))

    print("KERNEL_OK")
</pallas_src>

<mosaic_0001>
module attributes {stable_mosaic.version = 11 : i64} {
  func.func @kernel(%arg0: i32, %arg1: memref<1x4x512xf32, #tpu.memory_space<vmem>>, %arg2: memref<9x8x4xf32, #tpu.memory_space<vmem>>, %arg3: memref<8x1xf32, #tpu.memory_space<vmem>>, %arg4: memref<8x72xf32, #tpu.memory_space<vmem>>, %arg5: memref<8x1xf32, #tpu.memory_space<vmem>>, %arg6: memref<9x512xf32, #tpu.memory_space<vmem>>, %arg7: memref<8x4xf32, #tpu.memory_space<vmem>>, %arg8: memref<8x1xf32, #tpu.memory_space<vmem>>, %arg9: memref<1x8x512xf32, #tpu.memory_space<vmem>>) attributes {dimension_semantics = [#tpu.dimension_semantics<parallel>], iteration_bounds = array<i64: 1>, scalar_prefetch = 0 : i64, scratch_operands = 0 : i64, tpu.core_type = #tpu.core_type<tc>, window_params = [{transform_indices = @transform_0, window_bounds = array<i64: 1, 4, 512>}, {pipeline_mode = #tpu.pipeline_mode<synchronous>, transform_indices = @transform_1, window_bounds = array<i64: 9, 8, 4>}, {pipeline_mode = #tpu.pipeline_mode<synchronous>, transform_indices = @transform_2, window_bounds = array<i64: 8, 1>}, {pipeline_mode = #tpu.pipeline_mode<synchronous>, transform_indices = @transform_3, window_bounds = array<i64: 8, 72>}, {pipeline_mode = #tpu.pipeline_mode<synchronous>, transform_indices = @transform_4, window_bounds = array<i64: 8, 1>}, {pipeline_mode = #tpu.pipeline_mode<synchronous>, transform_indices = @transform_5, window_bounds = array<i64: 9, 512>}, {pipeline_mode = #tpu.pipeline_mode<synchronous>, transform_indices = @transform_6, window_bounds = array<i64: 8, 4>}, {pipeline_mode = #tpu.pipeline_mode<synchronous>, transform_indices = @transform_7, window_bounds = array<i64: 8, 1>}, {transform_indices = @transform_8, window_bounds = array<i64: 1, 8, 512>}]} {
    %c0 = arith.constant 0 : index
    %c0_0 = arith.constant 0 : index
    %0 = vector.load %arg6[%c0, %c0_0] : memref<9x512xf32, #tpu.memory_space<vmem>>, vector<9x512xf32>
    %c0_1 = arith.constant 0 : index
    %c0_2 = arith.constant 0 : index
    %c0_3 = arith.constant 0 : index
    %1 = vector.load %arg1[%c0_1, %c0_2, %c0_3] : memref<1x4x512xf32, #tpu.memory_space<vmem>>, vector<1x4x512xf32>
    %2 = vector.shape_cast %1 : vector<1x4x512xf32> to vector<4x512xf32>
    %c17_i32 = arith.constant 17 : i32
    %3 = tpu.dynamic_rotate %2 by %c17_i32 dim 1 : vector<4x512xf32>, i32 -> vector<4x512xf32>
    %4 = vector.extract_strided_slice %0 {offsets = [0, 0], sizes = [1, 512], strides = [1, 1]} : vector<9x512xf32> to vector<1x512xf32>
    %5 = vector.broadcast %4 : vector<1x512xf32> to vector<4x512xf32>
    %6 = arith.mulf %3, %5 : vector<4x512xf32>
    %c0_4 = arith.constant 0 : index
    %c0_5 = arith.constant 0 : index
    %c0_6 = arith.constant 0 : index
    %7 = vector.load %arg2[%c0_4, %c0_5, %c0_6] : memref<9x8x4xf32, #tpu.memory_space<vmem>>, vector<1x8x4xf32>
    %8 = vector.shape_cast %7 : vector<1x8x4xf32> to vector<8x4xf32>
    %cst = arith.constant dense<0.000000e+00> : vector<8x512xf32>
    %9 = tpu.matmul %8, %6, %cst {dimension_numbers = #tpu.dot_dimension_numbers<[1], [0], [0], [1], [0, 0, 1, 1], [], []>, precision = #tpu.contract_precision<fp32>} : vector<8x4xf32>, vector<4x512xf32>, vector<8x512xf32> -> vector<8x512xf32>
    %c16_i32 = arith.constant 16 : i32
    %10 = tpu.dynamic_rotate %2 by %c16_i32 dim 1 : vector<4x512xf32>, i32 -> vector<4x512xf32>
    %11 = vector.extract_strided_slice %0 {offsets = [1, 0], sizes = [1, 512], strides = [1, 1]} : vector<9x512xf32> to vector<1x512xf32>
    %12 = vector.broadcast %11 : vector<1x512xf32> to vector<4x512xf32>
    %13 = arith.mulf %10, %12 : vector<4x512xf32>
    %c1 = arith.constant 1 : index
    %c0_7 = arith.constant 0 : index
    %c0_8 = arith.constant 0 : index
    %14 = vector.load %arg2[%c1, %c0_7, %c0_8] : memref<9x8x4xf32, #tpu.memory_space<vmem>>, vector<1x8x4xf32>
    %15 = vector.shape_cast %14 : vector<1x8x4xf32> to vector<8x4xf32>
    %cst_9 = arith.constant dense<0.000000e+00> : vector<8x512xf32>
    %16 = tpu.matmul %15, %13, %cst_9 {dimension_numbers = #tpu.dot_dimension_numbers<[1], [0], [0], [1], [0, 0, 1, 1], [], []>, precision = #tpu.contract_precision<fp32>} : vector<8x4xf32>, vector<4x512xf32>, vector<8x512xf32> -> vector<8x512xf32>
    %17 = arith.addf %9, %16 : vector<8x512xf32>
    %c15_i32 = arith.constant 15 : i32
    %18 = tpu.dynamic_rotate %2 by %c15_i32 dim 1 : vector<4x512xf32>, i32 -> vector<4x512xf32>
    %19 = vector.extract_strided_slice %0 {offsets = [2, 0], sizes = [1, 512], strides = [1, 1]} : vector<9x512xf32> to vector<1x512xf32>
    %20 = vector.broadcast %19 : vector<1x512xf32> to vector<4x512xf32>
    %21 = arith.mulf %18, %20 : vector<4x512xf32>
    %c2 = arith.constant 2 : index
    %c0_10 = arith.constant 0 : index
    %c0_11 = arith.constant 0 : index
    %22 = vector.load %arg2[%c2, %c0_10, %c0_11] : memref<9x8x4xf32, #tpu.memory_space<vmem>>, vector<1x8x4xf32>
    %23 = vector.shape_cast %22 : vector<1x8x4xf32> to vector<8x4xf32>
    %cst_12 = arith.constant dense<0.000000e+00> : vector<8x512xf32>
    %24 = tpu.matmul %23, %21, %cst_12 {dimension_numbers = #tpu.dot_dimension_numbers<[1], [0], [0], [1], [0, 0, 1, 1], [], []>, precision = #tpu.contract_precision<fp32>} : vector<8x4xf32>, vector<4x512xf32>, vector<8x512xf32> -> vector<8x512xf32>
    %25 = arith.addf %17, %24 : vector<8x512xf32>
    %c1_i32 = arith.constant 1 : i32
    %26 = tpu.dynamic_rotate %2 by %c1_i32 dim 1 : vector<4x512xf32>, i32 -> vector<4x512xf32>
    %27 = vector.extract_strided_slice %0 {offsets = [3, 0], sizes = [1, 512], strides = [1, 1]} : vector<9x512xf32> to vector<1x512xf32>
    %28 = vector.broadcast %27 : vector<1x512xf32> to vector<4x512xf32>
    %29 = arith.mulf %26, %28 : vector<4x512xf32>
    %c3 = arith.constant 3 : index
    %c0_13 = arith.constant 0 : index
    %c0_14 = arith.constant 0 : index
    %30 = vector.load %arg2[%c3, %c0_13, %c0_14] : memref<9x8x4xf32, #tpu.memory_space<vmem>>, vector<1x8x4xf32>
    %31 = vector.shape_cast %30 : vector<1x8x4xf32> to vector<8x4xf32>
    %cst_15 = arith.constant dense<0.000000e+00> : vector<8x512xf32>
    %32 = tpu.matmul %31, %29, %cst_15 {dimension_numbers = #tpu.dot_dimension_numbers<[1], [0], [0], [1], [0, 0, 1, 1], [], []>, precision = #tpu.contract_precision<fp32>} : vector<8x4xf32>, vector<4x512xf32>, vector<8x512xf32> -> vector<8x512xf32>
    %33 = arith.addf %25, %32 : vector<8x512xf32>
    %34 = vector.extract_strided_slice %0 {offsets = [4, 0], sizes = [1, 512], strides = [1, 1]} : vector<9x512xf32> to vector<1x512xf32>
    %35 = vector.broadcast %34 : vector<1x512xf32> to vector<4x512xf32>
    %36 = arith.mulf %2, %35 : vector<4x512xf32>
    %c4 = arith.constant 4 : index
    %c0_16 = arith.constant 0 : index
    %c0_17 = arith.constant 0 : index
    %37 = vector.load %arg2[%c4, %c0_16, %c0_17] : memref<9x8x4xf32, #tpu.memory_space<vmem>>, vector<1x8x4xf32>
    %38 = vector.shape_cast %37 : vector<1x8x4xf32> to vector<8x4xf32>
    %cst_18 = arith.constant dense<0.000000e+00> : vector<8x512xf32>
    %39 = tpu.matmul %38, %36, %cst_18 {dimension_numbers = #tpu.dot_dimension_numbers<[1], [0], [0], [1], [0, 0, 1, 1], [], []>, precision = #tpu.contract_precision<fp32>} : vector<8x4xf32>, vector<4x512xf32>, vector<8x512xf32> -> vector<8x512xf32>
    %40 = arith.addf %33, %39 : vector<8x512xf32>
    %c511_i32 = arith.constant 511 : i32
    %41 = tpu.dynamic_rotate %2 by %c511_i32 dim 1 : vector<4x512xf32>, i32 -> vector<4x512xf32>
    %42 = vector.extract_strided_slice %0 {offsets = [5, 0], sizes = [1, 512], strides = [1, 1]} : vector<9x512xf32> to vector<1x512xf32>
    %43 = vector.broadcast %42 : vector<1x512xf32> to vector<4x512xf32>
    %44 = arith.mulf %41, %43 : vector<4x512xf32>
    %c5 = arith.constant 5 : index
    %c0_19 = arith.constant 0 : index
    %c0_20 = arith.constant 0 : index
    %45 = vector.load %arg2[%c5, %c0_19, %c0_20] : memref<9x8x4xf32, #tpu.memory_space<vmem>>, vector<1x8x4xf32>
    %46 = vector.shape_cast %45 : vector<1x8x4xf32> to vector<8x4xf32>
    %cst_21 = arith.constant dense<0.000000e+00> : vector<8x512xf32>
    %47 = tpu.matmul %46, %44, %cst_21 {dimension_numbers = #tpu.dot_dimension_numbers<[1], [0], [0], [1], [0, 0, 1, 1], [], []>, precision = #tpu.contract_precision<fp32>} : vector<8x4xf32>, vector<4x512xf32>, vector<8x512xf32> -> vector<8x512xf32>
    %48 = arith.addf %40, %47 : vector<8x512xf32>
    %c497_i32 = arith.constant 497 : i32
    %49 = tpu.dynamic_rotate %2 by %c497_i32 dim 1 : vector<4x512xf32>, i32 -> vector<4x512xf32>
    %50 = vector.extract_strided_slice %0 {offsets = [6, 0], sizes = [1, 512], strides = [1, 1]} : vector<9x512xf32> to vector<1x512xf32>
    %51 = vector.broadcast %50 : vector<1x512xf32> to vector<4x512xf32>
    %52 = arith.mulf %49, %51 : vector<4x512xf32>
    %c6 = arith.constant 6 : index
    %c0_22 = arith.constant 0 : index
    %c0_23 = arith.constant 0 : index
    %53 = vector.load %arg2[%c6, %c0_22, %c0_23] : memref<9x8x4xf32, #tpu.memory_space<vmem>>, vector<1x8x4xf32>
    %54 = vector.shape_cast %53 : vector<1x8x4xf32> to vector<8x4xf32>
    %cst_24 = arith.constant dense<0.000000e+00> : vector<8x512xf32>
    %55 = tpu.matmul %54, %52, %cst_24 {dimension_numbers = #tpu.dot_dimension_numbers<[1], [0], [0], [1], [0, 0, 1, 1], [], []>, precision = #tpu.contract_precision<fp32>} : vector<8x4xf32>, vector<4x512xf32>, vector<8x512xf32> -> vector<8x512xf32>
    %56 = arith.addf %48, %55 : vector<8x512xf32>
    %c496_i32 = arith.constant 496 : i32
    %57 = tpu.dynamic_rotate %2 by %c496_i32 dim 1 : vector<4x512xf32>, i32 -> vector<4x512xf32>
    %58 = vector.extract_strided_slice %0 {offsets = [7, 0], sizes = [1, 512], strides = [1, 1]} : vector<9x512xf32> to vector<1x512xf32>
    %59 = vector.broadcast %58 : vector<1x512xf32> to vector<4x512xf32>
    %60 = arith.mulf %57, %59 : vector<4x512xf32>
    %c7 = arith.constant 7 : index
    %c0_25 = arith.constant 0 : index
    %c0_26 = arith.constant 0 : index
    %61 = vector.load %arg2[%c7, %c0_25, %c0_26] : memref<9x8x4xf32, #tpu.memory_space<vmem>>, vector<1x8x4xf32>
    %62 = vector.shape_cast %61 : vector<1x8x4xf32> to vector<8x4xf32>
    %cst_27 = arith.constant dense<0.000000e+00> : vector<8x512xf32>
    %63 = tpu.matmul %62, %60, %cst_27 {dimension_numbers = #tpu.dot_dimension_numbers<[1], [0], [0], [1], [0, 0, 1, 1], [], []>, precision = #tpu.contract_precision<fp32>} : vector<8x4xf32>, vector<4x512xf32>, vector<8x512xf32> -> vector<8x512xf32>
    %64 = arith.addf %56, %63 : vector<8x512xf32>
    %c495_i32 = arith.constant 495 : i32
    %65 = tpu.dynamic_rotate %2 by %c495_i32 dim 1 : vector<4x512xf32>, i32 -> vector<4x512xf32>
    %66 = vector.extract_strided_slice %0 {offsets = [8, 0], sizes = [1, 512], strides = [1, 1]} : vector<9x512xf32> to vector<1x512xf32>
    %67 = vector.broadcast %66 : vector<1x512xf32> to vector<4x512xf32>
    %68 = arith.mulf %65, %67 : vector<4x512xf32>
    %c8 = arith.constant 8 : index
    %c0_28 = arith.constant 0 : index
    %c0_29 = arith.constant 0 : index
    %69 = vector.load %arg2[%c8, %c0_28, %c0_29] : memref<9x8x4xf32, #tpu.memory_space<vmem>>, vector<1x8x4xf32>
    %70 = vector.shape_cast %69 : vector<1x8x4xf32> to vector<8x4xf32>
    %cst_30 = arith.constant dense<0.000000e+00> : vector<8x512xf32>
    %71 = tpu.matmul %70, %68, %cst_30 {dimension_numbers = #tpu.dot_dimension_numbers<[1], [0], [0], [1], [0, 0, 1, 1], [], []>, precision = #tpu.contract_precision<fp32>} : vector<8x4xf32>, vector<4x512xf32>, vector<8x512xf32> -> vector<8x512xf32>
    %72 = arith.addf %64, %71 : vector<8x512xf32>
    %c0_31 = arith.constant 0 : index
    %c0_32 = arith.constant 0 : index
    %73 = vector.load %arg3[%c0_31, %c0_32] : memref<8x1xf32, #tpu.memory_space<vmem>>, vector<8x1xf32>
    %74 = vector.broadcast %73 : vector<8x1xf32> to vector<8x512xf32>
    %75 = arith.addf %72, %74 : vector<8x512xf32>
    %cst_33 = arith.constant 0.000000e+00 : f32
    %76 = vector.broadcast %cst_33 : f32 to vector<8x512xf32>
    %77 = arith.maximumf %75, %76 : vector<8x512xf32>
    %c17_i32_34 = arith.constant 17 : i32
    %78 = tpu.dynamic_rotate %77 by %c17_i32_34 dim 1 : vector<8x512xf32>, i32 -> vector<8x512xf32>
    %79 = vector.extract_strided_slice %0 {offsets = [0, 0], sizes = [1, 512], strides = [1, 1]} : vector<9x512xf32> to vector<1x512xf32>
    %80 = vector.broadcast %79 : vector<1x512xf32> to vector<8x512xf32>
    %81 = arith.mulf %78, %80 : vector<8x512xf32>
    %c16_i32_35 = arith.constant 16 : i32
    %82 = tpu.dynamic_rotate %77 by %c16_i32_35 dim 1 : vector<8x512xf32>, i32 -> vector<8x512xf32>
    %83 = vector.extract_strided_slice %0 {offsets = [1, 0], sizes = [1, 512], strides = [1, 1]} : vector<9x512xf32> to vector<1x512xf32>
    %84 = vector.broadcast %83 : vector<1x512xf32> to vector<8x512xf32>
    %85 = arith.mulf %82, %84 : vector<8x512xf32>
    %c15_i32_36 = arith.constant 15 : i32
    %86 = tpu.dynamic_rotate %77 by %c15_i32_36 dim 1 : vector<8x512xf32>, i32 -> vector<8x512xf32>
    %87 = vector.extract_strided_slice %0 {offsets = [2, 0], sizes = [1, 512], strides = [1, 1]} : vector<9x512xf32> to vector<1x512xf32>
    %88 = vector.broadcast %87 : vector<1x512xf32> to vector<8x512xf32>
    %89 = arith.mulf %86, %88 : vector<8x512xf32>
    %c1_i32_37 = arith.constant 1 : i32
    %90 = tpu.dynamic_rotate %77 by %c1_i32_37 dim 1 : vector<8x512xf32>, i32 -> vector<8x512xf32>
    %91 = vector.extract_strided_slice %0 {offsets = [3, 0], sizes = [1, 512], strides = [1, 1]} : vector<9x512xf32> to vector<1x512xf32>
    %92 = vector.broadcast %91 : vector<1x512xf32> to vector<8x512xf32>
    %93 = arith.mulf %90, %92 : vector<8x512xf32>
    %94 = vector.extract_strided_slice %0 {offsets = [4, 0], sizes = [1, 512], strides = [1, 1]} : vector<9x512xf32> to vector<1x512xf32>
    %95 = vector.broadcast %94 : vector<1x512xf32> to vector<8x512xf32>
    %96 = arith.mulf %77, %95 : vector<8x512xf32>
    %c511_i32_38 = arith.constant 511 : i32
    %97 = tpu.dynamic_rotate %77 by %c511_i32_38 dim 1 : vector<8x512xf32>, i32 -> vector<8x512xf32>
    %98 = vector.extract_strided_slice %0 {offsets = [5, 0], sizes = [1, 512], strides = [1, 1]} : vector<9x512xf32> to vector<1x512xf32>
    %99 = vector.broadcast %98 : vector<1x512xf32> to vector<8x512xf32>
    %100 = arith.mulf %97, %99 : vector<8x512xf32>
    %c497_i32_39 = arith.constant 497 : i32
    %101 = tpu.dynamic_rotate %77 by %c497_i32_39 dim 1 : vector<8x512xf32>, i32 -> vector<8x512xf32>
    %102 = vector.extract_strided_slice %0 {offsets = [6, 0], sizes = [1, 512], strides = [1, 1]} : vector<9x512xf32> to vector<1x512xf32>
    %103 = vector.broadcast %102 : vector<1x512xf32> to vector<8x512xf32>
    %104 = arith.mulf %101, %103 : vector<8x512xf32>
    %c496_i32_40 = arith.constant 496 : i32
    %105 = tpu.dynamic_rotate %77 by %c496_i32_40 dim 1 : vector<8x512xf32>, i32 -> vector<8x512xf32>
    %106 = vector.extract_strided_slice %0 {offsets = [7, 0], sizes = [1, 512], strides = [1, 1]} : vector<9x512xf32> to vector<1x512xf32>
    %107 = vector.broadcast %106 : vector<1x512xf32> to vector<8x512xf32>
    %108 = arith.mulf %105, %107 : vector<8x512xf32>
    %c495_i32_41 = arith.constant 495 : i32
    %109 = tpu.dynamic_rotate %77 by %c495_i32_41 dim 1 : vector<8x512xf32>, i32 -> vector<8x512xf32>
    %110 = vector.extract_strided_slice %0 {offsets = [8, 0], sizes = [1, 512], strides = [1, 1]} : vector<9x512xf32> to vector<1x512xf32>
    %111 = vector.broadcast %110 : vector<1x512xf32> to vector<8x512xf32>
    %112 = arith.mulf %109, %111 : vector<8x512xf32>
    %c0_42 = arith.constant 0 : index
    %c0_43 = arith.constant 0 : index
    %113 = vector.load %arg4[%c0_42, %c0_43] : memref<8x72xf32, #tpu.memory_space<vmem>>, vector<8x72xf32>
    %114 = tpu.concatenate %81, %85, %89, %93, %96, %100, %104, %108, %112 in 0 : vector<8x512xf32>, vector<8x512xf32>, vector<8x512xf32>, vector<8x512xf32>, vector<8x512xf32>, vector<8x512xf32>, vector<8x512xf32>, vector<8x512xf32>, vector<8x512xf32> -> vector<72x512xf32>
    %cst_44 = arith.constant dense<0.000000e+00> : vector<8x512xf32>
    %115 = tpu.matmul %113, %114, %cst_44 {dimension_numbers = #tpu.dot_dimension_numbers<[1], [0], [0], [1], [0, 0, 1, 1], [], []>, precision = #tpu.contract_precision<fp32>} : vector<8x72xf32>, vector<72x512xf32>, vector<8x512xf32> -> vector<8x512xf32>
    %c0_45 = arith.constant 0 : index
    %c0_46 = arith.constant 0 : index
    %116 = vector.load %arg5[%c0_45, %c0_46] : memref<8x1xf32, #tpu.memory_space<vmem>>, vector<8x1xf32>
    %117 = vector.broadcast %116 : vector<8x1xf32> to vector<8x512xf32>
    %118 = arith.addf %115, %117 : vector<8x512xf32>
    %c0_47 = arith.constant 0 : index
    %c0_48 = arith.constant 0 : index
    %119 = vector.load %arg7[%c0_47, %c0_48] : memref<8x4xf32, #tpu.memory_space<vmem>>, vector<8x4xf32>
    %c0_49 = arith.constant 0 : index
    %c0_50 = arith.constant 0 : index
    %c0_51 = arith.constant 0 : index
    %120 = vector.load %arg1[%c0_49, %c0_50, %c0_51] : memref<1x4x512xf32, #tpu.memory_space<vmem>>, vector<1x4x512xf32>
    %121 = vector.shape_cast %120 : vector<1x4x512xf32> to vector<4x512xf32>
    %cst_52 = arith.constant dense<0.000000e+00> : vector<8x512xf32>
    %122 = tpu.matmul %119, %121, %cst_52 {dimension_numbers = #tpu.dot_dimension_numbers<[1], [0], [0], [1], [0, 0, 1, 1], [], []>, precision = #tpu.contract_precision<fp32>} : vector<8x4xf32>, vector<4x512xf32>, vector<8x512xf32> -> vector<8x512xf32>
    %c0_53 = arith.constant 0 : index
    %c0_54 = arith.constant 0 : index
    %123 = vector.load %arg8[%c0_53, %c0_54] : memref<8x1xf32, #tpu.memory_space<vmem>>, vector<8x1xf32>
    %124 = vector.broadcast %123 : vector<8x1xf32> to vector<8x512xf32>
    %125 = arith.addf %122, %124 : vector<8x512xf32>
    %126 = arith.addf %118, %125 : vector<8x512xf32>
    %cst_55 = arith.constant 0.000000e+00 : f32
    %127 = vector.broadcast %cst_55 : f32 to vector<8x512xf32>
    %128 = arith.maximumf %126, %127 : vector<8x512xf32>
    %c0_56 = arith.constant 0 : index
    %c0_57 = arith.constant 0 : index
    %c0_58 = arith.constant 0 : index
    %129 = vector.load %arg9[%c0_56, %c0_57, %c0_58] : memref<1x8x512xf32, #tpu.memory_space<vmem>>, vector<1x8x512xf32>
    %130 = vector.shape_cast %129 : vector<1x8x512xf32> to vector<8x512xf32>
    %131 = vector.shape_cast %128 : vector<8x512xf32> to vector<1x8x512xf32>
    tpu.vector_store %arg9[%c0_56, %c0_57, %c0_58], %131 {strides = array<i32>} : memref<1x8x512xf32, #tpu.memory_space<vmem>>, vector<1x8x512xf32>,
    return
  }
  func.func @transform_0(%arg0: i32) -> (i32, i32, i32) {
    %c0_i32 = arith.constant 0 : i32
    %c0_i32_0 = arith.constant 0 : i32
    %c0_i32_1 = arith.constant 0 : i32
    return %arg0, %c0_i32, %c0_i32_0 : i32, i32, i32
  }
  func.func @transform_1(%arg0: i32) -> (i32, i32, i32) {
    %c0_i32 = arith.constant 0 : i32
    %c0_i32_0 = arith.constant 0 : i32
    %c0_i32_1 = arith.constant 0 : i32
    %c0_i32_2 = arith.constant 0 : i32
    return %c0_i32, %c0_i32_0, %c0_i32_1 : i32, i32, i32
  }
  func.func @transform_2(%arg0: i32) -> (i32, i32) {
    %c0_i32 = arith.constant 0 : i32
    %c0_i32_0 = arith.constant 0 : i32
    %c0_i32_1 = arith.constant 0 : i32
    return %c0_i32, %c0_i32_0 : i32, i32
  }
  func.func @transform_3(%arg0: i32) -> (i32, i32) {
    %c0_i32 = arith.constant 0 : i32
    %c0_i32_0 = arith.constant 0 : i32
    %c0_i32_1 = arith.constant 0 : i32
    return %c0_i32, %c0_i32_0 : i32, i32
  }
  func.func @transform_4(%arg0: i32) -> (i32, i32) {
    %c0_i32 = arith.constant 0 : i32
    %c0_i32_0 = arith.constant 0 : i32
    %c0_i32_1 = arith.constant 0 : i32
    return %c0_i32, %c0_i32_0 : i32, i32
  }
  func.func @transform_5(%arg0: i32) -> (i32, i32) {
    %c0_i32 = arith.constant 0 : i32
    %c0_i32_0 = arith.constant 0 : i32
    %c0_i32_1 = arith.constant 0 : i32
    return %c0_i32, %c0_i32_0 : i32, i32
  }
  func.func @transform_6(%arg0: i32) -> (i32, i32) {
    %c0_i32 = arith.constant 0 : i32
    %c0_i32_0 = arith.constant 0 : i32
    %c0_i32_1 = arith.constant 0 : i32
    return %c0_i32, %c0_i32_0 : i32, i32
  }
  func.func @transform_7(%arg0: i32) -> (i32, i32) {
    %c0_i32 = arith.constant 0 : i32
    %c0_i32_0 = arith.constant 0 : i32
    %c0_i32_1 = arith.constant 0 : i32
    return %c0_i32, %c0_i32_0 : i32, i32
  }
  func.func @transform_8(%arg0: i32) -> (i32, i32, i32) {
    %c0_i32 = arith.constant 0 : i32
    %c0_i32_0 = arith.constant 0 : i32
    %c0_i32_1 = arith.constant 0 : i32
    return %arg0, %c0_i32, %c0_i32_0 : i32, i32, i32
  }
}

</mosaic_0001>

<bundles_post_ra>
// kernel: tpu_custom_call.1
= control target key start
LH: loop header
LB: loop body
LE: loop exit
PB: predicated region body
PF: predicated region fallthrough
CT: control target
= control target key end

     0   :  { %s11426_s9 = smov 16   ;;  %v13578_v4 = vmov 0.0   ;;  %s13568_s0 = inlined_call_operand.vmem [shape: f32[1,4,512], index: 0, kind: input, shape index: {}]   ;;  %s13569_s1 = inlined_call_operand.vmem [shape: f32[9,8,4], index: 1, kind: input, shape index: {}]   ;;  %s13570_s2 = inlined_call_operand.vmem [shape: f32[8,1], index: 2, kind: input, shape index: {}]   ;;  %s13571_s3 = inlined_call_operand.vmem [shape: f32[8,72], index: 3, kind: input, shape index: {}]   ;;  %s13572_s4 = inlined_call_operand.vmem [shape: f32[8,1], index: 4, kind: input, shape index: {}]   ;;  %s13573_s5 = inlined_call_operand.vmem [shape: f32[9,512], index: 5, kind: input, shape index: {}]   ;;  %s13574_s6 = inlined_call_operand.vmem [shape: f32[8,4], index: 6, kind: input, shape index: {}]   ;;  %s13575_s7 = inlined_call_operand.vmem [shape: f32[8,1], index: 7, kind: input, shape index: {}]   ;;  %s13576_s8 = inlined_call_operand.hbm [shape: f32[1,8,512], index: 8, kind: output, shape index: {}]  }
   0x1   :  { %v11485_v0 = vld [vmem:[%s13568_s0] sm:$0xff]  ;;  %v11490_v1 = vld [vmem:[%s13568_s0 + $0x8] sm:$0xff]  ;;  %200 = vmatprep.mubr.f32.mxu0 %v13578_v4  ;;  %286 = vmatprep.mubr.f32.mxu1 %v13578_v4 }
   0x2   :  { %82 = vrot.lane.b32.xlu0 %v11485_v0, %s11426_s9  ;;  %v11496_v2 = vcombine.high %v11490_v1, %v11490_v1  ;;  %v11500_v3 = vcombine.high %v11485_v0, %v11485_v0 }
   0x4   :  { %13637 = vst [vmem:[#allocation5_spill] sm:$0xff] %v11496_v2  ;;  %13638 = vst [vmem:[#allocation6_spill] sm:$0xff] %v11500_v3  ;;  %88 = vrot.lane.b32.xlu1 %v11496_v2, %s11426_s9 }
   0x5   :  { %13 = vsyncpa [#allocation3], 0  ;;  %s11428_s10 = smov 17   ;;  %s11429_s11 = smov 15   ;;  %v11367_v5 = vld [vmem:[%s13569_s1 + $0x8] sm:$0xff]  ;;  %vm117_vm0 = vcmask 31744   ;;  %v54_v6 = vlaneseq }
   0x6   :  { %84 = vrot.lane.b32.xlu0 %v11500_v3, %s11426_s9  ;;  %s11430_s12 = smov 1   ;;  %s11431_s13 = smov 127   ;;  %v119_v7 = vsel %vm117_vm0, %v11367_v5, 0  ;;  %v11580_v12 = vld [vmem:[%s13573_s5] sm:$0xff]  ;;  %v11588_v14 = vld [vmem:[%s13573_s5 + $0x8] sm:$0xff]  ;;  %v11597_v17 = vld [vmem:[%s13573_s5 + $0x10] sm:$0xff] }
   0x7   :  { %s11432_s14 = smov 113   ;;  %s11433_s15 = smov 112   ;;  %v11570_v8 = vshrl.u32 %v54_v6, 7  ;;  %v11572_v9 = vand.u32 4294901760, %v119_v7  ;;  %v11574_v10 = vand.u32 127, %v54_v6  ;;  %v11602_v18 = vld [vmem:[%s13573_s5 + $0x18] sm:$0xff] }
   0x8   :  { %86 = vrot.lane.b32.xlu1 %v11490_v1, %s11426_s9  ;;  %s11434_s16 = smov 111   ;;  %vm121_vm2 = vcmask 1043456   ;;  %v81_v53 = vld [vmem:[%s13569_s1] sm:$0xff]  ;;  %vm9043_vm10 = vcmask 588800  }
   0x9   :  { %v97_v11 = vsub.s32 1, %v11570_v8  ;;  %v11583_v13 = vsub.f32 %v119_v7, %v11572_v9  ;;  %vm90_vm1 = vcmp.lt.s32.totalorder %v11574_v10, 16  ;;  %v11624_v29 = vsub.s32 0, %v11570_v8 }
   0xa   :  { %46 = vrot.lane.b32.xlu0 %v11485_v0, %s11428_s10  ;;  %vm56_vm3 = vcmp.lt.s32.totalorder %v11574_v10, 17  ;;  %v1065_v61 = vsel %vm117_vm0, %v81_v53, 0  ;;  %vm2017_vm4 = vcmp.lt.s32.totalorder %v11574_v10, 15  ;;  %vm3001_vm5 = vcmp.lt.s32.totalorder %v11574_v10, 1 }
   0xb   :  { %v11592_v16 = vrot.slane %v11580_v12, %v97_v11  ;;  %v11605_v19 = vand.u32 4294901760, %v11583_v13  ;;  %v11608_v21 = vrot.slane %v11588_v14, %v97_v11  ;;  %v11614_v25 = vrot.slane %v11597_v17, %v97_v11 }
   0xc   :  { %48 = vrot.lane.b32.xlu1 %v11500_v3, %s11428_s10  ;;  %v11617_v26 = vrot.slane %v11602_v18, %v97_v11  ;;  %v11643_v43 = vrot.slane %v11588_v14, %v11624_v29  ;;  %v11661_v56 = vrot.slane %v11580_v12, %v11624_v29  ;;  %vm4962_vm6 = vcmp.lt.s32.totalorder %v11574_v10, 127 }
   0xd   :  { %13639 = vst [vmem:[#allocation7_spill] sm:$0xff] %v11592_v16  ;;  %13640 = vst [vmem:[#allocation8_spill] sm:$0xff] %v11608_v21  ;;  %v204_v28 = vsub.f32 %v11583_v13, %v11605_v19  ;;  %vm5946_vm7 = vcmp.lt.s32.totalorder %v11574_v10, 113  ;;  %vm6930_vm8 = vcmp.lt.s32.totalorder %v11574_v10, 112  ;;  %vm7914_vm9 = vcmp.lt.s32.totalorder %v11574_v10, 111 }
   0xe   :  { %52 = vrot.lane.b32.xlu0 %v11496_v2, %s11428_s10  ;;  %13641 = vst [vmem:[#allocation9_spill] sm:$0xff] %v11614_v25  ;;  %13642 = vst [vmem:[#allocation10_spill] sm:$0xff] %v11617_v26 }
   0xf   :  { %v11639_v42 = vand.u32 4294901760, %v204_v28  ;;  %13643 = vst [vmem:[#allocation11_spill] sm:$0xff] %v11643_v43  ;;  %13644 = vst [vmem:[#allocation12_spill] sm:$0xff] %v11661_v56  ;;  %v11683_v28 = vrot.slane %v11602_v18, %v11624_v29 }
  0x10   :  { %50 = vrot.lane.b32.xlu1 %v11490_v1, %s11428_s10 }
  0x11   :  { %13645 = vst [vmem:[#allocation13_spill] sm:$0xff] %v11683_v28 }
  0x12   :  { %2009 = vrot.lane.b32.xlu0 %v11485_v0, %s11429_s11 }
  0x14   :  { %2011 = vrot.lane.b32.xlu1 %v11500_v3, %s11429_s11 }
  0x16   :  { %2015 = vrot.lane.b32.xlu0 %v11496_v2, %s11429_s11 }
  0x18   :  { %2013 = vrot.lane.b32.xlu1 %v11490_v1, %s11429_s11 }
  0x1a   :  { %2993 = vrot.lane.b32.xlu0 %v11485_v0, %s11430_s12 }
  0x1c   :  { %2995 = vrot.lane.b32.xlu1 %v11500_v3, %s11430_s12 }
  0x1e   :  { %2999 = vrot.lane.b32.xlu0 %v11496_v2, %s11430_s12 }
  0x20   :  { %2997 = vrot.lane.b32.xlu1 %v11490_v1, %s11430_s12 }
  0x22   :  { %4956 = vrot.lane.b32.xlu0 %v11500_v3, %s11431_s13 }
  0x24   :  { %4958 = vrot.lane.b32.xlu1 %v11490_v1, %s11431_s13 }
  0x26   :  { %4954 = vrot.lane.b32.xlu0 %v11485_v0, %s11431_s13 }
  0x28   :  { %4960 = vrot.lane.b32.xlu1 %v11496_v2, %s11431_s13 }
  0x2a   :  { %5940 = vrot.lane.b32.xlu0 %v11500_v3, %s11432_s14 }
  0x2c   :  { %5942 = vrot.lane.b32.xlu1 %v11490_v1, %s11432_s14 }
  0x2e   :  { %5938 = vrot.lane.b32.xlu0 %v11485_v0, %s11432_s14 }
  0x30   :  { %5944 = vrot.lane.b32.xlu1 %v11496_v2, %s11432_s14 }
  0x32   :  { %6924 = vrot.lane.b32.xlu0 %v11500_v3, %s11433_s15 }
  0x34   :  { %6926 = vrot.lane.b32.xlu1 %v11490_v1, %s11433_s15 }
  0x36   :  { %6922 = vrot.lane.b32.xlu0 %v11485_v0, %s11433_s15 }
  0x38   :  { %6928 = vrot.lane.b32.xlu1 %v11496_v2, %s11433_s15 }
  0x3a   :  { %7908 = vrot.lane.b32.xlu0 %v11500_v3, %s11434_s16 }
  0x3c   :  { %7910 = vrot.lane.b32.xlu1 %v11490_v1, %s11434_s16 }
  0x3e   :  { %7906 = vrot.lane.b32.xlu0 %v11485_v0, %s11434_s16 }
  0x40   :  { %7912 = vrot.lane.b32.xlu1 %v11496_v2, %s11434_s16 }
  0x74   :  { %v83_v15 = vpop.permute.xlu0 %82 }
  0x76   :  { %v89_v20 = vpop.permute.xlu1 %88 }
  0x77   :  { %v94_v22 = vsel %vm90_vm1, %v89_v20, %v83_v15 }
  0x78   :  { %v111_v23 = vmul.f32 %v11592_v16, %v94_v22  ;;  %v85_v24 = vpop.permute.xlu0 %84 }
  0x79   :  { %v93_v27 = vsel %vm90_vm1, %v83_v15, %v85_v24  ;;  %v11673_v15 = vand.u32 4294901760, %v1065_v61 }
  0x7a   :  { %v123_v30 = vsel %vm121_vm2, %v111_v23, 0  ;;  %v112_v31 = vmul.f32 %v11608_v21, %v93_v27  ;;  %v87_v32 = vpop.permute.xlu1 %86 }
  0x7b   :  { %v11628_v33 = vand.u32 4294901760, %v123_v30  ;;  %v91_v34 = vsel %vm90_vm1, %v87_v32, %v89_v20  ;;  %v92_v35 = vsel %vm90_vm1, %v85_v24, %v87_v32 }
  0x7c   :  { %v126_v36 = vsel %vm121_vm2, %v112_v31, 0  ;;  %v113_v37 = vmul.f32 %v11614_v25, %v92_v35  ;;  %v114_v38 = vmul.f32 %v11617_v26, %v91_v34  ;;  %v47_v39 = vpop.permute.xlu0 %46  ;;  %v11697_v35 = vrot.slane %v11597_v17, %v11624_v29 }
  0x7d   :  { %v249_v40 = vsub.f32 %v123_v30, %v11628_v33  ;;  %v164_v41 = vand.u32 4294901760, %v126_v36  ;;  %v11687_v30 = vsub.f32 %v1065_v61, %v11673_v15  ;;  %v11368_v61 = vld [vmem:[%s13569_s1 + $0x10] sm:$0xff] }
  0x7e   :  { %v129_v44 = vsel %vm121_vm2, %v113_v37, 0  ;;  %v132_v45 = vsel %vm121_vm2, %v114_v38, 0  ;;  %v49_v46 = vpop.permute.xlu1 %48  ;;  %13646 = vst [vmem:[#allocation14_spill] sm:$0xff] %v11697_v35 }
  0x7f   :  { %v11647_v47 = vand.u32 4294901760, %v132_v45  ;;  %165 = vmatprep.subr.mxu0 %v164_v41  ;;  %v243_v48 = vsub.f32 %v126_v36, %v164_v41  ;;  %v250_v49 = vand.u32 4294901760, %v249_v40  ;;  %v11649_v50 = vand.u32 4294901760, %v129_v44 }
  0x80   :  { %167 = vmatpush1.msra.mxu0 %v11628_v33  ;;  %v59_v51 = vsel %vm56_vm3, %v47_v39, %v49_v46  ;;  %v53_v52 = vpop.permute.xlu0 %52 }
  0x81   :  { %206 = vmatmul.mubr.f32.vlgmr.msra.gmra.mxu0 %v11639_v42  ;;  %326 = vmatprep.subr.mxu0 %v243_v48  ;;  %v244_v54 = vand.u32 4294901760, %v243_v48  ;;  %v78_v55 = vmul.f32 %v11643_v43, %v59_v51  ;;  %v60_v57 = vsel %vm56_vm3, %v53_v52, %v47_v39  ;;  %v251_v58 = vsub.f32 %v249_v40, %v250_v49 }
  0x82   :  { %329 = vmatpush1.msra.mxu0 %v249_v40  ;;  %362 = vmatprep.mubr.f32.mxu0 %v13578_v4  ;;  %v708_v59 = vsub.f32 %v132_v45, %v11647_v47  ;;  %v714_v62 = vsub.f32 %v129_v44, %v11649_v50  ;;  %v77_v63 = vmul.f32 %v11661_v56, %v60_v57  ;;  %v51_v20 = vpop.permute.xlu1 %50  ;;  %v11708_v40 = vand.u32 4294901760, %v11687_v30 }
  0x83   :  { %480 = vmatprep.subr.mxu0 %v244_v54  ;;  %v245_v60 = vsub.f32 %v243_v48, %v244_v54  ;;  %v1071_v7 = vsel %vm121_vm2, %v78_v55, 0  ;;  %v252_v11 = vand.u32 4294901760, %v251_v58  ;;  %v57_v31 = vsel %vm56_vm3, %v51_v20, %v53_v52 }
  0x84   :  { %v709_v6 = vand.u32 4294901760, %v708_v59  ;;  %v715_v22 = vand.u32 4294901760, %v714_v62  ;;  %v11676_v23 = vand.u32 4294901760, %v1071_v7  ;;  %v1068_v24 = vsel %vm121_vm2, %v77_v63, 0 }
  0x85   :  { %365 = vmatmul.mubr.f32.vlgmr.msra.gmra.mxu0 %v11583_v13  ;;  %v246_v5 = vand.u32 4294901760, %v245_v60  ;;  %v11692_v32 = vand.u32 4294901760, %v1068_v24  ;;  %v58_v38 = vsel %vm56_vm3, %v49_v46, %v51_v20  ;;  %v80_v39 = vmul.f32 %v11683_v28, %v57_v31 }
  0x86   :  { %484 = vmatpush1.msra.mxu0 %v250_v49  ;;  %517 = vmatprep.mubr.f32.mxu0 %v13578_v4  ;;  %v710_v27 = vsub.f32 %v708_v59, %v709_v6  ;;  %v716_v34 = vsub.f32 %v714_v62, %v715_v22  ;;  %v1188_v37 = vsub.f32 %v1071_v7, %v11676_v23  ;;  %v11722_v48 = vsub.s32 2, %v11570_v8  ;;  %v11729_v51 = vpop.permute.xlu1 %2011 }
  0x87   :  { %630 = vmatprep.subr.mxu0 %v11647_v47  ;;  %247 = vmatprep.subr.mxu1 %v246_v5  ;;  %v11711_v29 = vsub.f32 %v1068_v24, %v11692_v32  ;;  %v79_v44 = vmul.f32 %v11697_v35, %v58_v38  ;;  %v1077_v45 = vsel %vm121_vm2, %v80_v39, 0  ;;  %v1149_v46 = vsub.f32 %v11687_v30, %v11708_v40 }
  0x88   :  { %253 = vmatpush1.msra.mxu1 %v252_v11  ;;  %v711_v36 = vand.u32 4294901760, %v710_v27  ;;  %v11732_v52 = vand.u32 4294901760, %v1077_v45  ;;  %v11742_v55 = vrot.slane %v11588_v14, %v11722_v48 }
  0x89   :  { %288 = vmatmul.mubr.f32.vlgmr.msra.gmra.mxu1 %v11572_v9  ;;  %402 = vmatprep.subr.mxu1 %v164_v41  ;;  %v1195_v49 = vand.u32 4294901760, %v11711_v29  ;;  %v11738_v54 = vand.u32 4294901760, %v1149_v46 }
  0x8a   :  { %519 = vmatmul.mubr.f32.vlgmr.msra.gmra.mxu0 %v11572_v9  ;;  %404 = vmatpush1.msra.mxu1 %v11628_v33  ;;  %13647 = vst [vmem:[#allocation15_spill] sm:$0xff] %v11742_v55  ;;  %v1653_v63 = vsub.f32 %v1077_v45, %v11732_v52  ;;  %v2014_v27 = vpop.permute.xlu1 %2013 }
  0x8b   :  { %632 = vmatpush1.msra.mxu0 %v11649_v50  ;;  %556 = vmatprep.subr.mxu1 %v164_v41  ;;  %v717_v41 = vand.u32 4294901760, %v716_v34  ;;  %v1196_v60 = vsub.f32 %v11711_v29, %v1195_v49 }
  0x8c   :  { %791 = vmatprep.subr.mxu0 %v708_v59  ;;  %437 = vmatprep.mubr.f32.mxu1 %v13578_v4  ;;  %v1654_v20 = vand.u32 4294901760, %v1653_v63 }
  0x8d   :  { %665 = vmatprep.mubr.f32.mxu0 %v13578_v4  ;;  %441 = vmatmul.mubr.f32.vlgmr.msra.gmra.mxu1 %v11605_v19  ;;  %v1197_v11 = vand.u32 4294901760, %v1196_v60 }
  0x8e   :  { %558 = vmatpush1.msra.mxu1 %v11628_v33  ;;  %671 = vmatmul.mubr.f32.vlgmr.msra.gmra.mxu0 %v11639_v42  ;;  %v1189_v33 = vand.u32 4294901760, %v1188_v37  ;;  %v2010_v42 = vpop.permute.xlu0 %2009  ;;  %v11838_v60 = vpop.permute.xlu1 %2995 }
  0x8f   :  { %794 = vmatpush1.msra.mxu0 %v714_v62  ;;  %712 = vmatprep.subr.mxu1 %v711_v36  ;;  %v2020_v57 = vsel %vm2017_vm4, %v2010_v42, %v11729_v51  ;;  %v11760_v62 = vrot.slane %v11580_v12, %v11722_v48  ;;  %v1655_v36 = vsub.f32 %v1653_v63, %v1654_v20 }
  0x90   :  { %945 = vmatprep.subr.mxu0 %v709_v6  ;;  %591 = vmatprep.mubr.f32.mxu1 %v13578_v4  ;;  %v1190_v53 = vsub.f32 %v1188_v37, %v1189_v33  ;;  %v2039_v5 = vmul.f32 %v11742_v55, %v2020_v57  ;;  %v11831_v57 = vsub.s32 3, %v11570_v8 }
  0x91   :  { %827 = vmatprep.mubr.f32.mxu0 %v13578_v4  ;;  %593 = vmatmul.mubr.f32.vlgmr.msra.gmra.mxu1 %v11572_v9  ;;  %13648 = vst [vmem:[#allocation16_spill] sm:$0xff] %v11760_v62 }
  0x92   :  { %718 = vmatpush1.msra.mxu1 %v717_v41  ;;  %830 = vmatmul.mubr.f32.vlgmr.msra.gmra.mxu0 %v11583_v13  ;;  %v1074_v13 = vsel %vm121_vm2, %v79_v44, 0  ;;  %v2016_v58 = vpop.permute.xlu0 %2015  ;;  %v11805_v44 = vrot.slane %v11597_v17, %v11722_v48 }
  0x93   :  { %949 = vmatpush1.msra.mxu0 %v715_v22  ;;  %867 = vmatprep.subr.mxu1 %v11647_v47  ;;  %v11749_v59 = vand.u32 4294901760, %v1074_v13  ;;  %v2021_v6 = vsel %vm2017_vm4, %v2016_v58, %v2010_v42  ;;  %v2051_v22 = vsel %vm121_vm2, %v2039_v5, 0  ;;  %v2018_v39 = vsel %vm2017_vm4, %v2014_v27, %v2016_v58 }
  0x94   :  { %1110 = vmatprep.subr.mxu0 %v11676_v23  ;;  %751 = vmatprep.mubr.f32.mxu1 %v13578_v4  ;;  %13650 = vst [vmem:[#allocation18_spill] sm:$0xff] %v11805_v44  ;;  %v11851_v5 = vrot.slane %v11588_v14, %v11831_v57 }
  0x95   :  { %982 = vmatprep.mubr.f32.mxu0 %v13578_v4  ;;  %753 = vmatmul.mubr.f32.vlgmr.msra.gmra.mxu1 %v11572_v9  ;;  %v1659_v7 = vsub.f32 %v1074_v13, %v11749_v59 }
  0x96   :  { %869 = vmatpush1.msra.mxu1 %v11649_v50  ;;  %984 = vmatmul.mubr.f32.vlgmr.msra.gmra.mxu0 %v11572_v9  ;;  %v2994_v13 = vpop.permute.xlu0 %2993  ;;  %13651 = vst [vmem:[#allocation19_spill] sm:$0xff] %v11851_v5 }
  0x97   :  { %1112 = vmatpush1.msra.mxu0 %v11692_v32  ;;  %1021 = vmatprep.subr.mxu1 %v11647_v47  ;;  %v1191_v47 = vand.u32 4294901760, %v1190_v53  ;;  %v1660_v31 = vand.u32 4294901760, %v1659_v7 }
  0x98   :  { %1271 = vmatprep.subr.mxu0 %v1188_v37  ;;  %902 = vmatprep.mubr.f32.mxu1 %v13578_v4  ;;  %v11791_v37 = vrot.slane %v11602_v18, %v11722_v48 }
  0x99   :  { %1145 = vmatprep.mubr.f32.mxu0 %v13578_v4  ;;  %906 = vmatmul.mubr.f32.vlgmr.msra.gmra.mxu1 %v11605_v19  ;;  %v2045_v19 = vsel %vm117_vm0, %v11368_v61, 0  ;;  %v1661_v41 = vsub.f32 %v1659_v7, %v1660_v31 }
  0x9a   :  { %1023 = vmatpush1.msra.mxu1 %v11649_v50  ;;  %1151 = vmatmul.mubr.f32.vlgmr.msra.gmra.mxu0 %v11738_v54  ;;  %v2038_v50 = vmul.f32 %v11760_v62, %v2021_v6  ;;  %v11777_v24 = vand.u32 4294901760, %v2045_v19  ;;  %13649 = vst [vmem:[#allocation17_spill] sm:$0xff] %v11791_v37  ;;  %v2041_v45 = vmul.f32 %v11791_v37, %v2018_v39 }
  0x9b   :  { %1274 = vmatpush1.msra.mxu0 %v11711_v29  ;;  %1192 = vmatprep.subr.mxu1 %v1191_v47  ;;  %v3004_v6 = vsel %vm3001_vm5, %v2994_v13, %v11838_v60 }
  0x9c   :  { %1425 = vmatprep.subr.mxu0 %v1189_v33  ;;  %1056 = vmatprep.mubr.f32.mxu1 %v13578_v4  ;;  %v2048_v34 = vsel %vm121_vm2, %v2038_v50, 0  ;;  %v11794_v38 = vsub.f32 %v2045_v19, %v11777_v24  ;;  %v1656_v33 = vand.u32 4294901760, %v1655_v36  ;;  %v2057_v53 = vsel %vm121_vm2, %v2041_v45, 0  ;;  %v3000_v19 = vpop.permute.xlu0 %2999  ;;  %v11369_v50 = vld [vmem:[%s13569_s1 + $0x18] sm:$0xff] }
  0x9d   :  { %1307 = vmatprep.mubr.f32.mxu0 %v13578_v4  ;;  %1058 = vmatmul.mubr.f32.vlgmr.msra.gmra.mxu1 %v11572_v9  ;;  %v11782_v9 = vand.u32 4294901760, %v2051_v22  ;;  %v11800_v29 = vand.u32 4294901760, %v2048_v34  ;;  %v11841_v61 = vand.u32 4294901760, %v2057_v53 }
  0x9e   :  { %1198 = vmatpush1.msra.mxu1 %v1197_v11  ;;  %1310 = vmatmul.mubr.f32.vlgmr.msra.gmra.mxu0 %v11687_v30  ;;  %v11817_v46 = vand.u32 4294901760, %v11794_v38 }
  0x9f   :  { %1429 = vmatpush1.msra.mxu0 %v1195_v49  ;;  %1347 = vmatprep.subr.mxu1 %v11676_v23  ;;  %v2168_v42 = vsub.f32 %v2051_v22, %v11782_v9  ;;  %v11820_v48 = vsub.f32 %v2048_v34, %v11800_v29  ;;  %v1662_v49 = vand.u32 4294901760, %v1661_v41  ;;  %v2633_v22 = vsub.f32 %v2057_v53, %v11841_v61 }
  0xa0   :  { %1575 = vmatprep.subr.mxu0 %v11732_v52  ;;  %1231 = vmatprep.mubr.f32.mxu1 %v13578_v4 }
  0xa1   :  { %1462 = vmatprep.mubr.f32.mxu0 %v13578_v4  ;;  %1233 = vmatmul.mubr.f32.vlgmr.msra.gmra.mxu1 %v11673_v15  ;;  %v2175_v58 = vand.u32 4294901760, %v11820_v48  ;;  %v2634_v39 = vand.u32 4294901760, %v2633_v22 }
  0xa2   :  { %1349 = vmatpush1.msra.mxu1 %v11692_v32  ;;  %1464 = vmatmul.mubr.f32.vlgmr.msra.gmra.mxu0 %v11673_v15 }
  0xa3   :  { %1577 = vmatpush1.msra.mxu0 %v11749_v59  ;;  %1501 = vmatprep.subr.mxu1 %v11676_v23  ;;  %v2019_v23 = vsel %vm2017_vm4, %v11729_v51, %v2014_v27  ;;  %v2176_v11 = vsub.f32 %v11820_v48, %v2175_v58  ;;  %v3023_v27 = vmul.f32 %v11851_v5, %v3004_v6 }
  0xa4   :  { %1736 = vmatprep.subr.mxu0 %v1653_v63  ;;  %1382 = vmatprep.mubr.f32.mxu1 %v13578_v4  ;;  %v2040_v51 = vmul.f32 %v11805_v44, %v2019_v23 }
  0xa5   :  { %1610 = vmatprep.mubr.f32.mxu0 %v13578_v4  ;;  %1386 = vmatmul.mubr.f32.vlgmr.msra.gmra.mxu1 %v11708_v40  ;;  %v2177_v36 = vand.u32 4294901760, %v2176_v11  ;;  %v3035_v41 = vsel %vm121_vm2, %v3023_v27, 0 }
  0xa6   :  { %1503 = vmatpush1.msra.mxu1 %v11692_v32  ;;  %1616 = vmatmul.mubr.f32.vlgmr.msra.gmra.mxu0 %v11738_v54  ;;  %v2169_v32 = vand.u32 4294901760, %v2168_v42  ;;  %v2129_v54 = vsub.f32 %v11794_v38, %v11817_v46 }
  0xa7   :  { %1739 = vmatpush1.msra.mxu0 %v1659_v7  ;;  %1657 = vmatprep.subr.mxu1 %v1656_v33 }
  0xa8   :  { %1890 = vmatprep.subr.mxu0 %v1654_v20  ;;  %1536 = vmatprep.mubr.f32.mxu1 %v13578_v4  ;;  %v2170_v47 = vsub.f32 %v2168_v42, %v2169_v32  ;;  %v11847_v63 = vand.u32 4294901760, %v2129_v54  ;;  %v11869_v20 = vrot.slane %v11580_v12, %v11831_v57  ;;  %v11916_v54 = vrot.slane %v11597_v17, %v11831_v57 }
  0xa9   :  { %1772 = vmatprep.mubr.f32.mxu0 %v13578_v4  ;;  %1538 = vmatmul.mubr.f32.vlgmr.msra.gmra.mxu1 %v11673_v15 }
  0xaa   :  { %1663 = vmatpush1.msra.mxu1 %v1662_v49  ;;  %1775 = vmatmul.mubr.f32.vlgmr.msra.gmra.mxu0 %v11687_v30  ;;  %v2054_v30 = vsel %vm121_vm2, %v2040_v51, 0  ;;  %13652 = vst [vmem:[#allocation20_spill] sm:$0xff] %v11869_v20  ;;  %v11897_v49 = vsub.s32 4, %v11570_v8  ;;  %v11903_v51 = vrot.slane %v11602_v18, %v11831_v57  ;;  %13654 = vst [vmem:[#allocation22_spill] sm:$0xff] %v11916_v54 }
  0xab   :  { %1894 = vmatpush1.msra.mxu0 %v1660_v31  ;;  %1812 = vmatprep.subr.mxu1 %v11732_v52  ;;  %v11858_v7 = vand.u32 4294901760, %v2054_v30  ;;  %v3005_v31 = vsel %vm3001_vm5, %v3000_v19, %v2994_v13 }
  0xac   :  { %2090 = vmatprep.subr.mxu0 %v11782_v9  ;;  %1696 = vmatprep.mubr.f32.mxu1 %v13578_v4  ;;  %13653 = vst [vmem:[#allocation21_spill] sm:$0xff] %v11903_v51  ;;  %v11928_v6 = vrot.slane %v11588_v14, %v11897_v49 }
  0xad   :  { %1927 = vmatprep.mubr.f32.mxu0 %v13578_v4  ;;  %1698 = vmatmul.mubr.f32.vlgmr.msra.gmra.mxu1 %v11673_v15  ;;  %v2639_v34 = vsub.f32 %v2054_v30, %v11858_v7 }
  0xae   :  { %1814 = vmatpush1.msra.mxu1 %v11749_v59  ;;  %1929 = vmatmul.mubr.f32.vlgmr.msra.gmra.mxu0 %v11673_v15 }
  0xaf   :  { %2092 = vmatpush1.msra.mxu0 %v11800_v29  ;;  %1966 = vmatprep.subr.mxu1 %v11732_v52  ;;  %v2171_v52 = vand.u32 4294901760, %v2170_v47  ;;  %v2640_v23 = vand.u32 4294901760, %v2639_v34 }
  0xb0   :  { %2251 = vmatprep.subr.mxu0 %v2168_v42  ;;  %1847 = vmatprep.mubr.f32.mxu1 %v13578_v4  ;;  %v2998_v42 = vpop.permute.xlu1 %2997 }
  0xb1   :  { %2125 = vmatprep.mubr.f32.mxu0 %v13578_v4  ;;  %1851 = vmatmul.mubr.f32.vlgmr.msra.gmra.mxu1 %v11708_v40  ;;  %v3029_v40 = vsel %vm117_vm0, %v11369_v50, 0  ;;  %v3002_v13 = vsel %vm3001_vm5, %v2998_v42, %v3000_v19  ;;  %v3003_v57 = vsel %vm3001_vm5, %v11838_v60, %v2998_v42  ;;  %v11370_v42 = vld [vmem:[%s13569_s1 + $0x20] sm:$0xff] }
  0xb2   :  { %1968 = vmatpush1.msra.mxu1 %v11749_v59  ;;  %2131 = vmatmul.mubr.f32.vlgmr.msra.gmra.mxu0 %v11847_v63  ;;  %v3022_v59 = vmul.f32 %v11869_v20, %v3005_v31  ;;  %v11886_v33 = vand.u32 4294901760, %v3029_v40  ;;  %v3025_v19 = vmul.f32 %v11903_v51, %v3002_v13  ;;  %v4010_v13 = vsel %vm117_vm0, %v11370_v42, 0 }
  0xb3   :  { %2254 = vmatpush1.msra.mxu0 %v11820_v48  ;;  %2172 = vmatprep.subr.mxu1 %v2171_v52  ;;  %v2635_v48 = vsub.f32 %v2633_v22, %v2634_v39 }
  0xb4   :  { %2405 = vmatprep.subr.mxu0 %v2169_v32  ;;  %2001 = vmatprep.mubr.f32.mxu1 %v13578_v4  ;;  %v3032_v45 = vsel %vm121_vm2, %v3022_v59, 0  ;;  %v11906_v32 = vsub.f32 %v3029_v40, %v11886_v33 }
  0xb5   :  { %2287 = vmatprep.mubr.f32.mxu0 %v13578_v4  ;;  %2003 = vmatmul.mubr.f32.vlgmr.msra.gmra.mxu1 %v11673_v15  ;;  %v11891_v15 = vand.u32 4294901760, %v3035_v41  ;;  %v11912_v53 = vand.u32 4294901760, %v3032_v45  ;;  %v2636_v30 = vand.u32 4294901760, %v2635_v48  ;;  %v11979_v48 = vrot.slane %v11602_v18, %v11897_v49 }
  0xb6   :  { %2178 = vmatpush1.msra.mxu1 %v2177_v36  ;;  %2290 = vmatmul.mubr.f32.vlgmr.msra.gmra.mxu0 %v11794_v38  ;;  %v11937_v11 = vand.u32 4294901760, %v11906_v32 }
  0xb7   :  { %2409 = vmatpush1.msra.mxu0 %v2175_v58  ;;  %2327 = vmatprep.subr.mxu1 %v11782_v9  ;;  %v2641_v58 = vsub.f32 %v2639_v34, %v2640_v23  ;;  %v3152_v47 = vsub.f32 %v3035_v41, %v11891_v15  ;;  %v3158_v50 = vsub.f32 %v3032_v45, %v11912_v53 }
  0xb8   :  { %2555 = vmatprep.subr.mxu0 %v11841_v61  ;;  %2211 = vmatprep.mubr.f32.mxu1 %v13578_v4  ;;  %v3113_v27 = vsub.f32 %v11906_v32, %v11937_v11  ;;  %13656 = vst [vmem:[#allocation24_spill] sm:$0xff] %v11979_v48 }
  0xb9   :  { %2442 = vmatprep.mubr.f32.mxu0 %v13578_v4  ;;  %2213 = vmatmul.mubr.f32.vlgmr.msra.gmra.mxu1 %v11777_v24  ;;  %v2642_v52 = vand.u32 4294901760, %v2641_v58  ;;  %v3159_v31 = vand.u32 4294901760, %v3158_v50 }
  0xba   :  { %2329 = vmatpush1.msra.mxu1 %v11800_v29  ;;  %2444 = vmatmul.mubr.f32.vlgmr.msra.gmra.mxu0 %v11777_v24  ;;  %v3114_v59 = vand.u32 4294901760, %v3113_v27 }
  0xbb   :  { %2557 = vmatpush1.msra.mxu0 %v11858_v7  ;;  %2481 = vmatprep.subr.mxu1 %v11782_v9  ;;  %v11924_v9 = vrot.slane %v11580_v12, %v11897_v49  ;;  %v3160_v41 = vsub.f32 %v3158_v50, %v3159_v31 }
  0xbc   :  { %2716 = vmatprep.subr.mxu0 %v2633_v22  ;;  %2362 = vmatprep.mubr.f32.mxu1 %v13578_v4  ;;  %v3024_v22 = vmul.f32 %v11916_v54, %v3003_v57 }
  0xbd   :  { %2590 = vmatprep.mubr.f32.mxu0 %v13578_v4  ;;  %2366 = vmatmul.mubr.f32.vlgmr.msra.gmra.mxu1 %v11817_v46  ;;  %v3997_v60 = vcombine.low %v11924_v9, %v11928_v6  ;;  %v3161_v58 = vand.u32 4294901760, %v3160_v41 }
  0xbe   :  { %2483 = vmatpush1.msra.mxu1 %v11800_v29  ;;  %2596 = vmatmul.mubr.f32.vlgmr.msra.gmra.mxu0 %v11847_v63  ;;  %v3153_v29 = vand.u32 4294901760, %v3152_v47  ;;  %v3041_v63 = vsel %vm121_vm2, %v3025_v19, 0  ;;  %v3038_v40 = vsel %vm121_vm2, %v3024_v22, 0 }
  0xbf   :  { %2719 = vmatpush1.msra.mxu0 %v2639_v34  ;;  %2637 = vmatprep.subr.mxu1 %v2636_v30  ;;  %v11954_v34 = vand.u32 4294901760, %v3041_v63  ;;  %v4001_v36 = vmul.f32 %v3997_v60, %v11485_v0 }
  0xc0   :  { %2870 = vmatprep.subr.mxu0 %v2634_v39  ;;  %2516 = vmatprep.mubr.f32.mxu1 %v13578_v4  ;;  %v11963_v39 = vand.u32 4294901760, %v3038_v40 }
  0xc1   :  { %2752 = vmatprep.mubr.f32.mxu0 %v13578_v4  ;;  %2518 = vmatmul.mubr.f32.vlgmr.msra.gmra.mxu1 %v11777_v24  ;;  %v4007_v45 = vcombine.high %v4001_v36, %v4001_v36  ;;  %v4012_v57 = vsel %vm121_vm2, %v4001_v36, 0 }
  0xc2   :  { %2643 = vmatpush1.msra.mxu1 %v2642_v52  ;;  %2755 = vmatmul.mubr.f32.vlgmr.msra.gmra.mxu0 %v11794_v38  ;;  %v3154_v38 = vsub.f32 %v3152_v47, %v3153_v29  ;;  %v12002_v52 = vand.u32 4294901760, %v4012_v57 }
  0xc3   :  { %2874 = vmatpush1.msra.mxu0 %v2640_v23  ;;  %2792 = vmatprep.subr.mxu1 %v11841_v61  ;;  %v3617_v23 = vsub.f32 %v3041_v63, %v11954_v34  ;;  %v4014_v30 = vsel %vm121_vm2, %v4007_v45, 0 }
  0xc4   :  { %3074 = vmatprep.subr.mxu0 %v11891_v15  ;;  %2676 = vmatprep.mubr.f32.mxu1 %v13578_v4  ;;  %v3155_v0 = vand.u32 4294901760, %v3154_v38  ;;  %v11996_v19 = vand.u32 4294901760, %v4014_v30 }
  0xc5   :  { %2907 = vmatprep.mubr.f32.mxu0 %v13578_v4  ;;  %2678 = vmatmul.mubr.f32.vlgmr.msra.gmra.mxu1 %v11777_v24 }
  0xc6   :  { %2794 = vmatpush1.msra.mxu1 %v11858_v7  ;;  %2909 = vmatmul.mubr.f32.vlgmr.msra.gmra.mxu0 %v11777_v24  ;;  %v12012_v63 = vsub.f32 %v4014_v30, %v11996_v19 }
  0xc7   :  { %3076 = vmatpush1.msra.mxu0 %v11912_v53  ;;  %2946 = vmatprep.subr.mxu1 %v11841_v61  ;;  %v11975_v61 = vrot.slane %v11597_v17, %v11897_v49  ;;  %v11988_v49 = vand.u32 4294901760, %v4010_v13 }
  0xc8   :  { %3235 = vmatprep.subr.mxu0 %v3152_v47  ;;  %2827 = vmatprep.mubr.f32.mxu1 %v13578_v4  ;;  %v4130_v38 = vand.u32 4294901760, %v12012_v63 }
  0xc9   :  { %3109 = vmatprep.mubr.f32.mxu0 %v13578_v4  ;;  %2831 = vmatmul.mubr.f32.vlgmr.msra.gmra.mxu1 %v11817_v46  ;;  %13655 = vst [vmem:[#allocation23_spill] sm:$0xff] %v11975_v61  ;;  %v3623_v46 = vsub.f32 %v3038_v40, %v11963_v39  ;;  %v3998_v47 = vcombine.low %v11975_v61, %v11979_v48 }
  0xca   :  { %2948 = vmatpush1.msra.mxu1 %v11858_v7  ;;  %3115 = vmatmul.mubr.f32.vlgmr.msra.gmra.mxu0 %v3114_v59  ;;  %v3618_v7 = vand.u32 4294901760, %v3617_v23  ;;  %v12005_v22 = vsub.f32 %v4010_v13, %v11988_v49 }
  0xcb   :  { %3238 = vmatpush1.msra.mxu0 %v3158_v50  ;;  %3156 = vmatprep.subr.mxu1 %v3155_v0 }
  0xcc   :  { %3389 = vmatprep.subr.mxu0 %v3153_v29  ;;  %2981 = vmatprep.mubr.f32.mxu1 %v13578_v4  ;;  %v3619_v50 = vsub.f32 %v3617_v23, %v3618_v7  ;;  %v4002_v29 = vmul.f32 %v3998_v47, %v11490_v1  ;;  %v12018_v1 = vand.u32 4294901760, %v12005_v22 }
  0xcd   :  { %3271 = vmatprep.mubr.f32.mxu0 %v13578_v4  ;;  %2983 = vmatmul.mubr.f32.vlgmr.msra.gmra.mxu1 %v11777_v24  ;;  %v3624_v24 = vand.u32 4294901760, %v3623_v46 }
  0xce   :  { %3162 = vmatpush1.msra.mxu1 %v3161_v58  ;;  %3274 = vmatmul.mubr.f32.vlgmr.msra.gmra.mxu0 %v11906_v32  ;;  %v3620_v27 = vand.u32 4294901760, %v3619_v50  ;;  %v4090_v36 = vsub.f32 %v12005_v22, %v12018_v1  ;;  %v4016_v0 = vsel %vm121_vm2, %v4002_v29, 0 }
  0xcf   :  { %3393 = vmatpush1.msra.mxu0 %v3159_v31  ;;  %3311 = vmatprep.subr.mxu1 %v11891_v15  ;;  %v3625_v60 = vsub.f32 %v3623_v46, %v3624_v24  ;;  %v4008_v31 = vcombine.high %v4002_v29, %v4002_v29 }
  0xd0   :  { %3539 = vmatprep.subr.mxu0 %v11954_v34  ;;  %3195 = vmatprep.mubr.f32.mxu1 %v13578_v4  ;;  %v12049_v13 = vand.u32 4294901760, %v4090_v36 }
  0xd1   :  { %3426 = vmatprep.mubr.f32.mxu0 %v13578_v4  ;;  %3197 = vmatmul.mubr.f32.vlgmr.msra.gmra.mxu1 %v11886_v33  ;;  %v3626_v40 = vand.u32 4294901760, %v3625_v60  ;;  %v4018_v42 = vsel %vm121_vm2, %v4008_v31, 0 }
  0xd2   :  { %3313 = vmatpush1.msra.mxu1 %v11912_v53  ;;  %3428 = vmatmul.mubr.f32.vlgmr.msra.gmra.mxu0 %v11886_v33  ;;  %v12045_v45 = vand.u32 4294901760, %v4018_v42 }
  0xd3   :  { %3541 = vmatpush1.msra.mxu0 %v11963_v39  ;;  %3465 = vmatprep.subr.mxu1 %v11891_v15  ;;  %v12021_v15 = vsub.f32 %v4012_v57, %v12002_v52 }
  0xd4   :  { %3700 = vmatprep.subr.mxu0 %v3617_v23  ;;  %3346 = vmatprep.mubr.f32.mxu1 %v13578_v4  ;;  %v12041_v23 = vpop.permute.xlu1 %4958  ;;  %v4594_v50 = vsub.f32 %v4018_v42, %v12045_v45 }
  0xd5   :  { %3574 = vmatprep.mubr.f32.mxu0 %v13578_v4  ;;  %3350 = vmatmul.mubr.f32.vlgmr.msra.gmra.mxu1 %v11937_v11  ;;  %v4136_v41 = vand.u32 4294901760, %v12021_v15 }
  0xd6   :  { %3467 = vmatpush1.msra.mxu1 %v11912_v53  ;;  %3580 = vmatmul.mubr.f32.vlgmr.msra.gmra.mxu0 %v3114_v59  ;;  %v4957_v53 = vpop.permute.xlu0 %4956  ;;  %v12031_v59 = vsub.s32 5, %v11570_v8 }
  0xd7   :  { %3703 = vmatpush1.msra.mxu0 %v3623_v46  ;;  %3621 = vmatprep.subr.mxu1 %v3620_v27  ;;  %v4137_v58 = vsub.f32 %v12021_v15, %v4136_v41  ;;  %v4964_v30 = vsel %vm4962_vm6, %v4957_v53, %v12041_v23 }
  0xd8   :  { %3854 = vmatprep.subr.mxu0 %v3618_v7  ;;  %3500 = vmatprep.mubr.f32.mxu1 %v13578_v4  ;;  %v12053_v46 = vrot.slane %v11588_v14, %v12031_v59  ;;  %v12056_v7 = vand.u32 4294901760, %v4016_v0  ;;  %v12102_v42 = vrot.slane %v11602_v18, %v12031_v59  ;;  %v12118_v18 = vrot.slane %v11597_v17, %v12031_v59 }
  0xd9   :  { %3736 = vmatprep.mubr.f32.mxu0 %v13578_v4  ;;  %3502 = vmatmul.mubr.f32.vlgmr.msra.gmra.mxu1 %v11886_v33  ;;  %v4138_v60 = vand.u32 4294901760, %v4137_v58 }
  0xda   :  { %3627 = vmatpush1.msra.mxu1 %v3626_v40  ;;  %3739 = vmatmul.mubr.f32.vlgmr.msra.gmra.mxu0 %v11906_v32  ;;  %v4131_v32 = vsub.f32 %v12012_v63, %v4130_v38  ;;  %13657 = vst [vmem:[#allocation25_spill] sm:$0xff] %v12053_v46  ;;  %v4955_v47 = vpop.permute.xlu0 %4954  ;;  %v4984_v29 = vmul.f32 %v12053_v46, %v4964_v30  ;;  %13659 = vst [vmem:[#allocation27_spill] sm:$0xff] %v12102_v42 }
  0xdb   :  { %3858 = vmatpush1.msra.mxu0 %v3624_v24  ;;  %3776 = vmatprep.subr.mxu1 %v11954_v34  ;;  %v11371_v24 = vld [vmem:[%s13569_s1 + $0x28] sm:$0xff]  ;;  %v4965_v27 = vsel %vm4962_vm6, %v4955_v47, %v4957_v53  ;;  %13660 = vst [vmem:[#allocation28_spill] sm:$0xff] %v12118_v18 }
  0xdc   :  { %3660 = vmatprep.mubr.f32.mxu1 %v13578_v4  ;;  %3891 = vmatprep.mubr.f32.mxu0 %v13578_v4  ;;  %v4132_v57 = vand.u32 4294901760, %v4131_v32  ;;  %v4996_v31 = vsel %vm121_vm2, %v4984_v29, 0 }
  0xdd   :  { %3662 = vmatmul.mubr.f32.vlgmr.msra.gmra.mxu1 %v11886_v33  ;;  %4051 = vmatprep.subr.mxu0 %v11996_v19 }
  0xde   :  { %3778 = vmatpush1.msra.mxu1 %v11963_v39  ;;  %3893 = vmatmul.mubr.f32.vlgmr.msra.gmra.mxu0 %v11886_v33 }
  0xdf   :  { %3930 = vmatprep.subr.mxu1 %v11954_v34  ;;  %3811 = vmatprep.mubr.f32.mxu1 %v13578_v4  ;;  %v12072_v34 = vrot.slane %v11580_v12, %v12031_v59  ;;  %v4990_v12 = vsel %vm117_vm0, %v11371_v24, 0 }
  0xe0   :  { %4053 = vmatpush1.msra.mxu0 %v12002_v52  ;;  %4086 = vmatprep.mubr.f32.mxu0 %v13578_v4  ;;  %v12089_v53 = vand.u32 4294901760, %v4990_v12 }
  0xe1   :  { %3815 = vmatmul.mubr.f32.vlgmr.msra.gmra.mxu1 %v11937_v11  ;;  %4212 = vmatprep.subr.mxu0 %v12012_v63  ;;  %13658 = vst [vmem:[#allocation26_spill] sm:$0xff] %v12072_v34  ;;  %v4600_v11 = vsub.f32 %v4016_v0, %v12056_v7  ;;  %v4595_v63 = vand.u32 4294901760, %v4594_v50 }
  0xe2   :  { %3932 = vmatpush1.msra.mxu1 %v11963_v39  ;;  %4092 = vmatmul.mubr.f32.vlgmr.msra.gmra.mxu0 %v12049_v13  ;;  %v4983_v39 = vmul.f32 %v12072_v34, %v4965_v27  ;;  %v12106_v0 = vsub.f32 %v4990_v12, %v12089_v53 }
  0xe3   :  { %3965 = vmatprep.mubr.f32.mxu1 %v13578_v4  ;;  %4215 = vmatpush1.msra.mxu0 %v12021_v15  ;;  %v4601_v40 = vand.u32 4294901760, %v4600_v11  ;;  %v12094_v15 = vand.u32 4294901760, %v4996_v31  ;;  %v4596_v36 = vsub.f32 %v4594_v50, %v4595_v63 }
  0xe4   :  { %4248 = vmatprep.mubr.f32.mxu0 %v13578_v4  ;;  %4133 = vmatprep.subr.mxu1 %v4132_v57  ;;  %v12129_v17 = vand.u32 4294901760, %v12106_v0 }
  0xe5   :  { %3967 = vmatmul.mubr.f32.vlgmr.msra.gmra.mxu1 %v11886_v33  ;;  %4366 = vmatprep.subr.mxu0 %v4130_v38  ;;  %v4961_v33 = vpop.permute.xlu1 %4960  ;;  %v4993_v38 = vsel %vm121_vm2, %v4983_v39, 0  ;;  %v4597_v30 = vand.u32 4294901760, %v4596_v36 }
  0xe6   :  { %4251 = vmatmul.mubr.f32.vlgmr.msra.gmra.mxu0 %v12005_v22  ;;  %4139 = vmatpush1.msra.mxu1 %v4138_v60  ;;  %v4966_v32 = vsel %vm4962_vm6, %v4961_v33, %v4955_v47  ;;  %v12112_v58 = vand.u32 4294901760, %v4993_v38  ;;  %v5113_v47 = vsub.f32 %v4996_v31, %v12094_v15  ;;  %v4963_v57 = vsel %vm4962_vm6, %v12041_v23, %v4961_v33 }
  0xe7   :  { %4172 = vmatprep.mubr.f32.mxu1 %v13578_v4  ;;  %4370 = vmatpush1.msra.mxu0 %v4136_v41  ;;  %v4602_v41 = vsub.f32 %v4600_v11, %v4601_v40  ;;  %v4986_v24 = vmul.f32 %v12102_v42, %v4966_v32  ;;  %v4985_v23 = vmul.f32 %v12118_v18, %v4963_v57  ;;  %v12143_v60 = vsub.s32 6, %v11570_v8  ;;  %v12182_v32 = vld [vmem:[%s13573_s5] sm:$0xff] }
  0xe8   :  { %4403 = vmatprep.mubr.f32.mxu0 %v13578_v4  ;;  %4288 = vmatprep.subr.mxu1 %v11996_v19  ;;  %v12133_v59 = vsub.f32 %v4993_v38, %v12112_v58  ;;  %v5074_v29 = vsub.f32 %v12106_v0, %v12129_v17 }
  0xe9   :  { %4174 = vmatmul.mubr.f32.vlgmr.msra.gmra.mxu1 %v11988_v49  ;;  %4516 = vmatprep.subr.mxu0 %v12045_v45  ;;  %v12163_v31 = vrot.slane %v11588_v14, %v12143_v60  ;;  %v11372_v14 = vld [vmem:[%s13569_s1 + $0x30] sm:$0xff] }
  0xea   :  { %4405 = vmatmul.mubr.f32.vlgmr.msra.gmra.mxu0 %v11988_v49  ;;  %4290 = vmatpush1.msra.mxu1 %v12002_v52  ;;  %v5120_v27 = vand.u32 4294901760, %v12133_v59  ;;  %v5974_v57 = vsel %vm117_vm0, %v11372_v14, 0 }
  0xeb   :  { %4323 = vmatprep.mubr.f32.mxu1 %v13578_v4  ;;  %4518 = vmatpush1.msra.mxu0 %v12056_v7  ;;  %13661 = vst [vmem:[#allocation29_spill] sm:$0xff] %v12163_v31 }
  0xec   :  { %4551 = vmatprep.mubr.f32.mxu0 %v13578_v4  ;;  %4442 = vmatprep.subr.mxu1 %v11996_v19  ;;  %v4603_v19 = vand.u32 4294901760, %v4602_v41  ;;  %v5121_v36 = vsub.f32 %v12133_v59, %v5120_v27 }
  0xed   :  { %4327 = vmatmul.mubr.f32.vlgmr.msra.gmra.mxu1 %v12018_v1  ;;  %4677 = vmatprep.subr.mxu0 %v4594_v50  ;;  %v5002_v50 = vsel %vm121_vm2, %v4986_v24, 0 }
  0xee   :  { %4557 = vmatmul.mubr.f32.vlgmr.msra.gmra.mxu0 %v12049_v13  ;;  %4444 = vmatpush1.msra.mxu1 %v12002_v52  ;;  %v5114_v13 = vand.u32 4294901760, %v5113_v47  ;;  %v5941_v52 = vpop.permute.xlu0 %5940  ;;  %v12153_v12 = vand.u32 4294901760, %v5002_v50 }
  0xef   :  { %4680 = vmatpush1.msra.mxu0 %v4600_v11  ;;  %4477 = vmatprep.mubr.f32.mxu1 %v13578_v4  ;;  %v12150_v11 = vpop.permute.xlu1 %5942 }
  0xf0   :  { %4713 = vmatprep.mubr.f32.mxu0 %v13578_v4  ;;  %4831 = vmatprep.subr.mxu0 %v4595_v63  ;;  %v5115_v39 = vsub.f32 %v5113_v47, %v5114_v13  ;;  %v12159_v63 = vand.u32 4294901760, %v5074_v29 }
  0xf1   :  { %4479 = vmatmul.mubr.f32.vlgmr.msra.gmra.mxu1 %v11988_v49  ;;  %4598 = vmatprep.subr.mxu1 %v4597_v30  ;;  %v12186_v30 = vrot.slane %v12182_v32, %v12143_v60 }
  0xf2   :  { %4716 = vmatmul.mubr.f32.vlgmr.msra.gmra.mxu0 %v12005_v22  ;;  %4604 = vmatpush1.msra.mxu1 %v4603_v19  ;;  %v4999_v22 = vsel %vm121_vm2, %v4985_v23, 0  ;;  %v5939_v33 = vpop.permute.xlu0 %5938  ;;  %v5116_v41 = vand.u32 4294901760, %v5115_v39  ;;  %v5122_v19 = vand.u32 4294901760, %v5121_v36 }
  0xf3   :  { %4835 = vmatpush1.msra.mxu0 %v4601_v40  ;;  %4637 = vmatprep.mubr.f32.mxu1 %v13578_v4  ;;  %v5948_v40 = vsel %vm5946_vm7, %v5941_v52, %v12150_v11  ;;  %v12170_v38 = vand.u32 4294901760, %v4999_v22 }
  0xf4   :  { %5035 = vmatprep.subr.mxu0 %v12094_v15  ;;  %4868 = vmatprep.mubr.f32.mxu0 %v13578_v4 }
  0xf5   :  { %4639 = vmatmul.mubr.f32.vlgmr.msra.gmra.mxu1 %v11988_v49  ;;  %4753 = vmatprep.subr.mxu1 %v12045_v45  ;;  %v5584_v24 = vsub.f32 %v4999_v22, %v12170_v38 }
  0xf6   :  { %4870 = vmatmul.mubr.f32.vlgmr.msra.gmra.mxu0 %v11988_v49  ;;  %4755 = vmatpush1.msra.mxu1 %v12056_v7 }
  0xf7   :  { %5037 = vmatpush1.msra.mxu0 %v12112_v58  ;;  %4788 = vmatprep.mubr.f32.mxu1 %v13578_v4 }
  0xf8   :  { %5196 = vmatprep.subr.mxu0 %v5113_v47  ;;  %4907 = vmatprep.subr.mxu1 %v12045_v45  ;;  %v5578_v45 = vsub.f32 %v5002_v50, %v12153_v12  ;;  %v5968_v47 = vmul.f32 %v12163_v31, %v5948_v40  ;;  %v5585_v50 = vand.u32 4294901760, %v5584_v24 }
  0xf9   :  { %5070 = vmatprep.mubr.f32.mxu0 %v13578_v4  ;;  %4792 = vmatmul.mubr.f32.vlgmr.msra.gmra.mxu1 %v12018_v1  ;;  %v5949_v1 = vsel %vm5946_vm7, %v5939_v33, %v5941_v52  ;;  %v12203_v52 = vand.u32 4294901760, %v5974_v57 }
  0xfa   :  { %4909 = vmatpush1.msra.mxu1 %v12056_v7  ;;  %5076 = vmatmul.mubr.f32.vlgmr.msra.gmra.mxu0 %v12159_v63  ;;  %v5967_v7 = vmul.f32 %v12186_v30, %v5949_v1  ;;  %v5579_v23 = vand.u32 4294901760, %v5578_v45 }
  0xfb   :  { %5199 = vmatpush1.msra.mxu0 %v12133_v59  ;;  %5117 = vmatprep.subr.mxu1 %v5116_v41  ;;  %v5980_v59 = vsel %vm121_vm2, %v5968_v47, 0  ;;  %v12225_v40 = vsub.f32 %v5974_v57, %v12203_v52  ;;  %v5586_v41 = vsub.f32 %v5584_v24, %v5585_v50  ;;  %v12237_v47 = vld [vmem:[%s13573_s5 + $0x10] sm:$0xff] }
  0xfc   :  { %5350 = vmatprep.subr.mxu0 %v5114_v13  ;;  %4942 = vmatprep.mubr.f32.mxu1 %v13578_v4  ;;  %v5945_v13 = vpop.permute.xlu1 %5944  ;;  %v5977_v29 = vsel %vm121_vm2, %v5967_v7, 0  ;;  %v5580_v22 = vsub.f32 %v5578_v45, %v5579_v23  ;;  %v12241_v1 = vrot.slane %v12237_v47, %v12143_v60 }
  0xfd   :  { %5232 = vmatprep.mubr.f32.mxu0 %v13578_v4  ;;  %4944 = vmatmul.mubr.f32.vlgmr.msra.gmra.mxu1 %v11988_v49  ;;  %v12208_v49 = vand.u32 4294901760, %v5980_v59  ;;  %v5950_v36 = vsel %vm5946_vm7, %v5945_v13, %v5939_v33  ;;  %v12231_v14 = vand.u32 4294901760, %v5977_v29  ;;  %v5587_v7 = vand.u32 4294901760, %v5586_v41 }
  0xfe   :  { %5123 = vmatpush1.msra.mxu1 %v5122_v19  ;;  %5235 = vmatmul.mubr.f32.vlgmr.msra.gmra.mxu0 %v12106_v0  ;;  %13663 = vst [vmem:[#allocation31_spill] sm:$0xff] %v12241_v1 }
  0xff   :  { %5354 = vmatpush1.msra.mxu0 %v5120_v27  ;;  %5272 = vmatprep.subr.mxu1 %v12094_v15  ;;  %v12218_v27 = vld [vmem:[%s13573_s5 + $0x18] sm:$0xff]  ;;  %v6097_v33 = vsub.f32 %v5980_v59, %v12208_v49  ;;  %v12256_v19 = vsub.f32 %v5977_v29, %v12231_v14 }
 0x100   :  { %5500 = vmatprep.subr.mxu0 %v12153_v12  ;;  %5156 = vmatprep.mubr.f32.mxu1 %v13578_v4  ;;  %v12222_v39 = vrot.slane %v12218_v27, %v12143_v60  ;;  %v12253_v60 = vand.u32 4294901760, %v12225_v40  ;;  %v12274_v29 = vpop.permute.xlu1 %6926 }
 0x101   :  { %5387 = vmatprep.mubr.f32.mxu0 %v13578_v4  ;;  %5158 = vmatmul.mubr.f32.vlgmr.msra.gmra.mxu1 %v12089_v53 }
 0x102   :  { %5274 = vmatpush1.msra.mxu1 %v12112_v58  ;;  %5389 = vmatmul.mubr.f32.vlgmr.msra.gmra.mxu0 %v12089_v53  ;;  %13662 = vst [vmem:[#allocation30_spill] sm:$0xff] %v12222_v39  ;;  %v5970_v57 = vmul.f32 %v12222_v39, %v5950_v36  ;;  %v11397_v36 = vld [vmem:[%s13573_s5 + $0x8] sm:$0xff] }
 0x103   :  { %5502 = vmatpush1.msra.mxu0 %v12170_v38  ;;  %5426 = vmatprep.subr.mxu1 %v12094_v15  ;;  %v5581_v15 = vand.u32 4294901760, %v5580_v22 }
 0x104   :  { %5661 = vmatprep.subr.mxu0 %v5578_v45  ;;  %5307 = vmatprep.mubr.f32.mxu1 %v13578_v4  ;;  %v5947_v45 = vsel %vm5946_vm7, %v12150_v11, %v5945_v13  ;;  %v5986_v59 = vsel %vm121_vm2, %v5970_v57, 0  ;;  %v6104_v13 = vand.u32 4294901760, %v12256_v19 }
 0x105   :  { %5535 = vmatprep.mubr.f32.mxu0 %v13578_v4  ;;  %5311 = vmatmul.mubr.f32.vlgmr.msra.gmra.mxu1 %v12129_v17  ;;  %v5969_v11 = vmul.f32 %v12241_v1, %v5947_v45  ;;  %v12277_v22 = vand.u32 4294901760, %v5986_v59 }
 0x106   :  { %5428 = vmatpush1.msra.mxu1 %v12112_v58  ;;  %5541 = vmatmul.mubr.f32.vlgmr.msra.gmra.mxu0 %v12159_v63  ;;  %v6098_v58 = vand.u32 4294901760, %v6097_v33  ;;  %v6925_v63 = vpop.permute.xlu0 %6924 }
 0x107   :  { %5664 = vmatpush1.msra.mxu0 %v5584_v24  ;;  %5582 = vmatprep.subr.mxu1 %v5581_v15  ;;  %v6058_v24 = vsub.f32 %v12225_v40, %v12253_v60  ;;  %v6932_v15 = vsel %vm6930_vm8, %v6925_v63, %v12274_v29 }
 0x108   :  { %5815 = vmatprep.subr.mxu0 %v5579_v23  ;;  %5461 = vmatprep.mubr.f32.mxu1 %v13578_v4  ;;  %v12267_v23 = vsub.s32 7, %v11570_v8  ;;  %v6099_v8 = vsub.f32 %v6097_v33, %v6098_v58 }
 0x109   :  { %5697 = vmatprep.mubr.f32.mxu0 %v13578_v4  ;;  %5463 = vmatmul.mubr.f32.vlgmr.msra.gmra.mxu1 %v12089_v53 }
 0x10a   :  { %5588 = vmatpush1.msra.mxu1 %v5587_v7  ;;  %5700 = vmatmul.mubr.f32.vlgmr.msra.gmra.mxu0 %v12106_v0  ;;  %v5983_v0 = vsel %vm121_vm2, %v5969_v11, 0  ;;  %v12289_v41 = vrot.slane %v11397_v36, %v12267_v23  ;;  %v6923_v45 = vpop.permute.xlu0 %6922  ;;  %v6105_v7 = vsub.f32 %v12256_v19, %v6104_v13  ;;  %v11373_v11 = vld [vmem:[%s13569_s1 + $0x38] sm:$0xff]  ;;  %v6562_v36 = vsub.f32 %v5986_v59, %v12277_v22 }
 0x10b   :  { %5819 = vmatpush1.msra.mxu0 %v5585_v50  ;;  %5737 = vmatprep.subr.mxu1 %v12153_v12  ;;  %v12283_v50 = vand.u32 4294901760, %v6058_v24  ;;  %v12296_v57 = vand.u32 4294901760, %v5983_v0  ;;  %v12307_v24 = vrot.slane %v12182_v32, %v12267_v23  ;;  %v6933_v2 = vsel %vm6930_vm8, %v6923_v45, %v6925_v63 }
 0x10c   :  { %6019 = vmatprep.subr.mxu0 %v12208_v49  ;;  %5621 = vmatprep.mubr.f32.mxu1 %v13578_v4  ;;  %v6106_v32 = vand.u32 4294901760, %v6105_v7  ;;  %v6563_v59 = vand.u32 4294901760, %v6562_v36 }
 0x10d   :  { %5852 = vmatprep.mubr.f32.mxu0 %v13578_v4  ;;  %5623 = vmatmul.mubr.f32.vlgmr.msra.gmra.mxu1 %v12089_v53 }
 0x10e   :  { %5739 = vmatpush1.msra.mxu1 %v12170_v38  ;;  %5854 = vmatmul.mubr.f32.vlgmr.msra.gmra.mxu0 %v12089_v53 }
 0x10f   :  { %6021 = vmatpush1.msra.mxu0 %v12231_v14  ;;  %5891 = vmatprep.subr.mxu1 %v12153_v12  ;;  %v6100_v12 = vand.u32 4294901760, %v6099_v8  ;;  %v6568_v8 = vsub.f32 %v5983_v0, %v12296_v57 }
 0x110   :  { %6180 = vmatprep.subr.mxu0 %v6097_v33  ;;  %5772 = vmatprep.mubr.f32.mxu1 %v13578_v4  ;;  %v6952_v33 = vmul.f32 %v12289_v41, %v6932_v15  ;;  %v6564_v15 = vsub.f32 %v6562_v36, %v6563_v59 }
 0x111   :  { %6054 = vmatprep.mubr.f32.mxu0 %v13578_v4  ;;  %5776 = vmatmul.mubr.f32.vlgmr.msra.gmra.mxu1 %v12129_v17  ;;  %v6958_v17 = vsel %vm117_vm0, %v11373_v11, 0  ;;  %v6569_v0 = vand.u32 4294901760, %v6568_v8 }
 0x112   :  { %5893 = vmatpush1.msra.mxu1 %v12170_v38  ;;  %6060 = vmatmul.mubr.f32.vlgmr.msra.gmra.mxu0 %v12283_v50  ;;  %v6951_v38 = vmul.f32 %v12307_v24, %v6933_v2  ;;  %v12324_v63 = vand.u32 4294901760, %v6958_v17 }
 0x113   :  { %6183 = vmatpush1.msra.mxu0 %v12256_v19  ;;  %6101 = vmatprep.subr.mxu1 %v6100_v12  ;;  %v6964_v19 = vsel %vm121_vm2, %v6952_v33, 0  ;;  %v6570_v33 = vsub.f32 %v6568_v8, %v6569_v0 }
 0x114   :  { %6334 = vmatprep.subr.mxu0 %v6098_v58  ;;  %5926 = vmatprep.mubr.f32.mxu1 %v13578_v4  ;;  %v6929_v58 = vpop.permute.xlu1 %6928  ;;  %v6961_v2 = vsel %vm121_vm2, %v6951_v38, 0  ;;  %v12341_v7 = vsub.f32 %v6958_v17, %v12324_v63  ;;  %v6565_v17 = vand.u32 4294901760, %v6564_v15  ;;  %v11375_v15 = vld [vmem:[%s13573_s5 + $0x28] ss:$0 sm:$0xff] }
 0x115   :  { %6216 = vmatprep.mubr.f32.mxu0 %v13578_v4  ;;  %5928 = vmatmul.mubr.f32.vlgmr.msra.gmra.mxu1 %v12089_v53  ;;  %v12329_v53 = vand.u32 4294901760, %v6964_v19  ;;  %v6934_v11 = vsel %vm6930_vm8, %v6929_v58, %v6923_v45  ;;  %v12347_v12 = vand.u32 4294901760, %v6961_v2 }
 0x116   :  { %6107 = vmatpush1.msra.mxu1 %v6106_v32  ;;  %6219 = vmatmul.mubr.f32.vlgmr.msra.gmra.mxu0 %v12225_v40 }
 0x117   :  { %6338 = vmatpush1.msra.mxu0 %v6104_v13  ;;  %6256 = vmatprep.subr.mxu1 %v12208_v49  ;;  %v12338_v13 = vrot.slane %v12218_v27, %v12267_v23  ;;  %v12352_v27 = vrot.slane %v12237_v47, %v12267_v23  ;;  %v7081_v32 = vsub.f32 %v6964_v19, %v12329_v53  ;;  %v12364_v47 = vand.u32 4294901760, %v12341_v7 }
 0x118   :  { %6484 = vmatprep.subr.mxu0 %v12277_v22  ;;  %6140 = vmatprep.mubr.f32.mxu1 %v13578_v4  ;;  %v7087_v23 = vsub.f32 %v6961_v2, %v12347_v12  ;;  %v12379_v19 = vpop.permute.xlu1 %7910 }
 0x119   :  { %6371 = vmatprep.mubr.f32.mxu0 %v13578_v4  ;;  %6142 = vmatmul.mubr.f32.vlgmr.msra.gmra.mxu1 %v12203_v52  ;;  %13664 = vst [vmem:[#allocation32_spill] sm:$0xff] %v12338_v13  ;;  %13665 = vst [vmem:[#allocation33_spill] sm:$0xff] %v12352_v27  ;;  %v6954_v45 = vmul.f32 %v12338_v13, %v6934_v11 }
 0x11a   :  { %6258 = vmatpush1.msra.mxu1 %v12231_v14  ;;  %6373 = vmatmul.mubr.f32.vlgmr.msra.gmra.mxu0 %v12203_v52 }
 0x11b   :  { %6486 = vmatpush1.msra.mxu0 %v12296_v57  ;;  %6410 = vmatprep.subr.mxu1 %v12208_v49  ;;  %v6931_v49 = vsel %vm6930_vm8, %v12274_v29, %v6929_v58  ;;  %v7909_v29 = vpop.permute.xlu0 %7908 }
 0x11c   :  { %6645 = vmatprep.subr.mxu0 %v6562_v36  ;;  %6291 = vmatprep.mubr.f32.mxu1 %v13578_v4  ;;  %v6571_v36 = vand.u32 4294901760, %v6570_v33  ;;  %v6953_v38 = vmul.f32 %v12352_v27, %v6931_v49  ;;  %v7916_v11 = vsel %vm7914_vm9, %v7909_v29, %v12379_v19 }
 0x11d   :  { %6519 = vmatprep.mubr.f32.mxu0 %v13578_v4  ;;  %6295 = vmatmul.mubr.f32.vlgmr.msra.gmra.mxu1 %v12253_v60 }
 0x11e   :  { %6412 = vmatpush1.msra.mxu1 %v12231_v14  ;;  %6525 = vmatmul.mubr.f32.vlgmr.msra.gmra.mxu0 %v12283_v50  ;;  %v7082_v14 = vand.u32 4294901760, %v7081_v32  ;;  %v6970_v50 = vsel %vm121_vm2, %v6954_v45, 0  ;;  %v6967_v58 = vsel %vm121_vm2, %v6953_v38, 0  ;;  %v11378_v45 = vld [vmem:[%s13569_s1 + $0x40] sm:$0xff]  ;;  %v7936_v38 = vmul.f32 %v11375_v15, %v7916_v11 }
 0x11f   :  { %6648 = vmatpush1.msra.mxu0 %v6568_v8  ;;  %6566 = vmatprep.subr.mxu1 %v6565_v17  ;;  %v7042_v8 = vsub.f32 %v12341_v7, %v12364_v47  ;;  %v12382_v2 = vand.u32 4294901760, %v6970_v50  ;;  %v7907_v33 = vpop.permute.xlu0 %7906  ;;  %v12398_v17 = vand.u32 4294901760, %v6967_v58 }
 0x120   :  { %6799 = vmatprep.subr.mxu0 %v6563_v59  ;;  %6445 = vmatprep.mubr.f32.mxu1 %v13578_v4  ;;  %v7088_v59 = vand.u32 4294901760, %v7087_v23 }
 0x121   :  { %6681 = vmatprep.mubr.f32.mxu0 %v13578_v4  ;;  %6447 = vmatmul.mubr.f32.vlgmr.msra.gmra.mxu1 %v12203_v52 }
 0x122   :  { %6572 = vmatpush1.msra.mxu1 %v6571_v36  ;;  %6684 = vmatmul.mubr.f32.vlgmr.msra.gmra.mxu0 %v12225_v40  ;;  %v7083_v40 = vsub.f32 %v7081_v32, %v7082_v14  ;;  %v7089_v49 = vsub.f32 %v7087_v23, %v7088_v59  ;;  %v7546_v36 = vsub.f32 %v6970_v50, %v12382_v2  ;;  %v13666_v50 = vmov 0.0  }
 0x123   :  { %6803 = vmatpush1.msra.mxu0 %v6569_v0  ;;  %6721 = vmatprep.subr.mxu1 %v12277_v22  ;;  %v12388_v0 = vand.u32 4294901760, %v7042_v8  ;;  %v7917_v8 = vsel %vm7914_vm9, %v7907_v33, %v7909_v29 }
 0x124   :  { %7003 = vmatprep.subr.mxu0 %v12329_v53  ;;  %6605 = vmatprep.mubr.f32.mxu1 %v13578_v4  ;;  %v7547_v15 = vand.u32 4294901760, %v7546_v36 }
 0x125   :  { %6836 = vmatprep.mubr.f32.mxu0 %v13578_v4  ;;  %6607 = vmatmul.mubr.f32.vlgmr.msra.gmra.mxu1 %v12203_v52 }
 0x126   :  { %6723 = vmatpush1.msra.mxu1 %v12296_v57  ;;  %6838 = vmatmul.mubr.f32.vlgmr.msra.gmra.mxu0 %v12203_v52 }
 0x127   :  { %7005 = vmatpush1.msra.mxu0 %v12347_v12  ;;  %6875 = vmatprep.subr.mxu1 %v12277_v22  ;;  %v7084_v22 = vand.u32 4294901760, %v7083_v40 }
 0x128   :  { %7164 = vmatprep.subr.mxu0 %v7081_v32  ;;  %6756 = vmatprep.mubr.f32.mxu1 %v13578_v4  ;;  %v11374_v32 = vld [vmem:[%s13573_s5 + $0x20] ss:$0 sm:$0xff] }
 0x129   :  { %7038 = vmatprep.mubr.f32.mxu0 %v13578_v4  ;;  %6760 = vmatmul.mubr.f32.vlgmr.msra.gmra.mxu1 %v12253_v60  ;;  %v7942_v4 = vsel %vm117_vm0, %v11378_v45, 0  ;;  %v7552_v60 = vsub.f32 %v6967_v58, %v12398_v17  ;;  %v7935_v40 = vmul.f32 %v11374_v32, %v7917_v8  ;;  %v11377_v45 = vld [vmem:[%s13573_s5 + $0x38] ss:$0 sm:$0xff] }
 0x12a   :  { %6877 = vmatpush1.msra.mxu1 %v12296_v57  ;;  %7044 = vmatmul.mubr.f32.vlgmr.msra.gmra.mxu0 %v12388_v0  ;;  %v7090_v57 = vand.u32 4294901760, %v7089_v49  ;;  %v12421_v29 = vand.u32 4294901760, %v7942_v4  ;;  %v7548_v49 = vsub.f32 %v7546_v36, %v7547_v15 }
 0x12b   :  { %7167 = vmatpush1.msra.mxu0 %v7087_v23  ;;  %7085 = vmatprep.subr.mxu1 %v7084_v22  ;;  %v7948_v23 = vsel %vm121_vm2, %v7936_v38, 0  ;;  %v7553_v58 = vand.u32 4294901760, %v7552_v60 }
 0x12c   :  { %7318 = vmatprep.subr.mxu0 %v7082_v14  ;;  %6910 = vmatprep.mubr.f32.mxu1 %v13666_v50  ;;  %v7913_v14 = vpop.permute.xlu1 %7912  ;;  %v12426_v11 = vand.u32 4294901760, %v7948_v23 }
 0x12d   :  { %7200 = vmatprep.mubr.f32.mxu0 %v13666_v50  ;;  %6912 = vmatmul.mubr.f32.vlgmr.msra.gmra.mxu1 %v12203_v52  ;;  %v7945_v52 = vsel %vm121_vm2, %v7935_v40, 0  ;;  %v7918_v22 = vsel %vm7914_vm9, %v7913_v14, %v7907_v33  ;;  %v7554_v32 = vsub.f32 %v7552_v60, %v7553_v58 }
 0x12e   :  { %7091 = vmatpush1.msra.mxu1 %v7090_v57  ;;  %7203 = vmatmul.mubr.f32.vlgmr.msra.gmra.mxu0 %v12341_v7  ;;  %v12443_v38 = vand.u32 4294901760, %v7945_v52  ;;  %v8065_v8 = vsub.f32 %v7948_v23, %v12426_v11  ;;  %v11376_v57 = vld [vmem:[%s13573_s5 + $0x30] ss:$0 sm:$0xff]  ;;  %v7938_v33 = vmul.f32 %v11377_v45, %v7918_v22 }
 0x12f   :  { %7322 = vmatpush1.msra.mxu0 %v7088_v59  ;;  %7240 = vmatprep.subr.mxu1 %v12329_v53  ;;  %v12434_v59 = vsub.f32 %v7942_v4, %v12421_v29  ;;  %v7549_v4 = vand.u32 4294901760, %v7548_v49  ;;  %v7555_v23 = vand.u32 4294901760, %v7554_v32 }
 0x130   :  { %7468 = vmatprep.subr.mxu0 %v12382_v2  ;;  %7124 = vmatprep.mubr.f32.mxu1 %v13666_v50  ;;  %v8071_v40 = vsub.f32 %v7945_v52, %v12443_v38 }
 0x131   :  { %7355 = vmatprep.mubr.f32.mxu0 %v13666_v50  ;;  %7126 = vmatmul.mubr.f32.vlgmr.msra.gmra.mxu1 %v12324_v63 }
 0x132   :  { %7242 = vmatpush1.msra.mxu1 %v12347_v12  ;;  %7357 = vmatmul.mubr.f32.vlgmr.msra.gmra.mxu0 %v12324_v63 }
 0x133   :  { %7470 = vmatpush1.msra.mxu0 %v12398_v17  ;;  %7394 = vmatprep.subr.mxu1 %v12329_v53  ;;  %v7915_v53 = vsel %vm7914_vm9, %v12379_v19, %v7913_v14  ;;  %v8066_v19 = vand.u32 4294901760, %v8065_v8 }
 0x134   :  { %7629 = vmatprep.subr.mxu0 %v7546_v36  ;;  %7275 = vmatprep.mubr.f32.mxu1 %v13666_v50  ;;  %v12458_v36 = vand.u32 4294901760, %v12434_v59  ;;  %v7937_v49 = vmul.f32 %v11376_v57, %v7915_v53 }
 0x135   :  { %7503 = vmatprep.mubr.f32.mxu0 %v13666_v50  ;;  %7279 = vmatmul.mubr.f32.vlgmr.msra.gmra.mxu1 %v12364_v47 }
 0x136   :  { %7396 = vmatpush1.msra.mxu1 %v12347_v12  ;;  %7509 = vmatmul.mubr.f32.vlgmr.msra.gmra.mxu0 %v12388_v0  ;;  %v7954_v12 = vsel %vm121_vm2, %v7938_v33, 0  ;;  %v8026_v0 = vsub.f32 %v12434_v59, %v12458_v36 }
 0x137   :  { %7632 = vmatpush1.msra.mxu0 %v7552_v60  ;;  %7550 = vmatprep.subr.mxu1 %v7549_v4  ;;  %v8072_v60 = vand.u32 4294901760, %v8071_v40  ;;  %v12472_v14 = vand.u32 4294901760, %v7954_v12 }
 0x138   :  { %7783 = vmatprep.subr.mxu0 %v7547_v15  ;;  %7429 = vmatprep.mubr.f32.mxu1 %v13666_v50  ;;  %v7951_v15 = vsel %vm121_vm2, %v7937_v49, 0 }
 0x139   :  { %7665 = vmatprep.mubr.f32.mxu0 %v13666_v50  ;;  %7431 = vmatmul.mubr.f32.vlgmr.msra.gmra.mxu1 %v12324_v63  ;;  %v12480_v52 = vand.u32 4294901760, %v7951_v15  ;;  %v8073_v45 = vsub.f32 %v8071_v40, %v8072_v60  ;;  %v8530_v4 = vsub.f32 %v7954_v12, %v12472_v14 }
 0x13a   :  { %7556 = vmatpush1.msra.mxu1 %v7555_v23  ;;  %7668 = vmatmul.mubr.f32.vlgmr.msra.gmra.mxu0 %v12341_v7  ;;  %v8067_v7 = vsub.f32 %v8065_v8, %v8066_v19 }
 0x13b   :  { %7787 = vmatpush1.msra.mxu0 %v7553_v58  ;;  %7705 = vmatprep.subr.mxu1 %v12382_v2  ;;  %v8027_v58 = vand.u32 4294901760, %v8026_v0  ;;  %v8074_v57 = vand.u32 4294901760, %v8073_v45 }
 0x13c   :  { %7987 = vmatprep.subr.mxu0 %v12426_v11  ;;  %7589 = vmatprep.mubr.f32.mxu1 %v13666_v50  ;;  %v8068_v32 = vand.u32 4294901760, %v8067_v7 }
 0x13d   :  { %7820 = vmatprep.mubr.f32.mxu0 %v13666_v50  ;;  %7591 = vmatmul.mubr.f32.vlgmr.msra.gmra.mxu1 %v12324_v63 }
 0x13e   :  { %7707 = vmatpush1.msra.mxu1 %v12398_v17  ;;  %7822 = vmatmul.mubr.f32.vlgmr.msra.gmra.mxu0 %v12324_v63 }
 0x13f   :  { %7989 = vmatpush1.msra.mxu0 %v12443_v38  ;;  %7859 = vmatprep.subr.mxu1 %v12382_v2 }
 0x140   :  { %8148 = vmatprep.subr.mxu0 %v8065_v8  ;;  %7740 = vmatprep.mubr.f32.mxu1 %v13666_v50  ;;  %v8536_v8 = vsub.f32 %v7951_v15, %v12480_v52 }
 0x141   :  { %8022 = vmatprep.mubr.f32.mxu0 %v13666_v50  ;;  %v207_v22 = vpop.f32.mrf.mxu0  ;;  %7744 = vmatmul.mubr.f32.vlgmr.msra.gmra.mxu1 %v12364_v47  ;;  %v8531_v47 = vand.u32 4294901760, %v8530_v4 }
 0x142   :  { %7861 = vmatpush1.msra.mxu1 %v12398_v17  ;;  %8028 = vmatmul.mubr.f32.vlgmr.msra.gmra.mxu0 %v8027_v58  ;;  %v8537_v33 = vand.u32 4294901760, %v8536_v8 }
 0x143   :  { %8151 = vmatpush1.msra.mxu0 %v8071_v40  ;;  %8069 = vmatprep.subr.mxu1 %v8068_v32  ;;  %v12487_v2 = vpop.f32.mrf.mxu0 }
 0x144   :  { %8302 = vmatprep.subr.mxu0 %v8066_v19  ;;  %7894 = vmatprep.mubr.f32.mxu1 %v13666_v50 }
 0x145   :  { %8184 = vmatprep.mubr.f32.mxu0 %v13666_v50  ;;  %v366_v53 = vpop.f32.mrf.mxu0  ;;  %7896 = vmatmul.mubr.f32.vlgmr.msra.gmra.mxu1 %v12324_v63  ;;  %v8532_v63 = vsub.f32 %v8530_v4, %v8531_v47 }
 0x146   :  { %8075 = vmatpush1.msra.mxu1 %v8074_v57  ;;  %8187 = vmatmul.mubr.f32.vlgmr.msra.gmra.mxu0 %v12434_v59 }
 0x147   :  { %8306 = vmatpush1.msra.mxu0 %v8072_v60  ;;  %8224 = vmatprep.subr.mxu1 %v12426_v11  ;;  %v12495_v17 = vpop.f32.mrf.mxu0  ;;  %v8538_v60 = vsub.f32 %v8536_v8, %v8537_v33  ;;  %v8533_v7 = vand.u32 4294901760, %v8532_v63 }
 0x148   :  { %8452 = vmatprep.subr.mxu0 %v12472_v14  ;;  %8108 = vmatprep.mubr.f32.mxu1 %v13666_v50 }
 0x149   :  { %8339 = vmatprep.mubr.f32.mxu0 %v13666_v50  ;;  %v289_v40 = vpop.f32.mrf.mxu1  ;;  %8110 = vmatmul.mubr.f32.vlgmr.msra.gmra.mxu1 %v12421_v29  ;;  %v8539_v57 = vand.u32 4294901760, %v8538_v60 }
 0x14a   :  { %v290_v23 = vadd.f32 %v289_v40, %v207_v22  ;;  %v520_v49 = vpop.f32.mrf.mxu0  ;;  %8226 = vmatpush1.msra.mxu1 %v12443_v38  ;;  %8341 = vmatmul.mubr.f32.vlgmr.msra.gmra.mxu0 %v12421_v29 }
 0x14b   :  { %8454 = vmatpush1.msra.mxu0 %v12480_v52  ;;  %8378 = vmatprep.subr.mxu1 %v12426_v11  ;;  %v12505_v19 = vpop.f32.mrf.mxu1 }
 0x14c   :  { %8613 = vmatprep.subr.mxu0 %v8530_v4  ;;  %v12507_v12 = vpop.f32.mrf.mxu0  ;;  %8259 = vmatprep.mubr.f32.mxu1 %v13666_v50  ;;  %v367_v0 = vadd.f32 %v366_v53, %v290_v23  ;;  %v8890_v23 = vld [vmem:[%s13570_s2] sm:$0xff] }
 0x14d   :  { %8487 = vmatprep.mubr.f32.mxu0 %v13666_v50  ;;  %v442_v15 = vpop.f32.mrf.mxu1  ;;  %8263 = vmatmul.mubr.f32.vlgmr.msra.gmra.mxu1 %v12458_v36 }
 0x14e   :  { %v443_v45 = vadd.f32 %v442_v15, %v367_v0  ;;  %v672_v22 = vpop.f32.mrf.mxu0  ;;  %8380 = vmatpush1.msra.mxu1 %v12443_v38  ;;  %8493 = vmatmul.mubr.f32.vlgmr.msra.gmra.mxu0 %v8027_v58 }
 0x14f   :  { %8616 = vmatpush1.msra.mxu0 %v8536_v8  ;;  %8534 = vmatprep.subr.mxu1 %v8533_v7  ;;  %v12513_v11 = vpop.f32.mrf.mxu1 }
 0x150   :  { %8767 = vmatprep.subr.mxu0 %v8531_v47  ;;  %v674_v32 = vpop.f32.mrf.mxu0  ;;  %8413 = vmatprep.mubr.f32.mxu1 %v13666_v50  ;;  %v521_v4 = vadd.f32 %v520_v49, %v443_v45  ;;  %v11435_v47 = vmov 0  }
 0x151   :  { %8649 = vmatprep.mubr.f32.mxu0 %v13666_v50  ;;  %v594_v53 = vpop.f32.mrf.mxu1  ;;  %8415 = vmatmul.mubr.f32.vlgmr.msra.gmra.mxu1 %v12421_v29 }
 0x152   :  { %v595_v40 = vadd.f32 %v594_v53, %v521_v4  ;;  %v831_v63 = vpop.f32.mrf.mxu0  ;;  %8540 = vmatpush1.msra.mxu1 %v8539_v57  ;;  %8652 = vmatmul.mubr.f32.vlgmr.msra.gmra.mxu0 %v12434_v59 }
 0x153   :  { %8771 = vmatpush1.msra.mxu0 %v8537_v33  ;;  %8689 = vmatprep.subr.mxu1 %v12472_v14  ;;  %v12520_v38 = vpop.f32.mrf.mxu1 }
 0x154   :  { %v833_v58 = vpop.f32.mrf.mxu0  ;;  %8573 = vmatprep.mubr.f32.mxu1 %v13666_v50  ;;  %8804 = vmatprep.mubr.f32.mxu0 %v13666_v50 }
 0x155   :  { %v754_v8 = vpop.f32.mrf.mxu1  ;;  %8575 = vmatmul.mubr.f32.vlgmr.msra.gmra.mxu1 %v12421_v29  ;;  %11390 = vset.pattern.permute.xlu0 %v11435_v47 }
 0x156   :  { %v755_v59 = vadd.f32 %v754_v8, %v672_v22  ;;  %v985_v33 = vpop.f32.mrf.mxu0  ;;  %8691 = vmatpush1.msra.mxu1 %v12480_v52  ;;  %8724 = vmatprep.mubr.f32.mxu1 %v13666_v50 }
 0x157   :  { %8843 = vmatprep.subr.mxu1 %v12472_v14  ;;  %v756_v49 = vpop.f32.mrf.mxu1  ;;  %8806 = vmatmul.mubr.f32.vlgmr.msra.gmra.mxu0 %v12421_v29 }
 0x158   :  { %v987_v0 = vpop.f32.mrf.mxu0  ;;  %v832_v60 = vadd.f32 %v831_v63, %v755_v59  ;;  %8893 = vperm.xlu0 %11390, %v8890_v23   ;;  %9129 = vmatprep.mubr.f32.mxu0 %v13666_v50  ;;  %v757_v4 = vadd.f32 %v756_v49, %v674_v32 }
 0x159   :  { %v907_v15 = vpop.f32.mrf.mxu1  ;;  %8728 = vmatmul.mubr.f32.vlgmr.msra.gmra.mxu1 %v12458_v36  ;;  %11391 = vset.pattern.permute.xlu1 %v11435_v47 }
 0x15a   :  { %v908_v7 = vadd.f32 %v907_v15, %v832_v60  ;;  %v1152_v45 = vpop.f32.mrf.mxu0  ;;  %8845 = vmatpush1.msra.mxu1 %v12480_v52  ;;  %8878 = vmatprep.mubr.f32.mxu1 %v13666_v50  ;;  %v834_v47 = vadd.f32 %v833_v58, %v757_v4 }
 0x15b   :  { %v1153_v22 = vadd.f32 %v1152_v45, %v595_v40  ;;  %v909_v14 = vpop.f32.mrf.mxu1 }
 0x15c   :  { %v12536_v57 = vpop.f32.mrf.mxu0  ;;  %v986_v53 = vadd.f32 %v985_v33, %v908_v7  ;;  %v910_v32 = vadd.f32 %v909_v14, %v834_v47 }
 0x15d   :  { %v1059_v63 = vpop.f32.mrf.mxu1  ;;  %8880 = vmatmul.mubr.f32.vlgmr.msra.gmra.mxu1 %v12421_v29 }
 0x15e   :  { %v1060_v8 = vadd.f32 %v1059_v63, %v986_v53  ;;  %v1311_v23 = vpop.f32.mrf.mxu0  ;;  %9295 = vmatprep.mubr.f32.mxu1 %v13666_v50  ;;  %v988_v3 = vadd.f32 %v987_v0, %v910_v32 }
 0x15f   :  { %v1061_v36 = vpop.f32.mrf.mxu1 }
 0x160   :  { %v12540_v59 = vpop.f32.mrf.mxu0 }
 0x161   :  { %v1234_v52 = vpop.f32.mrf.mxu1 }
 0x162   :  { %v1235_v60 = vadd.f32 %v1234_v52, %v1153_v22  ;;  %v1465_v15 = vpop.f32.mrf.mxu0  ;;  %v1062_v52 = vadd.f32 %v1061_v36, %v988_v3  ;;  %v292_v3 = vadd.f32 %v12505_v19, %v12487_v2 }
 0x163   :  { %v12542_v40 = vpop.f32.mrf.mxu1 }
 0x164   :  { %v12544_v49 = vpop.f32.mrf.mxu0  ;;  %v1312_v33 = vadd.f32 %v1311_v23, %v1235_v60 }
 0x165   :  { %v1387_v7 = vpop.f32.mrf.mxu1 }
 0x166   :  { %v1388_v45 = vadd.f32 %v1387_v7, %v1312_v33  ;;  %v1617_v29 = vpop.f32.mrf.mxu0 }
 0x167   :  { %v1618_v53 = vadd.f32 %v1617_v29, %v1060_v8  ;;  %v12546_v63 = vpop.f32.mrf.mxu1 }
 0x168   :  { %v1619_v35 = vpop.f32.mrf.mxu0  ;;  %v1466_v58 = vadd.f32 %v1465_v15, %v1388_v45 }
 0x169   :  { %v1539_v4 = vpop.f32.mrf.mxu1  ;;  %v1620_v47 = vadd.f32 %v1619_v35, %v1062_v52 }
 0x16a   :  { %v1540_v28 = vadd.f32 %v1539_v4, %v1466_v58  ;;  %v1776_v25 = vpop.f32.mrf.mxu0 }
 0x16b   :  { %v12548_v22 = vpop.f32.mrf.mxu1 }
 0x16c   :  { %v1778_v26 = vpop.f32.mrf.mxu0 }
 0x16d   :  { %v1699_v14 = vpop.f32.mrf.mxu1 }
 0x16e   :  { %v1700_v44 = vadd.f32 %v1699_v14, %v1618_v53  ;;  %v1930_v23 = vpop.f32.mrf.mxu0 }
 0x16f   :  { %v1701_v60 = vpop.f32.mrf.mxu1 }
 0x170   :  { %v1777_v33 = vadd.f32 %v1776_v25, %v1700_v44  ;;  %v1702_v7 = vadd.f32 %v1701_v60, %v1620_v47  ;;  %v1932_v8 = vpop.f32.mrf.mxu0  ;;  %v369_v47 = vadd.f32 %v12495_v17, %v292_v3 }
 0x171   :  { %v1852_v29 = vpop.f32.mrf.mxu1 }
 0x172   :  { %v1779_v37 = vadd.f32 %v1778_v26, %v1702_v7  ;;  %v1853_v0 = vadd.f32 %v1852_v29, %v1777_v33  ;;  %v2132_v32 = vpop.f32.mrf.mxu0 }
 0x173   :  { %v1854_v15 = vpop.f32.mrf.mxu1 }
 0x174   :  { %v1931_v45 = vadd.f32 %v1930_v23, %v1853_v0  ;;  %v1855_v58 = vadd.f32 %v1854_v15, %v1779_v37  ;;  %v2134_v4 = vpop.f32.mrf.mxu0  ;;  %v445_v0 = vadd.f32 %v12513_v11, %v369_v47 }
 0x175   :  { %v2004_v54 = vpop.f32.mrf.mxu1 }
 0x176   :  { %v1933_v36 = vadd.f32 %v1932_v8, %v1855_v58  ;;  %v2005_v35 = vadd.f32 %v2004_v54, %v1931_v45  ;;  %v2291_v53 = vpop.f32.mrf.mxu0 }
 0x177   :  { %v2006_v52 = vpop.f32.mrf.mxu1 }
 0x178   :  { %v2007_v14 = vadd.f32 %v2006_v52, %v1933_v36  ;;  %v2293_v25 = vpop.f32.mrf.mxu0  ;;  %v523_v52 = vadd.f32 %v12507_v12, %v445_v0 }
 0x179   :  { %v2214_v44 = vpop.f32.mrf.mxu1 }
 0x17a   :  { %v2215_v26 = vadd.f32 %v2214_v44, %v2132_v32  ;;  %v2445_v60 = vpop.f32.mrf.mxu0  ;;  %v597_v11 = vadd.f32 %v12520_v38, %v523_v52 }
 0x17b   :  { %v2216_v33 = vpop.f32.mrf.mxu1 }
 0x17c   :  { %v2292_v7 = vadd.f32 %v2291_v53, %v2215_v26  ;;  %v2217_v23 = vadd.f32 %v2216_v33, %v2134_v4  ;;  %v2447_v37 = vpop.f32.mrf.mxu0 }
 0x17d   :  { %v2367_v29 = vpop.f32.mrf.mxu1 }
 0x17e   :  { %v2294_v15 = vadd.f32 %v2293_v25, %v2217_v23  ;;  %v2368_v2 = vadd.f32 %v2367_v29, %v2292_v7  ;;  %v2597_v19 = vpop.f32.mrf.mxu0 }
 0x17f   :  { %v2369_v54 = vpop.f32.mrf.mxu1 }
 0x180   :  { %v2446_v8 = vadd.f32 %v2445_v60, %v2368_v2  ;;  %v2370_v45 = vadd.f32 %v2369_v54, %v2294_v15  ;;  %v2599_v58 = vpop.f32.mrf.mxu0  ;;  %v1155_v60 = vadd.f32 %v12536_v57, %v597_v11 }
 0x181   :  { %v2519_v36 = vpop.f32.mrf.mxu1 }
 0x182   :  { %v2448_v17 = vadd.f32 %v2447_v37, %v2370_v45  ;;  %v2520_v32 = vadd.f32 %v2519_v36, %v2446_v8  ;;  %v2756_v3 = vpop.f32.mrf.mxu0  ;;  %v1237_v12 = vadd.f32 %v12542_v40, %v1155_v60 }
 0x183   :  { %v2521_v44 = vpop.f32.mrf.mxu1 }
 0x184   :  { %v2989_v53 = vadd.f32 %v2520_v32, %v1540_v28  ;;  %v2522_v4 = vadd.f32 %v2521_v44, %v2448_v17  ;;  %v2758_v26 = vpop.f32.mrf.mxu0  ;;  %v1314_v38 = vadd.f32 %v12540_v59, %v1237_v12 }
 0x185   :  { %v2679_v33 = vpop.f32.mrf.mxu1 }
 0x186   :  { %v2680_v25 = vadd.f32 %v2679_v33, %v2597_v19  ;;  %v2910_v47 = vpop.f32.mrf.mxu0  ;;  %v1390_v40 = vadd.f32 %v12546_v63, %v1314_v38 }
 0x187   :  { %v2681_v7 = vpop.f32.mrf.mxu1 }
 0x188   :  { %v2757_v23 = vadd.f32 %v2756_v3, %v2680_v25  ;;  %v2682_v29 = vadd.f32 %v2681_v7, %v2599_v58  ;;  %v2912_v15 = vpop.f32.mrf.mxu0  ;;  %v1468_v59 = vadd.f32 %v12544_v49, %v1390_v40 }
 0x189   :  { %v2832_v2 = vpop.f32.mrf.mxu1 }
 0x18a   :  { %v2759_v37 = vadd.f32 %v2758_v26, %v2682_v29  ;;  %v2833_v0 = vadd.f32 %v2832_v2, %v2757_v23  ;;  %v3116_v54 = vpop.f32.mrf.mxu0  ;;  %v1542_v63 = vadd.f32 %v12548_v22, %v1468_v59 }
 0x18b   :  { %v2834_v28 = vpop.f32.mrf.mxu1 }
 0x18c   :  { %v2911_v8 = vadd.f32 %v2910_v47, %v2833_v0  ;;  %v2835_v45 = vadd.f32 %v2834_v28, %v2759_v37  ;;  %v3118_v36 = vpop.f32.mrf.mxu0  ;;  %v2990_v38 = vadd.f32 %v2522_v4, %v1542_v63 }
 0x18d   :  { %v2984_v17 = vpop.f32.mrf.mxu1 }
 0x18e   :  { %v2913_v19 = vadd.f32 %v2912_v15, %v2835_v45  ;;  %v2985_v52 = vadd.f32 %v2984_v17, %v2911_v8  ;;  %v3275_v32 = vpop.f32.mrf.mxu0 }
 0x18f   :  { %v2986_v57 = vpop.f32.mrf.mxu1 }
 0x190   :  { %v2991_v3 = vadd.f32 %v2985_v52, %v2005_v35  ;;  %v2987_v58 = vadd.f32 %v2986_v57, %v2913_v19  ;;  %v3277_v44 = vpop.f32.mrf.mxu0 }
 0x191   :  { %v3198_v33 = vpop.f32.mrf.mxu1 }
 0x192   :  { %v2992_v26 = vadd.f32 %v2987_v58, %v2007_v14  ;;  %v3199_v11 = vadd.f32 %v3198_v33, %v3116_v54  ;;  %v3429_v25 = vpop.f32.mrf.mxu0 }
 0x193   :  { %v3200_v7 = vpop.f32.mrf.mxu1 }
 0x194   :  { %v3276_v47 = vadd.f32 %v3275_v32, %v3199_v11  ;;  %v3201_v60 = vadd.f32 %v3200_v7, %v3118_v36  ;;  %v3431_v23 = vpop.f32.mrf.mxu0 }
 0x195   :  { %v3351_v29 = vpop.f32.mrf.mxu1 }
 0x196   :  { %v3278_v15 = vadd.f32 %v3277_v44, %v3201_v60  ;;  %v3352_v2 = vadd.f32 %v3351_v29, %v3276_v47  ;;  %v3581_v12 = vpop.f32.mrf.mxu0 }
 0x197   :  { %v3353_v37 = vpop.f32.mrf.mxu1 }
 0x198   :  { %v3430_v35 = vadd.f32 %v3429_v25, %v3352_v2  ;;  %v3354_v0 = vadd.f32 %v3353_v37, %v3278_v15  ;;  %v3583_v28 = vpop.f32.mrf.mxu0 }
 0x199   :  { %v3503_v8 = vpop.f32.mrf.mxu1 }
 0x19a   :  { %v3432_v14 = vadd.f32 %v3431_v23, %v3354_v0  ;;  %v3504_v54 = vadd.f32 %v3503_v8, %v3430_v35  ;;  %v3740_v45 = vpop.f32.mrf.mxu0 }
 0x19b   :  { %v3505_v17 = vpop.f32.mrf.mxu1 }
 0x19c   :  { %v3973_v36 = vadd.f32 %v3504_v54, %v2989_v53  ;;  %v3506_v19 = vadd.f32 %v3505_v17, %v3432_v14  ;;  %v3742_v52 = vpop.f32.mrf.mxu0 }
 0x19d   :  { %v3663_v32 = vpop.f32.mrf.mxu1 }
 0x19e   :  { %v3974_v49 = vadd.f32 %v3506_v19, %v2990_v38  ;;  %v3664_v57 = vadd.f32 %v3663_v32, %v3581_v12  ;;  %v3894_v58 = vpop.f32.mrf.mxu0 }
 0x19f   :  { %v3665_v44 = vpop.f32.mrf.mxu1 }
 0x1a0   :  { %v3741_v33 = vadd.f32 %v3740_v45, %v3664_v57  ;;  %v3666_v40 = vadd.f32 %v3665_v44, %v3583_v28  ;;  %v3896_v11 = vpop.f32.mrf.mxu0 }
 0x1a1   :  { %v3816_v25 = vpop.f32.mrf.mxu1 }
 0x1a2   :  { %v3743_v7 = vadd.f32 %v3742_v52, %v3666_v40  ;;  %v3817_v47 = vadd.f32 %v3816_v25, %v3741_v33  ;;  %v4093_v22 = vpop.f32.mrf.mxu0 }
 0x1a3   :  { %v3818_v60 = vpop.f32.mrf.mxu1 }
 0x1a4   :  { %v3895_v23 = vadd.f32 %v3894_v58, %v3817_v47  ;;  %v3819_v29 = vadd.f32 %v3818_v60, %v3743_v7  ;;  %v4095_v59 = vpop.f32.mrf.mxu0 }
 0x1a5   :  { %v3968_v4 = vpop.f32.mrf.mxu1 }
 0x1a6   :  { %v3897_v53 = vadd.f32 %v3896_v11, %v3819_v29  ;;  %v3969_v15 = vadd.f32 %v3968_v4, %v3895_v23  ;;  %v4252_v2 = vpop.f32.mrf.mxu0 }
 0x1a7   :  { %v3970_v37 = vpop.f32.mrf.mxu1 }
 0x1a8   :  { %v3975_v35 = vadd.f32 %v3969_v15, %v2991_v3  ;;  %v3971_v12 = vadd.f32 %v3970_v37, %v3897_v53  ;;  %v4254_v0 = vpop.f32.mrf.mxu0 }
 0x1a9   :  { %v4175_v8 = vpop.f32.mrf.mxu1 }
 0x1aa   :  { %v3976_v63 = vadd.f32 %v3971_v12, %v2992_v26  ;;  %v4176_v28 = vadd.f32 %v4175_v8, %v4093_v22  ;;  %v4406_v14 = vpop.f32.mrf.mxu0 }
 0x1ab   :  { %v4177_v54 = vpop.f32.mrf.mxu1 }
 0x1ac   :  { %v4253_v45 = vadd.f32 %v4252_v2, %v4176_v28  ;;  %v4178_v17 = vadd.f32 %v4177_v54, %v4095_v59  ;;  %v4408_v38 = vpop.f32.mrf.mxu0 }
 0x1ad   :  { %v4328_v19 = vpop.f32.mrf.mxu1 }
 0x1ae   :  { %v4255_v52 = vadd.f32 %v4254_v0, %v4178_v17  ;;  %v4329_v32 = vadd.f32 %v4328_v19, %v4253_v45  ;;  %v4558_v57 = vpop.f32.mrf.mxu0 }
 0x1af   :  { %v4330_v58 = vpop.f32.mrf.mxu1 }
 0x1b0   :  { %v4407_v44 = vadd.f32 %v4406_v14, %v4329_v32  ;;  %v4331_v33 = vadd.f32 %v4330_v58, %v4255_v52  ;;  %v4560_v40 = vpop.f32.mrf.mxu0 }
 0x1b1   :  { %v4480_v11 = vpop.f32.mrf.mxu1 }
 0x1b2   :  { %v4409_v3 = vadd.f32 %v4408_v38, %v4331_v33  ;;  %v4481_v25 = vadd.f32 %v4480_v11, %v4407_v44  ;;  %v4717_v7 = vpop.f32.mrf.mxu0 }
 0x1b3   :  { %v4482_v47 = vpop.f32.mrf.mxu1 }
 0x1b4   :  { %v4950_v26 = vadd.f32 %v4481_v25, %v3973_v36  ;;  %v4483_v22 = vadd.f32 %v4482_v47, %v4409_v3  ;;  %v4719_v60 = vpop.f32.mrf.mxu0 }
 0x1b5   :  { %v4640_v23 = vpop.f32.mrf.mxu1 }
 0x1b6   :  { %v4951_v29 = vadd.f32 %v4483_v22, %v3974_v49  ;;  %v4641_v59 = vadd.f32 %v4640_v23, %v4558_v57  ;;  %v4871_v4 = vpop.f32.mrf.mxu0 }
 0x1b7   :  { %v4642_v53 = vpop.f32.mrf.mxu1 }
 0x1b8   :  { %v4718_v15 = vadd.f32 %v4717_v7, %v4641_v59  ;;  %v4643_v2 = vadd.f32 %v4642_v53, %v4560_v40  ;;  %v4873_v37 = vpop.f32.mrf.mxu0 }
 0x1b9   :  { %v4793_v12 = vpop.f32.mrf.mxu1 }
 0x1ba   :  { %v4720_v0 = vadd.f32 %v4719_v60, %v4643_v2  ;;  %v4794_v8 = vadd.f32 %v4793_v12, %v4718_v15  ;;  %v5077_v28 = vpop.f32.mrf.mxu0 }
 0x1bb   :  { %v4795_v14 = vpop.f32.mrf.mxu1 }
 0x1bc   :  { %v4872_v54 = vadd.f32 %v4871_v4, %v4794_v8  ;;  %v4796_v45 = vadd.f32 %v4795_v14, %v4720_v0  ;;  %v5079_v17 = vpop.f32.mrf.mxu0 }
 0x1bd   :  { %v4945_v38 = vpop.f32.mrf.mxu1 }
 0x1be   :  { %v4874_v36 = vadd.f32 %v4873_v37, %v4796_v45  ;;  %v4946_v19 = vadd.f32 %v4945_v38, %v4872_v54  ;;  %v5236_v52 = vpop.f32.mrf.mxu0 }
 0x1bf   :  { %v4947_v32 = vpop.f32.mrf.mxu1 }
 0x1c0   :  { %v4952_v49 = vadd.f32 %v4946_v19, %v3975_v35  ;;  %v4948_v57 = vadd.f32 %v4947_v32, %v4874_v36  ;;  %v5238_v58 = vpop.f32.mrf.mxu0 }
 0x1c1   :  { %v5159_v44 = vpop.f32.mrf.mxu1 }
 0x1c2   :  { %v4953_v33 = vadd.f32 %v4948_v57, %v3976_v63  ;;  %v5160_v40 = vadd.f32 %v5159_v44, %v5077_v28  ;;  %v5390_v11 = vpop.f32.mrf.mxu0 }
 0x1c3   :  { %v5161_v3 = vpop.f32.mrf.mxu1 }
 0x1c4   :  { %v5237_v25 = vadd.f32 %v5236_v52, %v5160_v40  ;;  %v5162_v7 = vadd.f32 %v5161_v3, %v5079_v17  ;;  %v5392_v47 = vpop.f32.mrf.mxu0 }
 0x1c5   :  { %v5312_v22 = vpop.f32.mrf.mxu1 }
 0x1c6   :  { %v5239_v60 = vadd.f32 %v5238_v58, %v5162_v7  ;;  %v5313_v23 = vadd.f32 %v5312_v22, %v5237_v25  ;;  %v5542_v59 = vpop.f32.mrf.mxu0 }
 0x1c7   :  { %v5314_v4 = vpop.f32.mrf.mxu1 }
 0x1c8   :  { %v5391_v53 = vadd.f32 %v5390_v11, %v5313_v23  ;;  %v5315_v15 = vadd.f32 %v5314_v4, %v5239_v60  ;;  %v5544_v2 = vpop.f32.mrf.mxu0 }
 0x1c9   :  { %v5464_v37 = vpop.f32.mrf.mxu1 }
 0x1ca   :  { %v5393_v35 = vadd.f32 %v5392_v47, %v5315_v15  ;;  %v5465_v12 = vadd.f32 %v5464_v37, %v5391_v53  ;;  %v5701_v0 = vpop.f32.mrf.mxu0 }
 0x1cb   :  { %v5466_v8 = vpop.f32.mrf.mxu1 }
 0x1cc   :  { %v12562_v63 = vadd.f32 %v5465_v12, %v4950_v26  ;;  %v5467_v28 = vadd.f32 %v5466_v8, %v5393_v35  ;;  %v5703_v14 = vpop.f32.mrf.mxu0 }
 0x1cd   :  { %v5624_v54 = vpop.f32.mrf.mxu1 }
 0x1ce   :  { %v12564_v45 = vadd.f32 %v5467_v28, %v4951_v29  ;;  %v5625_v17 = vadd.f32 %v5624_v54, %v5542_v59  ;;  %v5855_v38 = vpop.f32.mrf.mxu0 }
 0x1cf   :  { %v5626_v36 = vpop.f32.mrf.mxu1 }
 0x1d0   :  { %v5702_v19 = vadd.f32 %v5701_v0, %v5625_v17  ;;  %v5627_v52 = vadd.f32 %v5626_v36, %v5544_v2  ;;  %v5857_v32 = vpop.f32.mrf.mxu0 }
 0x1d1   :  { %v5777_v57 = vpop.f32.mrf.mxu1 }
 0x1d2   :  { %v5704_v58 = vadd.f32 %v5703_v14, %v5627_v52  ;;  %v5778_v44 = vadd.f32 %v5777_v57, %v5702_v19  ;;  %v6061_v40 = vpop.f32.mrf.mxu0 }
 0x1d3   :  { %v5779_v11 = vpop.f32.mrf.mxu1 }
 0x1d4   :  { %v5856_v3 = vadd.f32 %v5855_v38, %v5778_v44  ;;  %v5780_v25 = vadd.f32 %v5779_v11, %v5704_v58  ;;  %v6063_v26 = vpop.f32.mrf.mxu0 }
 0x1d5   :  { %v5929_v7 = vpop.f32.mrf.mxu1 }
 0x1d6   :  { %v5858_v47 = vadd.f32 %v5857_v32, %v5780_v25  ;;  %v5930_v22 = vadd.f32 %v5929_v7, %v5856_v3  ;;  %v6220_v60 = vpop.f32.mrf.mxu0 }
 0x1d7   :  { %v5931_v29 = vpop.f32.mrf.mxu1 }
 0x1d8   :  { %v12566_v23 = vadd.f32 %v5930_v22, %v4952_v49  ;;  %v5932_v59 = vadd.f32 %v5931_v29, %v5858_v47  ;;  %v6222_v4 = vpop.f32.mrf.mxu0 }
 0x1d9   :  { %v6143_v53 = vpop.f32.mrf.mxu1 }
 0x1da   :  { %v5937_v15 = vadd.f32 %v5932_v59, %v4953_v33  ;;  %v6374_v2 = vpop.f32.mrf.mxu0 }
 0x1db   :  { %v6145_v37 = vpop.f32.mrf.mxu1 }
 0x1dc   :  { %v12568_v35 = vpop.f32.mrf.mxu0  ;;  %v6146_v62 = vadd.f32 %v6145_v37, %v6063_v26 }
 0x1dd   :  { %v6296_v12 = vpop.f32.mrf.mxu1 }
 0x1de   :  { %v12570_v0 = vpop.f32.mrf.mxu0  ;;  %v6223_v20 = vadd.f32 %v6222_v4, %v6146_v62 }
 0x1df   :  { %v12572_v8 = vpop.f32.mrf.mxu1 }
 0x1e0   :  { %v6528_v28 = vpop.f32.mrf.mxu0  ;;  %v6299_v26 = vadd.f32 %v12572_v8, %v6223_v20 }
 0x1e1   :  { %v12574_v14 = vpop.f32.mrf.mxu1 }
 0x1e2   :  { %v12576_v54 = vpop.f32.mrf.mxu0 }
 0x1e3   :  { %v12578_v49 = vpop.f32.mrf.mxu1 }
 0x1e4   :  { %v6687_v17 = vpop.f32.mrf.mxu0 }
 0x1e5   :  { %v12580_v38 = vpop.f32.mrf.mxu1 }
 0x1e6   :  { %v12582_v33 = vpop.f32.mrf.mxu0 }
 0x1e7   :  { %v6610_v36 = vpop.f32.mrf.mxu1 }
 0x1e8   :  { %v6611_v19 = vadd.f32 %v6610_v36, %v6528_v28  ;;  %v6841_v52 = vpop.f32.mrf.mxu0 }
 0x1e9   :  { %v12584_v32 = vpop.f32.mrf.mxu1 }
 0x1ea   :  { %v6688_v57 = vadd.f32 %v6687_v17, %v6611_v19  ;;  %v7045_v58 = vpop.f32.mrf.mxu0 }
 0x1eb   :  { %v6763_v44 = vpop.f32.mrf.mxu1 }
 0x1ec   :  { %v6764_v11 = vadd.f32 %v6763_v44, %v6688_v57  ;;  %v7047_v3 = vpop.f32.mrf.mxu0 }
 0x1ed   :  { %v12586_v25 = vpop.f32.mrf.mxu1 }
 0x1ee   :  { %v6842_v7 = vadd.f32 %v6841_v52, %v6764_v11  ;;  %v7204_v47 = vpop.f32.mrf.mxu0  ;;  %v6144_v52 = vadd.f32 %v6143_v53, %v6061_v40 }
 0x1ef   :  { %v6915_v22 = vpop.f32.mrf.mxu1 }
 0x1f0   :  { %v6916_v29 = vadd.f32 %v6915_v22, %v6842_v7  ;;  %v7206_v59 = vpop.f32.mrf.mxu0 }
 0x1f1   :  { %v7127_v51 = vpop.f32.mrf.mxu1 }
 0x1f2   :  { %v12588_v18 = vadd.f32 %v6916_v29, %v5937_v15  ;;  %v7358_v42 = vpop.f32.mrf.mxu0  ;;  %v7128_v22 = vadd.f32 %v7127_v51, %v7045_v58  ;;  %v6221_v29 = vadd.f32 %v6220_v60, %v6144_v52 }
 0x1f3   :  { %v7129_v28 = vpop.f32.mrf.mxu1 }
 0x1f4   :  { %v7360_v36 = vpop.f32.mrf.mxu0  ;;  %v7205_v50 = vadd.f32 %v7204_v47, %v7128_v22  ;;  %v6297_v16 = vadd.f32 %v6296_v12, %v6221_v29  ;;  %v7130_v21 = vadd.f32 %v7129_v28, %v7047_v3 }
 0x1f5   :  { %v7280_v1 = vpop.f32.mrf.mxu1 }
 0x1f6   :  { %v7510_v39 = vpop.f32.mrf.mxu0  ;;  %v7281_v51 = vadd.f32 %v7280_v1, %v7205_v50  ;;  %v6375_v60 = vadd.f32 %v6374_v2, %v6297_v16  ;;  %v7207_v5 = vadd.f32 %v7206_v59, %v7130_v21  ;;  %v6377_v2 = vadd.f32 %v12568_v35, %v6299_v26 }
 0x1f7   :  { %v7282_v17 = vpop.f32.mrf.mxu1 }
 0x1f8   :  { %v12590_v19 = vpop.f32.mrf.mxu0  ;;  %v7359_v46 = vadd.f32 %v7358_v42, %v7281_v51  ;;  %v6449_v12 = vadd.f32 %v12574_v14, %v6375_v60  ;;  %v7283_v50 = vadd.f32 %v7282_v17, %v7207_v5  ;;  %v12617_v17 = vpop.permute.xlu0 %8893 }
 0x1f9   :  { %v7432_v57 = vpop.f32.mrf.mxu1 }
 0x1fa   :  { %v12592_v44 = vpop.f32.mrf.mxu0  ;;  %v7433_v62 = vadd.f32 %v7432_v57, %v7359_v46  ;;  %v7361_v59 = vadd.f32 %v7360_v36, %v7283_v50  ;;  %v6451_v46 = vadd.f32 %v12578_v49, %v6377_v2 }
 0x1fb   :  { %v7434_v27 = vpop.f32.mrf.mxu1 }
 0x1fc   :  { %v12594_v11 = vpop.f32.mrf.mxu0 }
 0x1fd   :  { %v7592_v7 = vpop.f32.mrf.mxu1 }
 0x1fe   :  { %v12596_v13 = vpop.f32.mrf.mxu0  ;;  %v7593_v51 = vadd.f32 %v7592_v7, %v7510_v39  ;;  %v6919_v39 = vadd.f32 %v6451_v46, %v12564_v45 }
 0x1ff   :  { %v12598_v15 = vpop.f32.mrf.mxu1 }
 0x200   :  { %v12600_v48 = vpop.f32.mrf.mxu0 }
 0x201   :  { %v12602_v61 = vpop.f32.mrf.mxu1 }
 0x202   :  { %v8029_v56 = vpop.f32.mrf.mxu0 }
 0x203   :  { %v12604_v43 = vpop.f32.mrf.mxu1 }
 0x204   :  { %v8031_v40 = vpop.f32.mrf.mxu0 }
 0x205   :  { %v12606_v53 = vpop.f32.mrf.mxu1 }
 0x206   :  { %v8188_v58 = vpop.f32.mrf.mxu0 }
 0x207   :  { %v12608_v31 = vpop.f32.mrf.mxu1 }
 0x208   :  { %v8190_v52 = vpop.f32.mrf.mxu0 }
 0x209   :  { %v8111_v55 = vpop.f32.mrf.mxu1 }
 0x20a   :  { %v8112_v47 = vadd.f32 %v8111_v55, %v8029_v56  ;;  %v8342_v22 = vpop.f32.mrf.mxu0  ;;  %v6918_v56 = vadd.f32 %v6449_v12, %v12562_v63  ;;  %v6609_v55 = vadd.f32 %v12580_v38, %v12570_v0  ;;  %v7435_v0 = vadd.f32 %v7434_v27, %v7361_v59 }
 0x20b   :  { %v8113_v37 = vpop.f32.mrf.mxu1  ;;  %v7670_v38 = vadd.f32 %v12592_v44, %v7593_v51  ;;  %v7595_v27 = vadd.f32 %v12598_v15, %v12590_v19  ;;  %v9037_v51 = vld [vmem:[%s13572_s4] sm:$0xff] }
 0x20c   :  { %v8189_v29 = vadd.f32 %v8188_v58, %v8112_v47  ;;  %v8114_v34 = vadd.f32 %v8113_v37, %v8031_v40  ;;  %v8344_v3 = vpop.f32.mrf.mxu0  ;;  %v7902_v40 = vadd.f32 %v7433_v62, %v6918_v56  ;;  %v6686_v35 = vadd.f32 %v12576_v54, %v6609_v55 }
 0x20d   :  { %v8264_v1 = vpop.f32.mrf.mxu1  ;;  %v7903_v12 = vadd.f32 %v7435_v0, %v6919_v39  ;;  %v7746_v44 = vadd.f32 %v12602_v61, %v7670_v38  ;;  %v7672_v62 = vadd.f32 %v12594_v11, %v7595_v27 }
 0x20e   :  { %v8191_v4 = vadd.f32 %v8190_v52, %v8114_v34  ;;  %v8265_v28 = vadd.f32 %v8264_v1, %v8189_v29  ;;  %v8494_v16 = vpop.f32.mrf.mxu0  ;;  %v6762_v49 = vadd.f32 %v12584_v32, %v6686_v35 }
 0x20f   :  { %v8266_v21 = vpop.f32.mrf.mxu1 }
 0x210   :  { %v8343_v20 = vadd.f32 %v8342_v22, %v8265_v28  ;;  %v8267_v42 = vadd.f32 %v8266_v21, %v8191_v4  ;;  %v8496_v14 = vpop.f32.mrf.mxu0  ;;  %v6840_v45 = vadd.f32 %v12582_v33, %v6762_v49  ;;  %v7824_v4 = vadd.f32 %v12596_v13, %v7746_v44  ;;  %v11398_v49 = vld [vmem:[%s13573_s5 + $0x20] ss:$0 sm:$0xff] }
 0x211   :  { %v8416_v8 = vpop.f32.mrf.mxu1 }
 0x212   :  { %v8417_v5 = vadd.f32 %v8416_v8, %v8343_v20  ;;  %v8345_v57 = vadd.f32 %v8344_v3, %v8267_v42  ;;  %v8653_v60 = vpop.f32.mrf.mxu0  ;;  %v6914_v61 = vadd.f32 %v12586_v25, %v6840_v45  ;;  %v7898_v2 = vadd.f32 %v12606_v53, %v7824_v4 }
 0x213   :  { %v8418_v34 = vpop.f32.mrf.mxu1 }
 0x214   :  { %v8886_v63 = vadd.f32 %v8417_v5, %v7902_v40  ;;  %v8419_v47 = vadd.f32 %v8418_v34, %v8345_v57  ;;  %v8655_v54 = vpop.f32.mrf.mxu0  ;;  %v6920_v13 = vadd.f32 %v6914_v61, %v12566_v23 }
 0x215   :  { %v8576_v58 = vpop.f32.mrf.mxu1 }
 0x216   :  { %v8896_v52 = vadd.f32 %v12617_v17, %v8886_v63  ;;  %v8577_v36 = vadd.f32 %v8576_v58, %v8494_v16  ;;  %v8887_v32 = vadd.f32 %v8419_v47, %v7903_v12  ;;  %v7748_v16 = vadd.f32 %v12604_v43, %v7672_v62 }
 0x217   :  { %v8578_v7 = vpop.f32.mrf.mxu1  ;;  %v8807_v50 = vpop.f32.mrf.mxu0  ;;  %v7904_v20 = vadd.f32 %v7898_v2, %v6920_v13  ;;  %v11399_v2 = vld [vmem:[%s13573_s5 + $0x28] ss:$0 sm:$0xff] }
 0x218   :  { %v12624_v22 = vmax.f32 %v8896_v52, 0.0  ;;  %v8654_v26 = vadd.f32 %v8653_v60, %v8577_v36  ;;  %v8579_v29 = vadd.f32 %v8578_v7, %v8496_v14  ;;  %v8897_v19 = vadd.f32 %v12617_v17, %v8887_v32 }
 0x219   :  { %v8729_v37 = vpop.f32.mrf.mxu1  ;;  %v8809_v56 = vpop.f32.mrf.mxu0  ;;  %v7826_v55 = vadd.f32 %v12600_v48, %v7748_v16 }
 0x21a   :  { %9004 = vrot.lane.b32.xlu1 %v12624_v22, %s11433_s15  ;;  %9020 = vrot.lane.b32.xlu0 %v12624_v22, %s11434_s16  ;;  %v8730_v3 = vadd.f32 %v8729_v37, %v8654_v26  ;;  %v8656_v33 = vadd.f32 %v8655_v54, %v8579_v29  ;;  %v8901_v11 = vmax.f32 %v8897_v19, 0.0  ;;  %v8968_v36 = vmul.f32 %v12624_v22, %v11924_v9  ;;  %v9036_v19 = vld [vmem:[%s13571_s3] sm:$0xff] }
 0x21b   :  { %v8731_v1 = vpop.f32.mrf.mxu1  ;;  %v7900_v8 = vadd.f32 %v12608_v31, %v7826_v55 }
 0x21c   :  { %v8808_v15 = vadd.f32 %v8807_v50, %v8730_v3  ;;  %v8732_v21 = vadd.f32 %v8731_v1, %v8656_v33  ;;  %v8969_v52 = vmul.f32 %v8901_v11, %v11928_v6  ;;  %v12736_v37 = vand.u32 4294901760, %v8968_v36 }
 0x21d   :  { %v8881_v28 = vpop.f32.mrf.mxu1  ;;  %v7905_v48 = vadd.f32 %v7900_v8, %v12588_v18 }
 0x21e   :  { %8972 = vrot.lane.b32.xlu1 %v12624_v22, %s11431_s13  ;;  %8988 = vrot.lane.b32.xlu0 %v12624_v22, %s11432_s14  ;;  %v8882_v25 = vadd.f32 %v8881_v28, %v8808_v15  ;;  %v8810_v43 = vadd.f32 %v8809_v56, %v8732_v21  ;;  %v12734_v6 = vand.u32 4294901760, %v8969_v52 }
 0x21f   :  { %v8883_v42 = vpop.f32.mrf.mxu1 }
 0x220   :  { %v8888_v53 = vadd.f32 %v8882_v25, %v7904_v20  ;;  %v8884_v14 = vadd.f32 %v8883_v42, %v8810_v43  ;;  %v12757_v3 = vsub.f32 %v8969_v52, %v12734_v6  ;;  %v13671_v20 = vld [vmem:[#allocation19_spill] sm:$0xff]  ;;  %v9045_v42 = vsel %vm9043_vm10, %v9036_v19, 0 }
 0x221   :  { %v13673_v52 = vld [vmem:[#allocation15_spill] sm:$0xff] }
 0x222   :  { %8936 = vrot.lane.b32.xlu1 %v12624_v22, %s11429_s11  ;;  %8952 = vrot.lane.b32.xlu0 %v12624_v22, %s11430_s12  ;;  %v8898_v23 = vadd.f32 %v12617_v17, %v8888_v53  ;;  %v8889_v40 = vadd.f32 %v8884_v14, %v7905_v48  ;;  %v13610_v25 = vand.u32 4294901760, %v12757_v3 }
 0x224   :  { %v12660_v59 = vmax.f32 %v8898_v23, 0.0  ;;  %v8899_v31 = vadd.f32 %v12617_v17, %v8889_v40 }
 0x226   :  { %9022 = vrot.lane.b32.xlu1 %v8901_v11, %s11434_s16  ;;  %8920 = vrot.lane.b32.xlu0 %v12624_v22, %s11426_s9  ;;  %v12670_v18 = vmax.f32 %v8899_v31, 0.0 }
 0x22a   :  { %9006 = vrot.lane.b32.xlu1 %v8901_v11, %s11433_s15  ;;  %8990 = vrot.lane.b32.xlu0 %v8901_v11, %s11432_s14 }
 0x22e   :  { %8974 = vrot.lane.b32.xlu1 %v8901_v11, %s11431_s13  ;;  %8938 = vrot.lane.b32.xlu0 %v8901_v11, %s11429_s11 }
 0x232   :  { %8954 = vrot.lane.b32.xlu1 %v8901_v11, %s11430_s12  ;;  %9008 = vrot.lane.b32.xlu0 %v12660_v59, %s11433_s15 }
 0x236   :  { %9024 = vrot.lane.b32.xlu1 %v12660_v59, %s11434_s16  ;;  %8976 = vrot.lane.b32.xlu0 %v12660_v59, %s11431_s13 }
 0x23a   :  { %8992 = vrot.lane.b32.xlu1 %v12660_v59, %s11432_s14  ;;  %8958 = vrot.lane.b32.xlu0 %v12670_v18, %s11430_s12 }
 0x23e   :  { %8922 = vrot.lane.b32.xlu1 %v8901_v11, %s11426_s9  ;;  %8926 = vrot.lane.b32.xlu0 %v12670_v18, %s11426_s9 }
 0x242   :  { %8904 = vrot.lane.b32.xlu1 %v12624_v22, %s11428_s10  ;;  %8906 = vrot.lane.b32.xlu0 %v8901_v11, %s11428_s10  ;;  %v13670_v11 = vld [vmem:[#allocation25_spill] sm:$0xff] }
 0x246   :  { %8942 = vrot.lane.b32.xlu1 %v12670_v18, %s11429_s11  ;;  %9026 = vrot.lane.b32.xlu0 %v12670_v18, %s11434_s16 }
 0x24a   :  { %8910 = vrot.lane.b32.xlu1 %v12670_v18, %s11428_s10  ;;  %8994 = vrot.lane.b32.xlu0 %v12670_v18, %s11432_s14 }
 0x24e   :  { %9010 = vrot.lane.b32.xlu1 %v12670_v18, %s11433_s15  ;;  %8956 = vrot.lane.b32.xlu0 %v12660_v59, %s11430_s12 }
 0x252   :  { %8978 = vrot.lane.b32.xlu1 %v12670_v18, %s11431_s13  ;;  %8924 = vrot.lane.b32.xlu0 %v12660_v59, %s11426_s9 }
 0x256   :  { %8940 = vrot.lane.b32.xlu1 %v12660_v59, %s11429_s11  ;;  %9040 = vperm.xlu0 %11390, %v9037_v51  }
 0x25a   :  { %8908 = vrot.lane.b32.xlu1 %v12660_v59, %s11428_s10 }
 0x28c   :  { %v12705_v5 = vpop.permute.xlu1 %9004  ;;  %v12707_v46 = vpop.permute.xlu0 %9020 }
 0x290   :  { %v12709_v34 = vpop.permute.xlu1 %8972  ;;  %v12711_v17 = vpop.permute.xlu0 %8988 }
 0x294   :  { %v12713_v35 = vpop.permute.xlu1 %8936  ;;  %v8953_v57 = vpop.permute.xlu0 %8952 }
 0x298   :  { %v9023_v63 = vpop.permute.xlu1 %9022  ;;  %v12715_v58 = vpop.permute.xlu0 %8920 }
 0x299   :  { %v9030_v38 = vsel %vm7914_vm9, %v12707_v46, %v9023_v63 }
 0x29a   :  { %v9032_v47 = vmul.f32 %v11398_v49, %v9030_v38  ;;  %v13674_v49 = vld [vmem:[#allocation29_spill] sm:$0xff] }
 0x29c   :  { %v9007_v60 = vpop.permute.xlu1 %9006  ;;  %v8991_v0 = vpop.permute.xlu0 %8990  ;;  %v12743_v27 = vand.u32 4294901760, %v9032_v47 }
 0x29d   :  { %v9014_v26 = vsel %vm6930_vm8, %v12705_v5, %v9007_v60  ;;  %v8998_v54 = vsel %vm5946_vm7, %v12711_v17, %v8991_v0 }
 0x29e   :  { %v9016_v9 = vmul.f32 %v9014_v26, %v12307_v24  ;;  %v9000_v44 = vmul.f32 %v8998_v54, %v12186_v30  ;;  %v12754_v24 = vsub.f32 %v8968_v36, %v12736_v37  ;;  %v13669_v30 = vld [vmem:[#allocation26_spill] sm:$0xff]  ;;  %v12775_v33 = vsub.f32 %v9032_v47, %v12743_v27  ;;  %v13675_v26 = vld [vmem:[#allocation20_spill] sm:$0xff] }
 0x2a0   :  { %v8975_v39 = vpop.permute.xlu1 %8974  ;;  %v12723_v7 = vpop.permute.xlu0 %8938  ;;  %v12759_v1 = vand.u32 4294901760, %v9016_v9  ;;  %v12777_v15 = vand.u32 4294901760, %v9000_v44  ;;  %v13609_v56 = vand.u32 4294901760, %v12754_v24  ;;  %v13612_v51 = vand.u32 4294901760, %v12775_v33 }
 0x2a1   :  { %13667 = vst [vmem:[#allocation34_spill] sm:$0xff] %v12723_v7  ;;  %v8982_v45 = vsel %vm4962_vm6, %v12709_v34, %v8975_v39  ;;  %v8946_v55 = vsel %vm2017_vm4, %v12713_v35, %v12723_v7 }
 0x2a2   :  { %v8984_v50 = vmul.f32 %v8982_v45, %v13669_v30  ;;  %v12801_v8 = vsub.f32 %v9016_v9, %v12759_v1  ;;  %v8949_v36 = vmul.f32 %v8946_v55, %v13673_v52 }
 0x2a4   :  { %v12739_v22 = vpop.permute.xlu1 %8954  ;;  %v12741_v12 = vpop.permute.xlu0 %9008  ;;  %v12803_v23 = vand.u32 4294901760, %v8984_v50  ;;  %v13614_v45 = vand.u32 4294901760, %v12801_v8 }
 0x2a5   :  { %13668 = vst [vmem:[#allocation35_spill] sm:$0xff] %v12739_v22  ;;  %v9013_v32 = vsel %vm6930_vm8, %v9007_v60, %v12741_v12  ;;  %v8962_v62 = vsel %vm3001_vm5, %v8953_v57, %v12739_v22  ;;  %v13682_v22 = vld [vmem:[#allocation7_spill] sm:$0xff] }
 0x2a6   :  { %v9017_v29 = vmul.f32 %v9013_v32, %v12289_v41  ;;  %v8965_v43 = vmul.f32 %v8962_v62, %v13671_v20  ;;  %v12841_v32 = vsub.f32 %v8984_v50, %v12803_v23  ;;  %v12860_v50 = vsub.f32 %v12754_v24, %v13609_v56 }
 0x2a8   :  { %v12765_v4 = vand.u32 4294901760, %v9017_v29  ;;  %v12767_v61 = vpop.permute.xlu1 %9024  ;;  %v12769_v41 = vpop.permute.xlu0 %8976  ;;  %v12830_v9 = vand.u32 4294901760, %v8965_v43 }
 0x2a9   :  { %v9029_v28 = vsel %vm7914_vm9, %v9023_v63, %v12767_v61  ;;  %v8981_v16 = vsel %vm4962_vm6, %v8975_v39, %v12769_v41  ;;  %v12815_v63 = vsub.f32 %v9000_v44, %v12777_v15 }
 0x2aa   :  { %v9033_v13 = vmul.f32 %v11399_v2, %v9029_v28  ;;  %v8985_v21 = vmul.f32 %v8981_v16, %v13670_v11  ;;  %v12797_v53 = vsub.f32 %v9017_v29, %v12765_v4  ;;  %v9164_v16 = vsub.f32 %v12775_v33, %v13612_v51 }
 0x2ab   :  { %v13618_v2 = vand.u32 4294901760, %v12815_v63  ;;  %v12875_v55 = vsub.f32 %v8965_v43, %v12830_v9  ;;  %v9176_v43 = vsub.f32 %v12801_v8, %v13614_v45 }
 0x2ac   :  { %v12805_v14 = vand.u32 4294901760, %v9033_v13  ;;  %v12807_v48 = vand.u32 4294901760, %v8985_v21  ;;  %v12809_v40 = vpop.permute.xlu1 %8992  ;;  %v12811_v31 = vpop.permute.xlu0 %8958 }
 0x2ad   :  { %13672 = vst [vmem:[#allocation26_spill] sm:$0xff] %v12811_v31  ;;  %v8997_v60 = vsel %vm5946_vm7, %v8991_v0, %v12809_v40  ;;  %v8963_v38 = vsel %vm3001_vm5, %v12811_v31, %v8953_v57  ;;  %v13611_v57 = vand.u32 4294901760, %v12797_v53  ;;  %v12837_v0 = vand.u32 4294901760, %v9045_v42 }
 0x2ae   :  { %v12825_v39 = vsub.f32 %v9033_v13, %v12805_v14  ;;  %v9001_v47 = vmul.f32 %v8997_v60, %v13674_v49  ;;  %v8964_v54 = vmul.f32 %v8963_v38, %v13675_v26  ;;  %9062 = vmatprep.subr.mxu0 %v12805_v14  ;;  %v12833_v44 = vsub.f32 %v8985_v21, %v12807_v48 }
 0x2af   :  { %9064 = vmatpush1.msra.mxu0 %v12743_v27  ;;  %v12863_v13 = vand.u32 4294901760, %v8949_v36  ;;  %v12872_v21 = vsub.f32 %v12757_v3, %v13610_v25  ;;  %v9170_v60 = vsub.f32 %v12797_v53, %v13611_v57  ;;  %v12894_v56 = vsub.f32 %v9045_v42, %v12837_v0 }
 0x2b0   :  { %v12843_v29 = vand.u32 4294901760, %v9001_v47  ;;  %v12845_v30 = vpop.permute.xlu1 %8922  ;;  %9066 = vmatprep.subr.mxu0 %v12765_v4  ;;  %v12848_v62 = vpop.permute.xlu0 %8926  ;;  %v13613_v19 = vand.u32 4294901760, %v12825_v39  ;;  %v12851_v28 = vand.u32 4294901760, %v8964_v54  ;;  %v13623_v38 = vand.u32 4294901760, %v12833_v44 }
 0x2b1   :  { %13676 = vst [vmem:[#allocation25_spill] sm:$0xff] %v12845_v30  ;;  %13677 = vst [vmem:[#allocation19_spill] sm:$0xff] %v12848_v62  ;;  %9068 = vmatpush1.msra.mxu0 %v12759_v1  ;;  %v8930_v57 = vsel %vm90_vm1, %v12715_v58, %v12845_v30  ;;  %v12905_v52 = vsub.f32 %v8949_v36, %v12863_v13  ;;  %v8931_v42 = vsel %vm90_vm1, %v12848_v62, %v12715_v58  ;;  %v13679_v30 = vld [vmem:[#allocation8_spill] sm:$0xff] }
 0x2b2   :  { %v12866_v11 = vsub.f32 %v9001_v47, %v12843_v29  ;;  %9070 = vmatprep.subr.mxu0 %v12843_v29  ;;  %v9158_v20 = vsub.f32 %v12825_v39, %v13613_v19  ;;  %v12897_v25 = vsub.f32 %v8964_v54, %v12851_v28  ;;  %v9165_v19 = vand.u32 4294901760, %v9164_v16 }
 0x2b3   :  { %9072 = vmatpush1.msra.mxu0 %v12777_v15  ;;  %v9188_v45 = vsub.f32 %v12815_v63, %v13618_v2  ;;  %v9171_v16 = vand.u32 4294901760, %v9170_v60  ;;  %v9194_v58 = vsub.f32 %v12833_v44, %v13623_v38  ;;  %v9177_v2 = vand.u32 4294901760, %v9176_v43 }
 0x2b4   :  { %v8905_v49 = vpop.permute.xlu1 %8904  ;;  %9074 = vmatprep.subr.mxu0 %v12807_v48  ;;  %v12887_v47 = vpop.permute.xlu0 %8906  ;;  %v13616_v26 = vand.u32 4294901760, %v12866_v11  ;;  %v9159_v51 = vand.u32 4294901760, %v9158_v20  ;;  %v13624_v20 = vand.u32 4294901760, %v12875_v55  ;;  %v8932_v31 = vmul.f32 %v8931_v42, %v13682_v22 }
 0x2b5   :  { %13678 = vst [vmem:[#allocation15_spill] sm:$0xff] %v12887_v47  ;;  %9076 = vmatpush1.msra.mxu0 %v12803_v23  ;;  %v8914_v36 = vsel %vm56_vm3, %v8905_v49, %v12887_v47  ;;  %v13628_v60 = vand.u32 4294901760, %v12905_v52  ;;  %v9195_v22 = vand.u32 4294901760, %v9194_v58  ;;  %v13685_v58 = vand.u32 4294901760, %v12897_v25 }
 0x2b6   :  { %9078 = vmatprep.subr.mxu0 %v12734_v6  ;;  %v9182_v54 = vsub.f32 %v12866_v11, %v13616_v26  ;;  %9160 = vmatprep.subr.mxu1 %v9159_v51  ;;  %v8933_v26 = vmul.f32 %v8930_v57, %v13679_v30  ;;  %v13681_v51 = vand.u32 4294901760, %v12841_v32  ;;  %v12941_v30 = vand.u32 4294901760, %v12894_v56 }
 0x2b7   :  { %9080 = vmatpush1.msra.mxu0 %v12736_v37  ;;  %9166 = vmatpush1.msra.mxu1 %v9165_v19  ;;  %v13683_v19 = vld [vmem:[#allocation11_spill] sm:$0xff] }
 0x2b8   :  { %v12927_v62 = vpop.permute.xlu1 %8942  ;;  %9082 = vmatprep.subr.mxu0 %v12830_v9  ;;  %v9183_v7 = vand.u32 4294901760, %v9182_v54  ;;  %v9200_v47 = vsub.f32 %v12841_v32, %v13681_v51  ;;  %9172 = vmatprep.subr.mxu1 %v9171_v16  ;;  %v8917_v43 = vmul.f32 %v8914_v36, %v13683_v19  ;;  %v13684_v54 = vld [vmem:[#allocation16_spill] sm:$0xff]  ;;  %v9189_v51 = vand.u32 4294901760, %v9188_v45 }
 0x2b9   :  { %13680 = vst [vmem:[#allocation29_spill] sm:$0xff] %v12927_v62  ;;  %v8947_v57 = vsel %vm2017_vm4, %v12927_v62, %v12713_v35  ;;  %9084 = vmatpush1.msra.mxu0 %v12851_v28  ;;  %9178 = vmatpush1.msra.mxu1 %v9177_v2  ;;  %v9218_v35 = vsub.f32 %v12875_v55, %v13624_v20  ;;  %v12950_v42 = vand.u32 4294901760, %v8933_v26  ;;  %v9207_v45 = vand.u32 4294901760, %v12872_v21  ;;  %v13686_v20 = vld [vmem:[#allocation12_spill] sm:$0xff] }
 0x2ba   :  { %v8948_v38 = vmul.f32 %v8947_v57, %v13684_v54  ;;  %9086 = vmatprep.subr.mxu0 %v12863_v13  ;;  %9184 = vmatprep.subr.mxu1 %v9183_v7  ;;  %v9201_v57 = vand.u32 4294901760, %v9200_v47  ;;  %v12957_v2 = vand.u32 4294901760, %v8932_v31  ;;  %v9224_v19 = vsub.f32 %v12897_v25, %v13685_v58 }
 0x2bb   :  { %9190 = vmatpush1.msra.mxu1 %v9189_v51  ;;  %v9133_v54 = vsub.f32 %v12894_v56, %v12941_v30  ;;  %v12967_v51 = vand.u32 4294901760, %v8917_v43  ;;  %v9213_v21 = vand.u32 4294901760, %v12860_v50  ;;  %v9230_v62 = vsub.f32 %v12905_v52, %v13628_v60 }
 0x2bc   :  { %v12952_v16 = vand.u32 4294901760, %v8948_v38  ;;  %v12954_v36 = vpop.permute.xlu1 %8910  ;;  %9196 = vmatprep.subr.mxu1 %v9195_v22  ;;  %v12976_v22 = vsub.f32 %v8933_v26, %v12950_v42 }
 0x2bd   :  { %v8915_v7 = vsel %vm56_vm3, %v12954_v36, %v8905_v49  ;;  %9202 = vmatpush1.msra.mxu1 %v9201_v57  ;;  %v9219_v49 = vand.u32 4294901760, %v9218_v35  ;;  %v9225_v57 = vand.u32 4294901760, %v9224_v19  ;;  %v12991_v26 = vsub.f32 %v8917_v43, %v12967_v51 }
 0x2be   :  { %v8916_v47 = vmul.f32 %v8915_v7, %v13686_v20  ;;  %9088 = vmatpush1.msra.mxu0 %v12952_v16  ;;  %9208 = vmatprep.subr.mxu1 %v9207_v45  ;;  %v12982_v20 = vsub.f32 %v8932_v31, %v12957_v2  ;;  %v12985_v50 = vsub.f32 %v8948_v38, %v12952_v16  ;;  %v12988_v45 = vand.u32 4294901760, %v9133_v54 }
 0x2bf   :  { %9090 = vmatprep.subr.mxu0 %v12950_v42  ;;  %9214 = vmatpush1.msra.mxu1 %v9213_v21  ;;  %v9231_v35 = vand.u32 4294901760, %v9230_v62  ;;  %v13626_v31 = vand.u32 4294901760, %v12976_v22  ;;  %v13630_v62 = vand.u32 4294901760, %v12991_v26  ;;  %v13687_v43 = vmov 0.0  }
 0x2c0   :  { %v12978_v58 = vand.u32 4294901760, %v8916_v47  ;;  %9092 = vmatpush1.msra.mxu0 %v12957_v2  ;;  %9220 = vmatprep.subr.mxu1 %v9219_v49  ;;  %v13629_v38 = vand.u32 4294901760, %v12982_v20  ;;  %v13627_v7 = vand.u32 4294901760, %v12985_v50 }
 0x2c1   :  { %9094 = vmatprep.subr.mxu0 %v12967_v51  ;;  %9226 = vmatpush1.msra.mxu1 %v9225_v57  ;;  %v9242_v54 = vsub.f32 %v12976_v22, %v13626_v31  ;;  %v9254_v57 = vsub.f32 %v12991_v26, %v13630_v62 }
 0x2c2   :  { %9096 = vmatpush1.msra.mxu0 %v12978_v58  ;;  %9232 = vmatprep.subr.mxu1 %v9231_v35  ;;  %v12999_v19 = vsub.f32 %v8916_v47, %v12978_v58  ;;  %v9236_v21 = vsub.f32 %v12985_v50, %v13627_v7  ;;  %v9248_v49 = vsub.f32 %v12982_v20, %v13629_v38  ;;  %v10394_v35 = vld [vmem:[%s13575_s7] sm:$0xff] }
 0x2c3   :  { %9135 = vmatmul.mubr.f32.vlgmr.msra.gmra.mxu0 %v12988_v45  ;;  %9319 = vmatprep.subr.mxu0 %v12825_v39  ;;  %v9243_v7 = vand.u32 4294901760, %v9242_v54  ;;  %v9255_v62 = vand.u32 4294901760, %v9254_v57  ;;  %v13691_v54 = vand.u32 4294901760, %v12801_v8  ;;  %v13694_v57 = vld [vmem:[#allocation23_spill] sm:$0xff] }
 0x2c4   :  { %9322 = vmatpush1.msra.mxu0 %v12775_v33  ;;  %9403 = vmatprep.mubr.f32.mxu0 %v13687_v43  ;;  %v9259_v47 = vand.u32 4294901760, %v12999_v19  ;;  %v9237_v31 = vand.u32 4294901760, %v9236_v21  ;;  %v9249_v60 = vand.u32 4294901760, %v9248_v49  ;;  %v13692_v49 = vand.u32 4294901760, %v12866_v11 }
 0x2c5   :  { %9325 = vmatprep.subr.mxu0 %v12797_v53  ;;  %10397 = vperm.xlu1 %11391, %v10394_v35   ;;  %v8970_v35 = vmul.f32 %v12660_v59, %v13694_v57 }
 0x2c6   :  { %9328 = vmatpush1.msra.mxu0 %v12801_v8  ;;  %9238 = vmatpush1.msra.mxu1 %v9237_v31  ;;  %v9260_v38 = vsub.f32 %v12999_v19, %v9259_v47  ;;  %v13688_v31 = vand.u32 4294901760, %v12825_v39 }
 0x2c7   :  { %9331 = vmatprep.subr.mxu0 %v12866_v11  ;;  %9244 = vmatprep.subr.mxu1 %v9243_v7  ;;  %v13689_v7 = vand.u32 4294901760, %v12775_v33  ;;  %v13696_v11 = vld [vmem:[#allocation24_spill] sm:$0xff] }
 0x2c8   :  { %9334 = vmatpush1.msra.mxu0 %v12815_v63  ;;  %9250 = vmatpush1.msra.mxu1 %v9249_v60  ;;  %v9261_v21 = vand.u32 4294901760, %v9260_v38  ;;  %v9027_v60 = vpop.permute.xlu0 %9026  ;;  %v9011_v38 = vpop.permute.xlu1 %9010 }
 0x2c9   :  { %9337 = vmatprep.subr.mxu0 %v12833_v44  ;;  %9256 = vmatprep.subr.mxu1 %v9255_v62  ;;  %v13690_v62 = vand.u32 4294901760, %v12797_v53  ;;  %v9028_v39 = vsel %vm7914_vm9, %v12767_v61, %v9027_v60  ;;  %v13693_v53 = vand.u32 4294901760, %v12815_v63  ;;  %v9031_v8 = vsel %vm7914_vm9, %v9027_v60, %v12707_v46  ;;  %v11400_v63 = vld [vmem:[%s13573_s5 + $0x30] ss:$0 sm:$0xff] }
 0x2ca   :  { %9340 = vmatpush1.msra.mxu0 %v12841_v32  ;;  %9262 = vmatpush1.msra.mxu1 %v9261_v21  ;;  %v13695_v61 = vand.u32 4294901760, %v12833_v44  ;;  %v8971_v21 = vmul.f32 %v12670_v18, %v13696_v11  ;;  %v9015_v59 = vsel %vm6930_vm8, %v9011_v38, %v12705_v5  ;;  %v13697_v46 = vand.u32 4294901760, %v12841_v32  ;;  %v11401_v18 = vld [vmem:[%s13573_s5 + $0x38] ss:$0 sm:$0xff] }
 0x2cb   :  { %9343 = vmatprep.subr.mxu0 %v12757_v3  ;;  %9297 = vmatmul.mubr.f32.vlgmr.msra.gmra.mxu1 %v12837_v0  ;;  %v9035_v44 = vmul.f32 %v11401_v18, %v9031_v8  ;;  %v9012_v60 = vsel %vm6930_vm8, %v12741_v12, %v9011_v38  ;;  %v13101_v5 = vand.u32 4294901760, %v8970_v35  ;;  %v13702_v8 = vand.u32 4294901760, %v12875_v55 }
 0x2cc   :  { %9346 = vmatpush1.msra.mxu0 %v12754_v24  ;;  %9427 = vmatprep.subr.mxu1 %v12805_v14  ;;  %v8995_v33 = vpop.permute.xlu0 %8994 }
 0x2cd   :  { %9349 = vmatprep.subr.mxu0 %v12875_v55  ;;  %9429 = vmatpush1.msra.mxu1 %v12743_v27  ;;  %v8999_v32 = vsel %vm5946_vm7, %v8995_v33, %v12711_v17  ;;  %v8996_v12 = vsel %vm5946_vm7, %v12809_v40, %v8995_v33  ;;  %v13701_v17 = vld [vmem:[#allocation33_spill] sm:$0xff]  ;;  %v13703_v40 = vld [vmem:[#allocation30_spill] sm:$0xff] }
 0x2ce   :  { %9352 = vmatpush1.msra.mxu0 %v12897_v25  ;;  %9431 = vmatprep.subr.mxu1 %v12765_v4  ;;  %v9018_v57 = vmul.f32 %v9012_v60, %v13701_v17  ;;  %v9003_v33 = vmul.f32 %v8999_v32, %v13703_v40 }
 0x2cf   :  { %9355 = vmatprep.subr.mxu0 %v12905_v52  ;;  %9433 = vmatpush1.msra.mxu1 %v12759_v1 }
 0x2d0   :  { %9358 = vmatpush1.msra.mxu0 %v12985_v50  ;;  %9435 = vmatprep.subr.mxu1 %v12843_v29  ;;  %v13166_v32 = vand.u32 4294901760, %v9003_v33 }
 0x2d1   :  { %9361 = vmatprep.subr.mxu0 %v12976_v22  ;;  %9437 = vmatpush1.msra.mxu1 %v12777_v15 }
 0x2d2   :  { %9364 = vmatpush1.msra.mxu0 %v12982_v20  ;;  %9439 = vmatprep.subr.mxu1 %v12807_v48 }
 0x2d3   :  { %9367 = vmatprep.subr.mxu0 %v12991_v26  ;;  %9441 = vmatpush1.msra.mxu1 %v12803_v23 }
 0x2d4   :  { %9370 = vmatpush1.msra.mxu0 %v12999_v19  ;;  %9443 = vmatprep.subr.mxu1 %v12734_v6  ;;  %v13720_v19 = vld [vmem:[#allocation25_spill] sm:$0xff] }
 0x2d5   :  { %9406 = vmatmul.mubr.f32.vlgmr.msra.gmra.mxu0 %v12894_v56  ;;  %9521 = vmatprep.subr.mxu0 %v13688_v31  ;;  %v9034_v31 = vmul.f32 %v11400_v63, %v9028_v39  ;;  %v13109_v39 = vand.u32 4294901760, %v8971_v21  ;;  %v13704_v63 = vand.u32 4294901760, %v12897_v25  ;;  %v13707_v25 = vld [vmem:[#allocation26_spill] sm:$0xff] }
 0x2d6   :  { %9525 = vmatpush1.msra.mxu0 %v13689_v7  ;;  %9445 = vmatpush1.msra.mxu1 %v12736_v37  ;;  %v8979_v7 = vpop.permute.xlu1 %8978 }
 0x2d7   :  { %9529 = vmatprep.subr.mxu0 %v13690_v62  ;;  %9447 = vmatprep.subr.mxu1 %v12830_v9  ;;  %v13698_v62 = vand.u32 4294901760, %v12757_v3  ;;  %v13700_v3 = vld [vmem:[#allocation32_spill] sm:$0xff]  ;;  %v8980_v11 = vsel %vm4962_vm6, %v12769_v41, %v8979_v7 }
 0x2d8   :  { %9533 = vmatpush1.msra.mxu0 %v13691_v54  ;;  %9449 = vmatpush1.msra.mxu1 %v12851_v28  ;;  %v13699_v54 = vand.u32 4294901760, %v12754_v24  ;;  %v9019_v38 = vmul.f32 %v9015_v59, %v13700_v3  ;;  %v8983_v24 = vsel %vm4962_vm6, %v8979_v7, %v12709_v34  ;;  %v13136_v34 = vsub.f32 %v8970_v35, %v13101_v5  ;;  %v13708_v7 = vld [vmem:[#allocation27_spill] sm:$0xff] }
 0x2d9   :  { %9537 = vmatprep.subr.mxu0 %v13692_v49  ;;  %9451 = vmatprep.subr.mxu1 %v12863_v13  ;;  %v13111_v49 = vand.u32 4294901760, %v9034_v31  ;;  %v13706_v59 = vand.u32 4294901760, %v12905_v52  ;;  %v8987_v18 = vmul.f32 %v8983_v24, %v13708_v7  ;;  %v13157_v52 = vand.u32 4294901760, %v9018_v57 }
 0x2da   :  { %9541 = vmatpush1.msra.mxu0 %v13693_v53  ;;  %9453 = vmatpush1.msra.mxu1 %v12952_v16  ;;  %v8957_v53 = vpop.permute.xlu0 %8956 }
 0x2db   :  { %9545 = vmatprep.subr.mxu0 %v13695_v61  ;;  %9455 = vmatprep.subr.mxu1 %v12950_v42  ;;  %v13126_v61 = vand.u32 4294901760, %v9035_v44  ;;  %v13146_v41 = vsub.f32 %v9034_v31, %v13111_v49  ;;  %v8960_v35 = vsel %vm3001_vm5, %v8957_v53, %v13707_v25  ;;  %v13711_v31 = vand.u32 4294901760, %v12976_v22  ;;  %v13714_v22 = vld [vmem:[#allocation21_spill] sm:$0xff] }
 0x2dc   :  { %9494 = vmatprep.mubr.f32.mxu1 %v13687_v43  ;;  %9457 = vmatpush1.msra.mxu1 %v12957_v2  ;;  %v8967_v17 = vmul.f32 %v8960_v35, %v13714_v22  ;;  %v13189_v40 = vand.u32 4294901760, %v8987_v18 }
 0x2dd   :  { %9549 = vmatpush1.msra.mxu0 %v13697_v46  ;;  %9459 = vmatprep.subr.mxu1 %v12967_v51  ;;  %v13143_v46 = vsub.f32 %v8971_v21, %v13109_v39  ;;  %v13710_v21 = vld [vmem:[#allocation28_spill] sm:$0xff] }
 0x2de   :  { %9553 = vmatprep.subr.mxu0 %v13698_v62  ;;  %9461 = vmatpush1.msra.mxu1 %v12978_v58  ;;  %v8986_v60 = vmul.f32 %v8980_v11, %v13710_v21  ;;  %v13164_v62 = vsub.f32 %v9035_v44, %v13126_v61  ;;  %v13715_v44 = vld [vmem:[#allocation29_spill] sm:$0xff]  ;;  %v13717_v11 = vld [vmem:[#allocation34_spill] sm:$0xff]  ;;  %v13221_v21 = vand.u32 4294901760, %v8967_v17 }
 0x2df   :  { %9557 = vmatpush1.msra.mxu0 %v13699_v54  ;;  %9498 = vmatmul.mubr.f32.vlgmr.msra.gmra.mxu1 %v12941_v30  ;;  %v13712_v54 = vld [vmem:[#allocation35_spill] sm:$0xff] }
 0x2e0   :  { %9645 = vmatprep.subr.mxu1 %v12805_v14  ;;  %9561 = vmatprep.subr.mxu0 %v13702_v8  ;;  %v8941_v14 = vpop.permute.xlu1 %8940  ;;  %v13201_v25 = vand.u32 4294901760, %v8986_v60  ;;  %v9830_v7 = vand.u32 4294901760, %v13164_v62 }
 0x2e1   :  { %9647 = vmatpush1.msra.mxu1 %v12743_v27  ;;  %9565 = vmatpush1.msra.mxu0 %v13704_v63  ;;  %v13705_v27 = vld [vmem:[#allocation31_spill] sm:$0xff]  ;;  %v8944_v24 = vsel %vm2017_vm4, %v8941_v14, %v13715_v44  ;;  %v8945_v63 = vsel %vm2017_vm4, %v13717_v11, %v8941_v14 }
 0x2e2   :  { %9649 = vmatprep.subr.mxu1 %v12765_v4  ;;  %v9002_v55 = vmul.f32 %v8996_v12, %v13705_v27  ;;  %9569 = vmatprep.subr.mxu0 %v13706_v59  ;;  %v13148_v4 = vand.u32 4294901760, %v9019_v38  ;;  %v13713_v12 = vand.u32 4294901760, %v12982_v20  ;;  %v9836_v20 = vand.u32 4294901760, %v13146_v41 }
 0x2e3   :  { %9651 = vmatpush1.msra.mxu1 %v12759_v1  ;;  %v13709_v1 = vand.u32 4294901760, %v12985_v50  ;;  %v8925_v50 = vpop.permute.xlu0 %8924  ;;  %9622 = vmatprep.mubr.f32.mxu0 %v13687_v43 }
 0x2e4   :  { %9653 = vmatprep.subr.mxu1 %v12843_v29  ;;  %v8961_v29 = vsel %vm3001_vm5, %v13712_v54, %v8957_v53  ;;  %v13175_v3 = vand.u32 4294901760, %v9002_v55  ;;  %v13716_v53 = vand.u32 4294901760, %v12991_v26  ;;  %v13187_v8 = vsub.f32 %v9019_v38, %v13148_v4  ;;  %v8909_v27 = vpop.permute.xlu1 %8908  ;;  %v13718_v26 = vld [vmem:[#allocation22_spill] sm:$0xff]  ;;  %v13719_v38 = vld [vmem:[#allocation19_spill] sm:$0xff]  ;;  %9712 = vmatprep.mubr.f32.mxu1 %v13687_v43 }
 0x2e5   :  { %9573 = vmatpush1.msra.mxu0 %v13709_v1  ;;  %9655 = vmatpush1.msra.mxu1 %v12777_v15  ;;  %v13635_v15 = vand.u32 4294901760, %v13136_v34  ;;  %v8966_v59 = vmul.f32 %v8961_v29, %v13718_v26  ;;  %v8928_v35 = vsel %vm90_vm1, %v8925_v50, %v13719_v38  ;;  %v13230_v54 = vsub.f32 %v8987_v18, %v13189_v40  ;;  %v13725_v18 = vld [vmem:[#allocation9_spill] sm:$0xff] }
 0x2e6   :  { %9577 = vmatprep.subr.mxu0 %v13711_v31  ;;  %9657 = vmatprep.subr.mxu1 %v12807_v48  ;;  %v13632_v48 = vand.u32 4294901760, %v13143_v46  ;;  %v13219_v1 = vsub.f32 %v9002_v55, %v13175_v3  ;;  %v8912_v31 = vsel %vm56_vm3, %v8909_v27, %v12954_v36  ;;  %v13267_v26 = vsub.f32 %v8967_v17, %v13221_v21 }
 0x2e7   :  { %9581 = vmatpush1.msra.mxu0 %v13713_v12  ;;  %9659 = vmatpush1.msra.mxu1 %v12803_v23  ;;  %v13198_v23 = vsub.f32 %v9018_v57, %v13157_v52  ;;  %v13721_v57 = vld [vmem:[#allocation17_spill] sm:$0xff]  ;;  %v9842_v12 = vand.u32 4294901760, %v13187_v8  ;;  %v13240_v22 = vand.u32 4294901760, %v8966_v59 }
 0x2e8   :  { %9585 = vmatprep.subr.mxu0 %v13716_v53  ;;  %9661 = vmatprep.subr.mxu1 %v12734_v6  ;;  %v13209_v6 = vsub.f32 %v9003_v33, %v13166_v32  ;;  %v8951_v14 = vmul.f32 %v8944_v24, %v13721_v57  ;;  %v13726_v24 = vld [vmem:[#allocation13_spill] sm:$0xff]  ;;  %v9860_v11 = vand.u32 4294901760, %v13219_v1 }
 0x2e9   :  { %9589 = vmatpush1.msra.mxu0 %v9259_v47  ;;  %9663 = vmatpush1.msra.mxu1 %v12736_v37  ;;  %v8929_v47 = vsel %vm90_vm1, %v13720_v19, %v8925_v50  ;;  %v13722_v37 = vld [vmem:[#allocation18_spill] sm:$0xff]  ;;  %v13724_v50 = vld [vmem:[#allocation15_spill] sm:$0xff]  ;;  %v9848_v36 = vand.u32 4294901760, %v13198_v23  ;;  %v8919_v53 = vmul.f32 %v8912_v31, %v13726_v24  ;;  %v13631_v19 = vand.u32 4294901760, %v13230_v54 }
 0x2ea   :  { %9624 = vmatmul.mubr.f32.vlgmr.msra.gmra.mxu0 %v12837_v0  ;;  %9665 = vmatprep.subr.mxu1 %v12830_v9  ;;  %v8950_v33 = vmul.f32 %v8945_v63, %v13722_v37  ;;  %v13723_v9 = vld [vmem:[#allocation10_spill] sm:$0xff]  ;;  %v8913_v55 = vsel %vm56_vm3, %v13724_v50, %v8909_v27  ;;  %v8934_v44 = vmul.f32 %v8929_v47, %v13725_v18  ;;  %v13248_v10 = vand.u32 4294901760, %v8951_v14 }
 0x2eb   :  { %9735 = vmatprep.subr.mxu0 %v13126_v61  ;;  %9667 = vmatpush1.msra.mxu1 %v12851_v28  ;;  %v8935_v29 = vmul.f32 %v8928_v35, %v13723_v9  ;;  %v13243_v28 = vsub.f32 %v8986_v60, %v13201_v25  ;;  %v9854_v60 = vand.u32 4294901760, %v13209_v6  ;;  %v13727_v27 = vld [vmem:[#allocation14_spill] sm:$0xff]  ;;  %v9843_v35 = vsub.f32 %v13187_v8, %v9842_v12 }
 0x2ec   :  { %9737 = vmatpush1.msra.mxu0 %v13111_v49  ;;  %9669 = vmatprep.subr.mxu1 %v12863_v13  ;;  %v9831_v13 = vsub.f32 %v13164_v62, %v9830_v7  ;;  %v13258_v63 = vand.u32 4294901760, %v8950_v33  ;;  %v13281_v57 = vand.u32 4294901760, %v8934_v44  ;;  %v13289_v17 = vsub.f32 %v8951_v14, %v13248_v10 }
 0x2ed   :  { %9739 = vmatprep.subr.mxu0 %v13148_v4  ;;  %9671 = vmatpush1.msra.mxu1 %v12952_v16  ;;  %v8918_v16 = vmul.f32 %v8913_v55, %v13727_v27  ;;  %v13269_v38 = vand.u32 4294901760, %v8935_v29  ;;  %v13633_v47 = vand.u32 4294901760, %v13243_v28  ;;  %v13291_v37 = vand.u32 4294901760, %v8919_v53 }
 0x2ee   :  { %9741 = vmatpush1.msra.mxu0 %v13157_v52  ;;  %9673 = vmatprep.subr.mxu1 %v12950_v42  ;;  %v9837_v42 = vsub.f32 %v13146_v41, %v9836_v20  ;;  %v9855_v31 = vsub.f32 %v13209_v6, %v9854_v60  ;;  %v9861_v50 = vsub.f32 %v13219_v1, %v9860_v11  ;;  %v9844_v18 = vand.u32 4294901760, %v9843_v35 }
 0x2ef   :  { %9743 = vmatprep.subr.mxu0 %v13166_v32  ;;  %9675 = vmatpush1.msra.mxu1 %v12957_v2  ;;  %v13278_v2 = vsub.f32 %v8966_v59, %v13240_v22  ;;  %v9832_v59 = vand.u32 4294901760, %v9831_v13  ;;  %v13301_v9 = vand.u32 4294901760, %v8918_v16  ;;  %v13309_v55 = vsub.f32 %v8935_v29, %v13269_v38 }
 0x2f0   :  { %9745 = vmatpush1.msra.mxu0 %v13175_v3  ;;  %9677 = vmatprep.subr.mxu1 %v12967_v51  ;;  %v9849_v51 = vsub.f32 %v13198_v23, %v9848_v36  ;;  %v9838_v14 = vand.u32 4294901760, %v9837_v42  ;;  %v13634_v24 = vand.u32 4294901760, %v13267_v26  ;;  %v13318_v27 = vsub.f32 %v8934_v44, %v13281_v57 }
 0x2f1   :  { %9747 = vmatprep.subr.mxu0 %v13189_v40  ;;  %9679 = vmatpush1.msra.mxu1 %v12978_v58  ;;  %v13299_v58 = vsub.f32 %v8950_v33, %v13258_v63  ;;  %v9867_v33 = vsub.f32 %v13230_v54, %v13631_v19  ;;  %v9896_v13 = vand.u32 4294901760, %v13278_v2  ;;  %v9873_v42 = vsub.f32 %v13243_v28, %v13633_v47 }
 0x2f2   :  { %9749 = vmatpush1.msra.mxu0 %v13201_v25  ;;  %9714 = vmatmul.mubr.f32.vlgmr.msra.gmra.mxu1 %v12837_v0  ;;  %v9850_v29 = vand.u32 4294901760, %v9849_v51  ;;  %v13325_v35 = vsub.f32 %v8919_v53, %v13291_v37  ;;  %v9879_v44 = vsub.f32 %v13143_v46, %v13632_v48  ;;  %v13334_v51 = vsub.f32 %v8918_v16, %v13301_v9 }
 0x2f3   :  { %9751 = vmatprep.subr.mxu0 %v13109_v39  ;;  %9833 = vmatprep.subr.mxu1 %v9832_v59  ;;  %v9856_v59 = vand.u32 4294901760, %v9855_v31  ;;  %v9908_v19 = vand.u32 4294901760, %v13299_v58  ;;  %v9862_v53 = vand.u32 4294901760, %v9861_v50  ;;  %v9868_v31 = vand.u32 4294901760, %v9867_v33 }
 0x2f4   :  { %9753 = vmatpush1.msra.mxu0 %v13101_v5  ;;  %9839 = vmatpush1.msra.mxu1 %v9838_v14  ;;  %v13636_v14 = vand.u32 4294901760, %v13289_v17  ;;  %v9891_v48 = vsub.f32 %v13267_v26, %v13634_v24  ;;  %v9914_v47 = vand.u32 4294901760, %v13309_v55  ;;  %v9920_v16 = vand.u32 4294901760, %v13318_v27 }
 0x2f5   :  { %9755 = vmatprep.subr.mxu0 %v13221_v21  ;;  %9845 = vmatprep.subr.mxu1 %v9844_v18  ;;  %v9885_v18 = vsub.f32 %v13136_v34, %v13635_v15  ;;  %v9874_v50 = vand.u32 4294901760, %v9873_v42  ;;  %v9880_v33 = vand.u32 4294901760, %v9879_v44  ;;  %v9926_v24 = vand.u32 4294901760, %v13325_v35 }
 0x2f6   :  { %9757 = vmatpush1.msra.mxu0 %v13240_v22  ;;  %9851 = vmatpush1.msra.mxu1 %v9850_v29  ;;  %v9897_v29 = vsub.f32 %v13278_v2, %v9896_v13  ;;  %v9932_v15 = vand.u32 4294901760, %v13334_v51  ;;  %v9892_v44 = vand.u32 4294901760, %v9891_v48 }
 0x2f7   :  { %9759 = vmatprep.subr.mxu0 %v13248_v10  ;;  %9857 = vmatprep.subr.mxu1 %v9856_v59  ;;  %v9903_v59 = vsub.f32 %v13289_v17, %v13636_v14  ;;  %v9886_v42 = vand.u32 4294901760, %v9885_v18  ;;  %v9921_v18 = vsub.f32 %v13318_v27, %v9920_v16  ;;  %v9927_v48 = vsub.f32 %v13325_v35, %v9926_v24 }
 0x2f8   :  { %9761 = vmatpush1.msra.mxu0 %v13258_v63  ;;  %9863 = vmatpush1.msra.mxu1 %v9862_v53  ;;  %v9909_v53 = vsub.f32 %v13299_v58, %v9908_v19  ;;  %v9898_v14 = vand.u32 4294901760, %v9897_v29  ;;  %v9933_v29 = vsub.f32 %v13334_v51, %v9932_v15 }
 0x2f9   :  { %9763 = vmatprep.subr.mxu0 %v13269_v38  ;;  %9869 = vmatprep.subr.mxu1 %v9868_v31  ;;  %v9915_v31 = vsub.f32 %v13309_v55, %v9914_v47 }
 0x2fa   :  { %9765 = vmatpush1.msra.mxu0 %v13281_v57  ;;  %9875 = vmatpush1.msra.mxu1 %v9874_v50  ;;  %v9904_v50 = vand.u32 4294901760, %v9903_v59  ;;  %v9928_v59 = vand.u32 4294901760, %v9927_v48 }
 0x2fb   :  { %9767 = vmatprep.subr.mxu0 %v13291_v37  ;;  %9881 = vmatprep.subr.mxu1 %v9880_v33  ;;  %v9910_v33 = vand.u32 4294901760, %v9909_v53  ;;  %v10393_v53 = vld [vmem:[%s13574_s6] sm:$0xff] }
 0x2fc   :  { %9769 = vmatpush1.msra.mxu0 %v13301_v9  ;;  %9802 = vmatprep.mubr.f32.mxu0 %v13687_v43 }
 0x2fd   :  { %9887 = vmatpush1.msra.mxu1 %v9886_v42  ;;  %9808 = vmatmul.mubr.f32.vlgmr.msra.gmra.mxu0 %v12988_v45  ;;  %v9916_v42 = vand.u32 4294901760, %v9915_v31  ;;  %v9922_v45 = vand.u32 4294901760, %v9921_v18 }
 0x2fe   :  { %9893 = vmatprep.subr.mxu1 %v9892_v44  ;;  %9992 = vmatprep.subr.mxu0 %v13164_v62  ;;  %v10401_v44 = vsel %vm117_vm0, %v10393_v53, 0 }
 0x2ff   :  { %9899 = vmatpush1.msra.mxu1 %v9898_v14  ;;  %9995 = vmatpush1.msra.mxu0 %v13146_v41  ;;  %v9934_v14 = vand.u32 4294901760, %v9933_v29  ;;  %v13429_v62 = vand.u32 4294901760, %v10401_v44 }
 0x300   :  { %9905 = vmatprep.subr.mxu1 %v9904_v50  ;;  %9998 = vmatprep.subr.mxu0 %v13187_v8 }
 0x301   :  { %9911 = vmatpush1.msra.mxu1 %v9910_v33  ;;  %10001 = vmatpush1.msra.mxu0 %v13198_v23  ;;  %v13729_v23 = vand.u32 4294901760, %v13230_v54 }
 0x302   :  { %9917 = vmatprep.subr.mxu1 %v9916_v42  ;;  %10004 = vmatprep.subr.mxu0 %v13209_v6  ;;  %v13730_v6 = vand.u32 4294901760, %v13243_v28 }
 0x303   :  { %9923 = vmatpush1.msra.mxu1 %v9922_v45  ;;  %10007 = vmatpush1.msra.mxu0 %v13219_v1  ;;  %v13731_v1 = vand.u32 4294901760, %v13143_v46 }
 0x304   :  { %9929 = vmatprep.subr.mxu1 %v9928_v59  ;;  %10010 = vmatprep.subr.mxu0 %v13230_v54  ;;  %v13732_v54 = vand.u32 4294901760, %v13136_v34 }
 0x305   :  { %9935 = vmatpush1.msra.mxu1 %v9934_v14  ;;  %9968 = vmatprep.mubr.f32.mxu1 %v13687_v43 }
 0x306   :  { %10013 = vmatpush1.msra.mxu0 %v13243_v28  ;;  %9970 = vmatmul.mubr.f32.vlgmr.msra.gmra.mxu1 %v12837_v0  ;;  %v13733_v28 = vand.u32 4294901760, %v13267_v26 }
 0x307   :  { %10016 = vmatprep.subr.mxu0 %v13143_v46  ;;  %10100 = vmatprep.subr.mxu1 %v13126_v61  ;;  %v13734_v46 = vand.u32 4294901760, %v13289_v17 }
 0x308   :  { %10019 = vmatpush1.msra.mxu0 %v13136_v34  ;;  %10102 = vmatpush1.msra.mxu1 %v13111_v49 }
 0x309   :  { %10022 = vmatprep.subr.mxu0 %v13267_v26  ;;  %10104 = vmatprep.subr.mxu1 %v13148_v4 }
 0x30a   :  { %10025 = vmatpush1.msra.mxu0 %v13278_v2  ;;  %10106 = vmatpush1.msra.mxu1 %v13157_v52 }
 0x30b   :  { %10028 = vmatprep.subr.mxu0 %v13289_v17  ;;  %10108 = vmatprep.subr.mxu1 %v13166_v32 }
 0x30c   :  { %10031 = vmatpush1.msra.mxu0 %v13299_v58  ;;  %10110 = vmatpush1.msra.mxu1 %v13175_v3 }
 0x30d   :  { %10034 = vmatprep.subr.mxu0 %v13309_v55  ;;  %10112 = vmatprep.subr.mxu1 %v13189_v40 }
 0x30e   :  { %10037 = vmatpush1.msra.mxu0 %v13318_v27  ;;  %10114 = vmatpush1.msra.mxu1 %v13201_v25 }
 0x30f   :  { %10040 = vmatprep.subr.mxu0 %v13325_v35  ;;  %10116 = vmatprep.subr.mxu1 %v13109_v39 }
 0x310   :  { %10043 = vmatpush1.msra.mxu0 %v13334_v51  ;;  %10076 = vmatprep.mubr.f32.mxu0 %v13687_v43 }
 0x311   :  { %10118 = vmatpush1.msra.mxu1 %v13101_v5  ;;  %10079 = vmatmul.mubr.f32.vlgmr.msra.gmra.mxu0 %v12894_v56  ;;  %v13728_v56 = vld [vmem:[#allocation6_spill] sm:$0xff] }
 0x312   :  { %10120 = vmatprep.subr.mxu1 %v13221_v21  ;;  %10194 = vmatprep.subr.mxu0 %v9830_v7  ;;  %v10405_v41 = vsel %vm121_vm2, %v13728_v56, 0 }
 0x313   :  { %10122 = vmatpush1.msra.mxu1 %v13240_v22  ;;  %10198 = vmatpush1.msra.mxu0 %v9836_v20  ;;  %v11402_v20 = vld [vmem:[%s13568_s0] sm:$0xff]  ;;  %v13444_v7 = vand.u32 4294901760, %v10405_v41 }
 0x314   :  { %10124 = vmatprep.subr.mxu1 %v13248_v10  ;;  %10202 = vmatprep.subr.mxu0 %v9842_v12  ;;  %v10403_v8 = vsel %vm121_vm2, %v11402_v20, 0 }
 0x315   :  { %10126 = vmatpush1.msra.mxu1 %v13258_v63  ;;  %10206 = vmatpush1.msra.mxu0 %v9848_v36  ;;  %v13449_v12 = vand.u32 4294901760, %v10403_v8  ;;  %v13452_v36 = vsub.f32 %v10401_v44, %v13429_v62 }
 0x316   :  { %10128 = vmatprep.subr.mxu1 %v13269_v38  ;;  %10210 = vmatprep.subr.mxu0 %v9854_v60 }
 0x317   :  { %10130 = vmatpush1.msra.mxu1 %v13281_v57  ;;  %10214 = vmatpush1.msra.mxu0 %v9860_v11  ;;  %v13469_v34 = vand.u32 4294901760, %v13452_v36 }
 0x318   :  { %10132 = vmatprep.subr.mxu1 %v13291_v37  ;;  %10218 = vmatprep.subr.mxu0 %v13729_v23 }
 0x319   :  { %10134 = vmatpush1.msra.mxu1 %v13301_v9  ;;  %10167 = vmatprep.mubr.f32.mxu1 %v13687_v43 }
 0x31a   :  { %10222 = vmatpush1.msra.mxu0 %v13730_v6  ;;  %10171 = vmatmul.mubr.f32.vlgmr.msra.gmra.mxu1 %v12941_v30  ;;  %v10520_v30 = vsub.f32 %v10405_v41, %v13444_v7 }
 0x31b   :  { %10226 = vmatprep.subr.mxu0 %v13731_v1  ;;  %10318 = vmatprep.subr.mxu1 %v13126_v61  ;;  %v10526_v61 = vsub.f32 %v10403_v8, %v13449_v12 }
 0x31c   :  { %10230 = vmatpush1.msra.mxu0 %v13732_v54  ;;  %10320 = vmatpush1.msra.mxu1 %v13111_v49  ;;  %v13735_v49 = vld [vmem:[#allocation5_spill] sm:$0xff] }
 0x31d   :  { %10234 = vmatprep.subr.mxu0 %v13733_v28  ;;  %10322 = vmatprep.subr.mxu1 %v13148_v4  ;;  %v10409_v4 = vsel %vm121_vm2, %v13735_v49, 0 }
 0x31e   :  { %10238 = vmatpush1.msra.mxu0 %v9896_v13  ;;  %10324 = vmatpush1.msra.mxu1 %v13157_v52  ;;  %v10521_v52 = vand.u32 4294901760, %v10520_v30  ;;  %v13490_v60 = vand.u32 4294901760, %v10409_v4 }
 0x31f   :  { %10242 = vmatprep.subr.mxu0 %v13734_v46  ;;  %10326 = vmatprep.subr.mxu1 %v13166_v32  ;;  %v10481_v32 = vsub.f32 %v13452_v36, %v13469_v34 }
 0x320   :  { %10246 = vmatpush1.msra.mxu0 %v9908_v19  ;;  %10328 = vmatpush1.msra.mxu1 %v13175_v3  ;;  %v10527_v3 = vand.u32 4294901760, %v10526_v61  ;;  %v10985_v19 = vsub.f32 %v10409_v4, %v13490_v60 }
 0x321   :  { %10250 = vmatprep.subr.mxu0 %v9914_v47  ;;  %10330 = vmatprep.subr.mxu1 %v13189_v40  ;;  %v11403_v40 = vld [vmem:[%s13568_s0 + $0x8] sm:$0xff]  ;;  %s11436_s0 = smov [#allocation2]  }
 0x322   :  { %10254 = vmatpush1.msra.mxu0 %v9920_v16  ;;  %10332 = vmatpush1.msra.mxu1 %v13201_v25  ;;  %v10407_v25 = vsel %vm121_vm2, %v11403_v40, 0  ;;  %v10528_v11 = vsub.f32 %v10526_v61, %v10527_v3  ;;  %s11359_s24 = sshll.u32 %s11436_s0, 4  ;;  %s11360_s24 = int_to_ptr.vmem [resolvable:$true] %s11359_s24 }
 0x323   :  { %10258 = vmatprep.subr.mxu0 %v9926_v24  ;;  %10334 = vmatprep.subr.mxu1 %v13109_v39  ;;  %v10522_v39 = vsub.f32 %v10520_v30, %v10521_v52  ;;  %v10908_v26 = vand.u32 4294901760, %v10407_v25  ;;  %s11404_s25 = scalar_lea.vmem %s11360_s24, 512  ;;  %p11409_p1 = scmp.lt.s32.totalorder %s11360_s24, %s11360_s24 }
 0x324   :  { %10262 = vmatpush1.msra.mxu0 %v9932_v15  ;;  %10295 = vmatprep.mubr.f32.mxu0 %v13687_v43  ;;  %v10482_v15 = vand.u32 4294901760, %v10481_v32  ;;  %p11405_p0 = scmp.ne.s32.totalorder %s11360_s24, %s11404_s25  ;;  %p11410_p2 = scmp.lt.s32.totalorder %s11404_s25, %s11404_s25 }
 0x325   :  { %10336 = vmatpush1.msra.mxu1 %v13101_v5  ;;  %10297 = vmatmul.mubr.f32.vlgmr.msra.gmra.mxu0 %v12837_v0  ;;  %v10523_v5 = vand.u32 4294901760, %v10522_v39 }
 0x326   :  { %10338 = vmatprep.subr.mxu1 %v13221_v21  ;;  %10442 = vmatprep.subr.mxu0 %v13444_v7  ;;  %v10529_v21 = vand.u32 4294901760, %v10528_v11  ;;  %p11411_p3 = por %p11410_p2, %p11409_p1 }
 0x327   :  { %10340 = vmatpush1.msra.mxu1 %v13240_v22  ;;  %10385 = vmatprep.mubr.f32.mxu1 %v13687_v43  ;;  %v10991_v22 = vsub.f32 %v10407_v25, %v10908_v26 }
 0x328   :  { %10342 = vmatprep.subr.mxu1 %v13248_v10  ;;  %10444 = vmatpush1.msra.mxu0 %v13449_v12  ;;  %v10986_v10 = vand.u32 4294901760, %v10985_v19  ;;  %p11412_p4 = pnand %p11411_p3, %p11405_p0 }
 0x329   :  { %10344 = vmatpush1.msra.mxu1 %v13258_v63  ;;  %10477 = vmatprep.mubr.f32.mxu0 %v13687_v43  ;;  %v10992_v63 = vand.u32 4294901760, %v10991_v22 }
 0x32a   :  { %10346 = vmatprep.subr.mxu1 %v13269_v38  ;;  %10483 = vmatmul.mubr.f32.vlgmr.msra.gmra.mxu0 %v10482_v15  ;;  %v10987_v38 = vsub.f32 %v10985_v19, %v10986_v10 }
 0x32b   :  { %10348 = vmatpush1.msra.mxu1 %v13281_v57  ;;  %10603 = vmatprep.subr.mxu0 %v10520_v30 }
 0x32c   :  { %10350 = vmatprep.subr.mxu1 %v13291_v37  ;;  %10606 = vmatpush1.msra.mxu0 %v10526_v61  ;;  %v10988_v2 = vand.u32 4294901760, %v10987_v38 }
 0x32d   :  { %10352 = vmatpush1.msra.mxu1 %v13301_v9  ;;  %10639 = vmatprep.mubr.f32.mxu0 %v13687_v43 }
 0x32e   :  { %10387 = vmatmul.mubr.f32.vlgmr.msra.gmra.mxu1 %v12837_v0  ;;  %10524 = vmatprep.subr.mxu1 %v10523_v5  ;;  %v10993_v0 = vsub.f32 %v10991_v22, %v10992_v63 }
 0x32f   :  { %10530 = vmatpush1.msra.mxu1 %v10529_v21  ;;  %10563 = vmatprep.mubr.f32.mxu1 %v13687_v43 }
 0x330   :  { %10679 = vmatprep.subr.mxu1 %v13444_v7  ;;  %10642 = vmatmul.mubr.f32.vlgmr.msra.gmra.mxu0 %v13452_v36  ;;  %v10994_v47 = vand.u32 4294901760, %v10993_v0 }
 0x331   :  { %10757 = vmatprep.subr.mxu0 %v10521_v52  ;;  %10794 = vmatprep.mubr.f32.mxu0 %v13687_v43 }
 0x332   :  { %10565 = vmatmul.mubr.f32.vlgmr.msra.gmra.mxu1 %v13429_v62  ;;  %10761 = vmatpush1.msra.mxu0 %v10527_v3 }
 0x333   :  { %10681 = vmatpush1.msra.mxu1 %v13449_v12  ;;  %10714 = vmatprep.mubr.f32.mxu1 %v13687_v43 }
 0x334   :  { %10833 = vmatprep.subr.mxu1 %v13444_v7  ;;  %10796 = vmatmul.mubr.f32.vlgmr.msra.gmra.mxu0 %v13429_v62 }
 0x335   :  { %10907 = vmatprep.subr.mxu0 %v13490_v60  ;;  %10942 = vmatprep.mubr.f32.mxu0 %v13687_v43 }
 0x336   :  { %10718 = vmatmul.mubr.f32.vlgmr.msra.gmra.mxu1 %v13469_v34  ;;  %10909 = vmatpush1.msra.mxu0 %v10908_v26 }
 0x337   :  { %10835 = vmatpush1.msra.mxu1 %v13449_v12  ;;  %10868 = vmatprep.mubr.f32.mxu1 %v13687_v43 }
 0x338   :  { %10989 = vmatprep.subr.mxu1 %v10988_v2  ;;  %10948 = vmatmul.mubr.f32.vlgmr.msra.gmra.mxu0 %v10482_v15 }
 0x339   :  { %11068 = vmatprep.subr.mxu0 %v10985_v19  ;;  %11104 = vmatprep.mubr.f32.mxu0 %v13687_v43 }
 0x33a   :  { %10870 = vmatmul.mubr.f32.vlgmr.msra.gmra.mxu1 %v13429_v62  ;;  %11071 = vmatpush1.msra.mxu0 %v10991_v22 }
 0x33b   :  { %10995 = vmatpush1.msra.mxu1 %v10994_v47  ;;  %11028 = vmatprep.mubr.f32.mxu1 %v13687_v43 }
 0x33c   :  { %11144 = vmatprep.subr.mxu1 %v13490_v60  ;;  %11107 = vmatmul.mubr.f32.vlgmr.msra.gmra.mxu0 %v13452_v36 }
 0x33d   :  { %11222 = vmatprep.subr.mxu0 %v10986_v10  ;;  %11259 = vmatprep.mubr.f32.mxu0 %v13687_v43 }
 0x33e   :  { %11030 = vmatmul.mubr.f32.vlgmr.msra.gmra.mxu1 %v13429_v62  ;;  %11226 = vmatpush1.msra.mxu0 %v10992_v63 }
 0x33f   :  { %11146 = vmatpush1.msra.mxu1 %v10908_v26  ;;  %11179 = vmatprep.mubr.f32.mxu1 %v13687_v43 }
 0x340   :  { %11298 = vmatprep.subr.mxu1 %v13490_v60  ;;  %11261 = vmatmul.mubr.f32.vlgmr.msra.gmra.mxu0 %v13429_v62  ;;  %v10398_v53 = vpop.permute.xlu1 %10397 }
 0x342   :  { %11183 = vmatmul.mubr.f32.vlgmr.msra.gmra.mxu1 %v13469_v34 }
 0x343   :  { %11300 = vmatpush1.msra.mxu1 %v10908_v26  ;;  %11333 = vmatprep.mubr.f32.mxu1 %v13687_v43 }
 0x346   :  { %11335 = vmatmul.mubr.f32.vlgmr.msra.gmra.mxu1 %v13429_v62  ;;  %v9041_v62 = vpop.permute.xlu0 %9040 }
 0x383   :  { %v9136_v57 = vpop.f32.mrf.mxu0 }
 0x384   :  { %v9137_v8 = vadd.f32 %v9136_v57, %v9041_v62 }
 0x385   :  { %v9138_v17 = vpop.f32.mrf.mxu0 }
 0x386   :  { %v9139_v6 = vadd.f32 %v9138_v17, %v9041_v62 }
 0x38b   :  { %v9298_v58 = vpop.f32.mrf.mxu1 }
 0x38c   :  { %v9299_v1 = vadd.f32 %v9298_v58, %v9137_v8 }
 0x38d   :  { %v9300_v55 = vpop.f32.mrf.mxu1 }
 0x38e   :  { %v9301_v28 = vadd.f32 %v9300_v55, %v9139_v6 }
 0x395   :  { %v9407_v37 = vpop.f32.mrf.mxu0 }
 0x396   :  { %v9408_v46 = vadd.f32 %v9407_v37, %v9299_v1 }
 0x397   :  { %v9409_v9 = vpop.f32.mrf.mxu0 }
 0x398   :  { %v9410_v4 = vadd.f32 %v9409_v9, %v9301_v28 }
 0x39f   :  { %v9499_v13 = vpop.f32.mrf.mxu1 }
 0x3a0   :  { %v9500_v32 = vadd.f32 %v9499_v13, %v9408_v46 }
 0x3a1   :  { %v9501_v35 = vpop.f32.mrf.mxu1 }
 0x3a2   :  { %v9502_v25 = vadd.f32 %v9501_v35, %v9410_v4 }
 0x3aa   :  { %v9625_v24 = vpop.f32.mrf.mxu0 }
 0x3ab   :  { %v9626_v15 = vadd.f32 %v9625_v24, %v9500_v32 }
 0x3ac   :  { %v9627_v27 = vpop.f32.mrf.mxu0 }
 0x3ad   :  { %v9628_v5 = vadd.f32 %v9627_v27, %v9502_v25 }
 0x3b2   :  { %v9715_v16 = vpop.f32.mrf.mxu1 }
 0x3b3   :  { %v9716_v22 = vadd.f32 %v9715_v16, %v9626_v15 }
 0x3b4   :  { %v9717_v18 = vpop.f32.mrf.mxu1 }
 0x3b5   :  { %v9718_v57 = vadd.f32 %v9717_v18, %v9628_v5 }
 0x3bd   :  { %v9809_v51 = vpop.f32.mrf.mxu0 }
 0x3be   :  { %v9810_v2 = vadd.f32 %v9809_v51, %v9041_v62 }
 0x3bf   :  { %v9811_v31 = vpop.f32.mrf.mxu0 }
 0x3c0   :  { %v9812_v9 = vadd.f32 %v9811_v31, %v9041_v62 }
 0x3c6   :  { %v9971_v48 = vpop.f32.mrf.mxu1 }
 0x3c7   :  { %v9972_v55 = vadd.f32 %v9971_v48, %v9810_v2 }
 0x3c8   :  { %v9973_v33 = vpop.f32.mrf.mxu1 }
 0x3d1   :  { %v13541_v50 = vpop.f32.mrf.mxu0 }
 0x3d2   :  { %v10081_v8 = vadd.f32 %v13541_v50, %v9972_v55 }
 0x3d3   :  { %v13543_v43 = vpop.f32.mrf.mxu0 }
 0x3da   :  { %v13547_v42 = vpop.f32.mrf.mxu1 }
 0x3db   :  { %v10173_v31 = vadd.f32 %v13547_v42, %v10081_v8 }
 0x3dc   :  { %v13551_v14 = vpop.f32.mrf.mxu1 }
 0x3e5   :  { %v13545_v29 = vpop.f32.mrf.mxu0 }
 0x3e7   :  { %v13549_v45 = vpop.f32.mrf.mxu0 }
 0x3ea   :  { %v10484_v59 = vpop.f32.mrf.mxu0 }
 0x3eb   :  { %v10485_v41 = vadd.f32 %v10484_v59, %v10398_v53 }
 0x3ec   :  { %v10486_v44 = vpop.f32.mrf.mxu0 }
 0x3ed   :  { %v10487_v12 = vadd.f32 %v10486_v44, %v10398_v53 }
 0x3ee   :  { %v13553_v56 = vpop.f32.mrf.mxu1 }
 0x3f0   :  { %v13555_v20 = vpop.f32.mrf.mxu1  ;;  %v10643_v23 = vpop.f32.mrf.mxu0 }
 0x3f2   :  { %v10566_v7 = vpop.f32.mrf.mxu1  ;;  %v10645_v54 = vpop.f32.mrf.mxu0 }
 0x3f3   :  { %v10567_v36 = vadd.f32 %v10566_v7, %v10485_v41  ;;  %v9974_v41 = vadd.f32 %v9973_v33, %v9812_v9  ;;  %v10299_v33 = vadd.f32 %v13545_v29, %v10173_v31 }
 0x3f4   :  { %v10568_v30 = vpop.f32.mrf.mxu1  ;;  %v10797_v49 = vpop.f32.mrf.mxu0 }
 0x3f5   :  { %v10644_v61 = vadd.f32 %v10643_v23, %v10567_v36  ;;  %v10569_v34 = vadd.f32 %v10568_v30, %v10487_v12  ;;  %v10083_v1 = vadd.f32 %v13543_v43, %v9974_v41  ;;  %v10389_v46 = vadd.f32 %v13553_v56, %v10299_v33 }
 0x3f6   :  { %v10719_v52 = vpop.f32.mrf.mxu1  ;;  %v10799_v40 = vpop.f32.mrf.mxu0 }
 0x3f7   :  { %v10646_v3 = vadd.f32 %v10645_v54, %v10569_v34  ;;  %v10720_v60 = vadd.f32 %v10719_v52, %v10644_v61  ;;  %v10175_v12 = vadd.f32 %v13551_v14, %v10083_v1 }
 0x3f8   :  { %v10721_v39 = vpop.f32.mrf.mxu1  ;;  %v10949_v19 = vpop.f32.mrf.mxu0 }
 0x3f9   :  { %v10798_v11 = vadd.f32 %v10797_v49, %v10720_v60  ;;  %v10722_v26 = vadd.f32 %v10721_v39, %v10646_v3  ;;  %v10950_v38 = vadd.f32 %v10949_v19, %v10398_v53  ;;  %v10301_v30 = vadd.f32 %v13549_v45, %v10175_v12 }
 0x3fa   :  { %v10871_v21 = vpop.f32.mrf.mxu1  ;;  %v10951_v0 = vpop.f32.mrf.mxu0 }
 0x3fb   :  { %v10800_v10 = vadd.f32 %v10799_v40, %v10722_v26  ;;  %v10872_v63 = vadd.f32 %v10871_v21, %v10798_v11  ;;  %v10952_v59 = vadd.f32 %v10951_v0, %v10398_v53  ;;  %v10391_v42 = vadd.f32 %v13555_v20, %v10301_v30 }
 0x3fc   :  { %v10873_v47 = vpop.f32.mrf.mxu1  ;;  %v11108_v58 = vpop.f32.mrf.mxu0 }
 0x3fd   :  { %v11341_v17 = vadd.f32 %v10872_v63, %v9716_v22  ;;  %v10874_v37 = vadd.f32 %v10873_v47, %v10800_v10 }
 0x3fe   :  { %v11031_v13 = vpop.f32.mrf.mxu1  ;;  %v11110_v27 = vpop.f32.mrf.mxu0 }
 0x3ff   :  { %v11345_v24 = vmax.f32 %v11341_v17, 0.0  ;;  %v11342_v35 = vadd.f32 %v10874_v37, %v9718_v57  ;;  %v11032_v44 = vadd.f32 %v11031_v13, %v10950_v38 }
 0x400   :  { %v11033_v16 = vpop.f32.mrf.mxu1  ;;  %v11262_v7 = vpop.f32.mrf.mxu0 }
 0x401   :  { %11349 = vst [vmem:[#allocation2] sm:$0xff] %v11345_v24  ;;  %v11346_v23 = vmax.f32 %v11342_v35, 0.0  ;;  %v11109_v51 = vadd.f32 %v11108_v58, %v11032_v44  ;;  %v11034_v6 = vadd.f32 %v11033_v16, %v10952_v59 }
 0x402   :  { %v11184_v18 = vpop.f32.mrf.mxu1  ;;  %v11264_v54 = vpop.f32.mrf.mxu0 }
 0x403   :  { %11350 = vst [vmem:[#allocation2 + $0x8] sm:$0xff] %v11346_v23  ;;  %v11111_v48 = vadd.f32 %v11110_v27, %v11034_v6  ;;  %v11185_v62 = vadd.f32 %v11184_v18, %v11109_v51 }
 0x404   :  { %v11186_v53 = vpop.f32.mrf.mxu1 }
 0x405   :  { %v11263_v36 = vadd.f32 %v11262_v7, %v11185_v62  ;;  %v11187_v50 = vadd.f32 %v11186_v53, %v11111_v48 }
 0x406   :  { %v11336_v28 = vpop.f32.mrf.mxu1 }
 0x407   :  { %v11265_v61 = vadd.f32 %v11264_v54, %v11187_v50  ;;  %v11337_v43 = vadd.f32 %v11336_v28, %v11263_v36 }
 0x408   :  { %v11338_v34 = vpop.f32.mrf.mxu1 }
 0x409   :  { %v11343_v49 = vadd.f32 %v11337_v43, %v10389_v46  ;;  %v11339_v4 = vadd.f32 %v11338_v34, %v11265_v61 }
 0x40b   :  { %v11347_v14 = vmax.f32 %v11343_v49, 0.0  ;;  %v11344_v52 = vadd.f32 %v11339_v4, %v10391_v42 }
 0x40d   :  { %11351 = vst [vmem:[#allocation2 + $0x10] sm:$0xff] %v11347_v14  ;;  %v11348_v29 = vmax.f32 %v11344_v52, 0.0 }
 0x40f   :  { %11352 = vst [vmem:[#allocation2 + $0x18] sm:$0xff] %v11348_v29 }
 0x410   :  { %11415 = shalt.err (!%p11412_p4)
}
 0x411   :  { %11362 = dma.vmem_to_hbm [thread:$0]  %s11360_s24, 512, %s13576_s8, [#allocation3]  }
 0x412   :  { %11424 = dma.done.wait [#allocation3], 512  }
 0x413   :  { %11425 = vsyncadd [#allocation3], 4294966784 }
 0x414   :  { %11366 = vsyncpa [#allocation3], 1 }

</bundles_post_ra>
